<compile_context>
chip_gen: v7x
topology: tpu7x:2x2x1
jax: 0.10.0
libtpu: 0.0.40
codegen_flags: <defaults>
</compile_context>

<pallas_src>
import functools

import jax
import jax.numpy as jnp
from jax import lax
from jax.experimental import pallas as pl
from jax.experimental.pallas import tpu as pltpu


def _round_up(x, m):
    return -(-x // m) * m


# ----------------------------------------------------------------------------
# Fully fused forward kernel: one grid step == one image, all layers in VMEM.
# ----------------------------------------------------------------------------
def _fused_forward_kernel(*refs, cfgs, chunk_rows):
    """refs = [x, w0, b0, ..., wL, bL, out, conv0, xpad1, conv1, ..., convL].

    Per layer l (static cfgs[l] = H, W, pool, relu):
      * cur_in is the zero-padded input, row-flattened with width Wp = W+2,
        holding (H+3)*Wp rows (1-row top halo, 2 bottom spare rows).
      * Conv3x3('same') is evaluated as 9 shifted matmuls over that slab:
        output flat position m = i*Wp + j reads cur_in[m + dh*Wp + dw].
        Columns j >= W of each output row are junk and are never read.
      * bias + ReLU are fused into the single store per M-chunk.
      * MaxPool(pool) reads the conv scratch with strided slices and writes
        the pooled rows straight into the NEXT layer's padded VMEM buffer.
      * The head (last cfg) stores only its valid output channel(s) to HBM.
    """
    n_layers = len(cfgs)
    x_ref = refs[0]
    w_refs = [refs[1 + 2 * l] for l in range(n_layers)]
    b_refs = [refs[2 + 2 * l] for l in range(n_layers)]
    o_ref = refs[1 + 2 * n_layers]
    scratch = list(refs[2 + 2 * n_layers:])

    cur_in = x_ref            # layer-0 padded slab comes straight from HBM DMA
    si = 0
    for l, cfg in enumerate(cfgs):
        h, w, pool, relu = cfg["H"], cfg["W"], cfg["pool"], cfg["relu"]
        wp = w + 2
        m_tot = h * wp
        conv_ref = scratch[si]; si += 1          # (m_tot, cout_pad) float32

        # ---- conv as 9 shifted matmuls; register accumulation per chunk ----
        for m0 in range(0, m_tot, chunk_rows):
            mlen = min(chunk_rows, m_tot - m0)
            acc = None
            for dh in range(3):
                for dw in range(3):
                    a = cur_in[pl.ds(m0 + dh * wp + dw, mlen), :]
                    t = jnp.dot(a, w_refs[l][dh * 3 + dw],
                                preferred_element_type=jnp.float32)
                    acc = t if acc is None else acc + t
            acc = acc + b_refs[l][...]           # fp32 bias
            if relu:
                acc = jnp.maximum(acc, 0.0)
            conv_ref[pl.ds(m0, mlen), :] = acc   # single store per chunk

        if l < n_layers - 1:
            # ---- fused MaxPool(pool) -> next layer's padded VMEM input ----
            ho, wo = h // pool, w // pool
            wp_next = wo + 2
            nxt = scratch[si]; si += 1           # ((ho+3)*wp_next, cout_pad)
            nxt[...] = jnp.zeros_like(nxt)       # halo + padded channels = 0
            for r in range(ho):
                best = None
                for ph in range(pool):
                    base = (r * pool + ph) * wp
                    for pw in range(pool):
                        if pool == 1:
                            v = conv_ref[pl.ds(base + pw, wo), :]
                        else:
                            v = conv_ref[pl.ds(base + pw, wo, pool), :]
                        best = v if best is None else jnp.maximum(best, v)
                nxt[pl.ds((r + 1) * wp_next + 1, wo), :] = best.astype(nxt.dtype)
            cur_in = nxt
        else:
            # ---- head: store only the valid output channel(s) to HBM ----
            n_out_ch = o_ref.shape[-1]
            for i in range(h):
                row = conv_ref[pl.ds(i * wp, w), :]          # (W, cout_pad)
                o_ref[i] = row[:, :n_out_ch].astype(o_ref.dtype)


# ----------------------------------------------------------------------------
# PatchDiscriminator forward (NCHW in, NCHW out)
# ----------------------------------------------------------------------------
def patch_discriminator_forward(x_nchw, params, max_pools,
                                compute_dtype=jnp.bfloat16, chunk_rows=128):
    n, c_in, h0, w0 = x_nchw.shape
    encoder = params["encoder"]
    head_w, head_b = params["head"]
    assert len(encoder) == len(max_pools)

    # ---- static per-layer configuration (encoder layers + head) ----
    all_layers = [(wl, bl, int(p), True) for (wl, bl), p in zip(encoder, max_pools)]
    all_layers.append((head_w, head_b, 1, False))

    cfgs, layer_ws, layer_bs = [], [], []
    cur_h, cur_w, cur_cin = h0, w0, c_in
    cin_pad = _round_up(max(cur_cin, 8), 8)
    first_cin_pad = cin_pad
    for (wl, bl, pool, relu) in all_layers:
        kh, kw, wcin, cout = wl.shape
        assert (kh, kw) == (3, 3) and wcin == cur_cin
        # TODO(synk): PyTorch floor-mode MaxPool for non-divisible H/W not handled.
        assert cur_h % pool == 0 and cur_w % pool == 0
        cout_pad = _round_up(max(cout, 8), 8)
        cfgs.append(dict(H=cur_h, W=cur_w, pool=pool, relu=relu,
                         cin_pad=cin_pad, cout_pad=cout_pad, cout=cout))
        layer_ws.append(
            jnp.pad(wl.reshape(9, wcin, cout),
                    ((0, 0), (0, cin_pad - wcin), (0, cout_pad - cout))
                    ).astype(compute_dtype))
        layer_bs.append(
            jnp.pad(bl, (0, cout_pad - cout)).reshape(1, cout_pad)
            .astype(jnp.float32))
        cur_h, cur_w = cur_h // pool, cur_w // pool
        cur_cin, cin_pad = cout, cout_pad

    h_out, w_out = cur_h, cur_w
    n_head_out = head_w.shape[-1]

    # ---- input: NCHW -> NHWC, channel pad to 8, halo pad, row-flatten ----
    xh = jnp.transpose(x_nchw, (0, 2, 3, 1)).astype(compute_dtype)
    if first_cin_pad != c_in:
        xh = jnp.pad(xh, ((0, 0), (0, 0), (0, 0), (0, first_cin_pad - c_in)))
    xp = jnp.pad(xh, ((0, 0), (1, 2), (1, 1), (0, 0)))       # (N, H+3, W+2, C)
    rows0 = (h0 + 3) * (w0 + 2)
    x_in = xp.reshape(n, rows0, first_cin_pad)

    # ---- specs, operands, scratch ----
    in_specs = [pl.BlockSpec((None, rows0, first_cin_pad), lambda i: (i, 0, 0))]
    operands = [x_in]
    for wl, bl in zip(layer_ws, layer_bs):
        in_specs.append(pl.BlockSpec(wl.shape, lambda i: (0, 0, 0)))
        in_specs.append(pl.BlockSpec(bl.shape, lambda i: (0, 0)))
        operands += [wl, bl]

    scratch_shapes = []
    est_bytes = 0
    act_isz = jnp.dtype(compute_dtype).itemsize
    for l, cfg in enumerate(cfgs):
        wp = cfg["W"] + 2
        m_tot = cfg["H"] * wp
        scratch_shapes.append(pltpu.VMEM((m_tot, cfg["cout_pad"]), jnp.float32))
        est_bytes += _round_up(m_tot, 8) * _round_up(cfg["cout_pad"], 128) * 4
        if l < len(cfgs) - 1:
            nh, nw = cfg["H"] // cfg["pool"], cfg["W"] // cfg["pool"]
            rows = (nh + 3) * (nw + 2)
            scratch_shapes.append(
                pltpu.VMEM((rows, cfg["cout_pad"]), compute_dtype))
            est_bytes += (_round_up(rows, 16)
                          * _round_up(cfg["cout_pad"], 128) * act_isz)
    # TODO(synk): for very large feature maps this whole-image-resident design
    # would need per-layer row tiling inside the kernel; fail loudly instead.
    assert est_bytes < 40 * 1024 * 1024, est_bytes

    flops = sum(2 * n * cfg["H"] * cfg["W"] * 9 * cfg["cin_pad"] * cfg["cout_pad"]
                for cfg in cfgs)
    bytes_accessed = (x_in.size * x_in.dtype.itemsize
                      + sum(a.size * a.dtype.itemsize for a in layer_ws)
                      + sum(a.size * a.dtype.itemsize for a in layer_bs)
                      + n * h_out * w_out * n_head_out * 4)

    kern = functools.partial(_fused_forward_kernel, cfgs=cfgs,
                             chunk_rows=chunk_rows)

    out_nhwc = pl.pallas_call(
        kern,
        out_shape=jax.ShapeDtypeStruct((n, h_out, w_out, n_head_out),
                                       jnp.float32),
        grid=(n,),
        in_specs=in_specs,
        out_specs=pl.BlockSpec((None, h_out, w_out, n_head_out),
                               lambda i: (i, 0, 0, 0)),
        scratch_shapes=scratch_shapes,
        compiler_params=pltpu.CompilerParams(
            dimension_semantics=("parallel",)),
        cost_estimate=pl.CostEstimate(flops=flops, transcendentals=0,
                                      bytes_accessed=bytes_accessed),
    )(*operands)

    return jnp.transpose(out_nhwc, (0, 3, 1, 2))   # NHWC -> NCHW (C==1: free)


# ----------------------------------------------------------------------------
# Parameter init + pure-JAX reference (mirrors the PyTorch NCHW semantics)
# ----------------------------------------------------------------------------
def init_params(key, input_shape=(3, 16, 16), hidden_dims=(8, 16, 32)):
    params = {"encoder": [], "head": None}
    c_in = input_shape[0]
    for hdim in hidden_dims:
        key, kw, kb = jax.random.split(key, 3)
        w = jax.random.normal(kw, (3, 3, c_in, hdim), jnp.float32) * 0.1
        b = jax.random.normal(kb, (hdim,), jnp.float32) * 0.01
        params["encoder"].append((w, b))
        c_in = hdim
    key, kw, kb = jax.random.split(key, 3)
    w = jax.random.normal(kw, (3, 3, c_in, 1), jnp.float32) * 0.1
    b = jax.random.normal(kb, (1,), jnp.float32) * 0.01
    params["head"] = (w, b)
    return params


def reference_forward(x_nchw, params, max_pools):
    def conv(x, w, b):
        w_oihw = jnp.transpose(w, (3, 2, 0, 1))
        y = lax.conv_general_dilated(
            x, w_oihw, window_strides=(1, 1), padding="SAME",
            dimension_numbers=("NCHW", "OIHW", "NCHW"))
        return y + b[None, :, None, None]

    def pool(x, p):
        return lax.reduce_window(x, -jnp.inf, lax.max,
                                 (1, 1, p, p), (1, 1, p, p), "VALID")

    for (w, b), p in zip(params["encoder"], max_pools):
        x_nchw = pool(jnp.maximum(conv(x_nchw, w, b), 0.0), p)
    w, b = params["head"]
    return conv(x_nchw, w, b)


if __name__ == "__main__":
    input_shape = (3, 16, 16)
    hidden_dims = (8, 16, 32)
    max_pools = (2, 2, 2)
    batch = 2

    key = jax.random.PRNGKey(0)
    key, kx = jax.random.split(key)
    x = jax.random.normal(kx, (batch, *input_shape), jnp.float32)
    params = init_params(key, input_shape, hidden_dims)

    fwd = jax.jit(patch_discriminator_forward,
                  static_argnames=("max_pools", "compute_dtype"))

    ref = jax.block_until_ready(reference_forward(x, params, max_pools))
    scale = float(jnp.max(jnp.abs(ref))) + 1e-6

    # float32 activation/weight path.
    out_f32 = jax.block_until_ready(
        fwd(x, params, max_pools=max_pools, compute_dtype=jnp.float32))
    assert out_f32.shape == (batch, 1, input_shape[1] // 8,
                             input_shape[2] // 8), out_f32.shape
    err = float(jnp.max(jnp.abs(out_f32 - ref)))
    assert err <= 0.05 * scale + 1e-3, (err, scale)

    # bf16 activations/weights, fp32 accumulation + epilogue.
    out_bf16 = jax.block_until_ready(
        fwd(x, params, max_pools=max_pools, compute_dtype=jnp.bfloat16))
    assert out_bf16.shape == out_f32.shape
    err = float(jnp.max(jnp.abs(out_bf16 - ref)))
    assert err <= 0.05 * scale + 1e-2, (err, scale)

    print("KERNEL_OK")
</pallas_src>

<mosaic_0001>
module attributes {stable_mosaic.version = 11 : i64} {
  func.func @_fused_forward_kernel(%arg0: i32, %arg1: memref<1x342x8xf32, #tpu.memory_space<vmem>>, %arg2: memref<9x8x8xf32, #tpu.memory_space<vmem>>, %arg3: memref<1x8xf32, #tpu.memory_space<vmem>>, %arg4: memref<9x8x16xf32, #tpu.memory_space<vmem>>, %arg5: memref<1x16xf32, #tpu.memory_space<vmem>>, %arg6: memref<9x16x32xf32, #tpu.memory_space<vmem>>, %arg7: memref<1x32xf32, #tpu.memory_space<vmem>>, %arg8: memref<9x32x8xf32, #tpu.memory_space<vmem>>, %arg9: memref<1x8xf32, #tpu.memory_space<vmem>>, %arg10: memref<1x2x2x1xf32, #tpu.memory_space<vmem>>, %arg11: memref<288x8xf32, #tpu.memory_space<vmem>>, %arg12: memref<110x8xf32, #tpu.memory_space<vmem>>, %arg13: memref<80x16xf32, #tpu.memory_space<vmem>>, %arg14: memref<42x16xf32, #tpu.memory_space<vmem>>, %arg15: memref<24x32xf32, #tpu.memory_space<vmem>>, %arg16: memref<20x32xf32, #tpu.memory_space<vmem>>, %arg17: memref<8x8xf32, #tpu.memory_space<vmem>>) attributes {dimension_semantics = [#tpu.dimension_semantics<parallel>], iteration_bounds = array<i64: 2>, scalar_prefetch = 0 : i64, scratch_operands = 7 : i64, tpu.core_type = #tpu.core_type<tc>, window_params = [{transform_indices = @transform_0, window_bounds = array<i64: 1, 342, 8>}, {pipeline_mode = #tpu.pipeline_mode<synchronous>, transform_indices = @transform_1, window_bounds = array<i64: 9, 8, 8>}, {pipeline_mode = #tpu.pipeline_mode<synchronous>, transform_indices = @transform_2, window_bounds = array<i64: 1, 8>}, {pipeline_mode = #tpu.pipeline_mode<synchronous>, transform_indices = @transform_3, window_bounds = array<i64: 9, 8, 16>}, {pipeline_mode = #tpu.pipeline_mode<synchronous>, transform_indices = @transform_4, window_bounds = array<i64: 1, 16>}, {pipeline_mode = #tpu.pipeline_mode<synchronous>, transform_indices = @transform_5, window_bounds = array<i64: 9, 16, 32>}, {pipeline_mode = #tpu.pipeline_mode<synchronous>, transform_indices = @transform_6, window_bounds = array<i64: 1, 32>}, {pipeline_mode = #tpu.pipeline_mode<synchronous>, transform_indices = @transform_7, window_bounds = array<i64: 9, 32, 8>}, {pipeline_mode = #tpu.pipeline_mode<synchronous>, transform_indices = @transform_8, window_bounds = array<i64: 1, 8>}, {transform_indices = @transform_9, window_bounds = array<i64: 1, 2, 2, 1>}]} {
    %c0 = arith.constant 0 : index
    %c0_0 = arith.constant 0 : index
    %c0_1 = arith.constant 0 : index
    %0 = vector.load %arg1[%c0, %c0_0, %c0_1] : memref<1x342x8xf32, #tpu.memory_space<vmem>>, vector<1x128x8xf32>
    %1 = vector.shape_cast %0 : vector<1x128x8xf32> to vector<128x8xf32>
    %c0_2 = arith.constant 0 : index
    %c0_3 = arith.constant 0 : index
    %c0_4 = arith.constant 0 : index
    %2 = vector.load %arg2[%c0_2, %c0_3, %c0_4] : memref<9x8x8xf32, #tpu.memory_space<vmem>>, vector<1x8x8xf32>
    %3 = vector.shape_cast %2 : vector<1x8x8xf32> to vector<8x8xf32>
    %cst = arith.constant dense<0.000000e+00> : vector<128x8xf32>
    %4 = tpu.matmul %1, %3, %cst {dimension_numbers = #tpu.dot_dimension_numbers<[1], [0], [0], [1], [0, 0, 1, 1], [], []>} : vector<128x8xf32>, vector<8x8xf32>, vector<128x8xf32> -> vector<128x8xf32>
    %c0_5 = arith.constant 0 : index
    %c1 = arith.constant 1 : index
    %c0_6 = arith.constant 0 : index
    %5 = vector.load %arg1[%c0_5, %c1, %c0_6] : memref<1x342x8xf32, #tpu.memory_space<vmem>>, vector<1x128x8xf32>
    %6 = vector.shape_cast %5 : vector<1x128x8xf32> to vector<128x8xf32>
    %c1_7 = arith.constant 1 : index
    %c0_8 = arith.constant 0 : index
    %c0_9 = arith.constant 0 : index
    %7 = vector.load %arg2[%c1_7, %c0_8, %c0_9] : memref<9x8x8xf32, #tpu.memory_space<vmem>>, vector<1x8x8xf32>
    %8 = vector.shape_cast %7 : vector<1x8x8xf32> to vector<8x8xf32>
    %cst_10 = arith.constant dense<0.000000e+00> : vector<128x8xf32>
    %9 = tpu.matmul %6, %8, %cst_10 {dimension_numbers = #tpu.dot_dimension_numbers<[1], [0], [0], [1], [0, 0, 1, 1], [], []>} : vector<128x8xf32>, vector<8x8xf32>, vector<128x8xf32> -> vector<128x8xf32>
    %10 = arith.addf %4, %9 : vector<128x8xf32>
    %c0_11 = arith.constant 0 : index
    %c2 = arith.constant 2 : index
    %c0_12 = arith.constant 0 : index
    %11 = vector.load %arg1[%c0_11, %c2, %c0_12] : memref<1x342x8xf32, #tpu.memory_space<vmem>>, vector<1x128x8xf32>
    %12 = vector.shape_cast %11 : vector<1x128x8xf32> to vector<128x8xf32>
    %c2_13 = arith.constant 2 : index
    %c0_14 = arith.constant 0 : index
    %c0_15 = arith.constant 0 : index
    %13 = vector.load %arg2[%c2_13, %c0_14, %c0_15] : memref<9x8x8xf32, #tpu.memory_space<vmem>>, vector<1x8x8xf32>
    %14 = vector.shape_cast %13 : vector<1x8x8xf32> to vector<8x8xf32>
    %cst_16 = arith.constant dense<0.000000e+00> : vector<128x8xf32>
    %15 = tpu.matmul %12, %14, %cst_16 {dimension_numbers = #tpu.dot_dimension_numbers<[1], [0], [0], [1], [0, 0, 1, 1], [], []>} : vector<128x8xf32>, vector<8x8xf32>, vector<128x8xf32> -> vector<128x8xf32>
    %16 = arith.addf %10, %15 : vector<128x8xf32>
    %c0_17 = arith.constant 0 : index
    %c18 = arith.constant 18 : index
    %c0_18 = arith.constant 0 : index
    %17 = vector.load %arg1[%c0_17, %c18, %c0_18] : memref<1x342x8xf32, #tpu.memory_space<vmem>>, vector<1x128x8xf32>
    %18 = vector.shape_cast %17 : vector<1x128x8xf32> to vector<128x8xf32>
    %c3 = arith.constant 3 : index
    %c0_19 = arith.constant 0 : index
    %c0_20 = arith.constant 0 : index
    %19 = vector.load %arg2[%c3, %c0_19, %c0_20] : memref<9x8x8xf32, #tpu.memory_space<vmem>>, vector<1x8x8xf32>
    %20 = vector.shape_cast %19 : vector<1x8x8xf32> to vector<8x8xf32>
    %cst_21 = arith.constant dense<0.000000e+00> : vector<128x8xf32>
    %21 = tpu.matmul %18, %20, %cst_21 {dimension_numbers = #tpu.dot_dimension_numbers<[1], [0], [0], [1], [0, 0, 1, 1], [], []>} : vector<128x8xf32>, vector<8x8xf32>, vector<128x8xf32> -> vector<128x8xf32>
    %22 = arith.addf %16, %21 : vector<128x8xf32>
    %c0_22 = arith.constant 0 : index
    %c19 = arith.constant 19 : index
    %c0_23 = arith.constant 0 : index
    %23 = vector.load %arg1[%c0_22, %c19, %c0_23] : memref<1x342x8xf32, #tpu.memory_space<vmem>>, vector<1x128x8xf32>
    %24 = vector.shape_cast %23 : vector<1x128x8xf32> to vector<128x8xf32>
    %c4 = arith.constant 4 : index
    %c0_24 = arith.constant 0 : index
    %c0_25 = arith.constant 0 : index
    %25 = vector.load %arg2[%c4, %c0_24, %c0_25] : memref<9x8x8xf32, #tpu.memory_space<vmem>>, vector<1x8x8xf32>
    %26 = vector.shape_cast %25 : vector<1x8x8xf32> to vector<8x8xf32>
    %cst_26 = arith.constant dense<0.000000e+00> : vector<128x8xf32>
    %27 = tpu.matmul %24, %26, %cst_26 {dimension_numbers = #tpu.dot_dimension_numbers<[1], [0], [0], [1], [0, 0, 1, 1], [], []>} : vector<128x8xf32>, vector<8x8xf32>, vector<128x8xf32> -> vector<128x8xf32>
    %28 = arith.addf %22, %27 : vector<128x8xf32>
    %c0_27 = arith.constant 0 : index
    %c20 = arith.constant 20 : index
    %c0_28 = arith.constant 0 : index
    %29 = vector.load %arg1[%c0_27, %c20, %c0_28] : memref<1x342x8xf32, #tpu.memory_space<vmem>>, vector<1x128x8xf32>
    %30 = vector.shape_cast %29 : vector<1x128x8xf32> to vector<128x8xf32>
    %c5 = arith.constant 5 : index
    %c0_29 = arith.constant 0 : index
    %c0_30 = arith.constant 0 : index
    %31 = vector.load %arg2[%c5, %c0_29, %c0_30] : memref<9x8x8xf32, #tpu.memory_space<vmem>>, vector<1x8x8xf32>
    %32 = vector.shape_cast %31 : vector<1x8x8xf32> to vector<8x8xf32>
    %cst_31 = arith.constant dense<0.000000e+00> : vector<128x8xf32>
    %33 = tpu.matmul %30, %32, %cst_31 {dimension_numbers = #tpu.dot_dimension_numbers<[1], [0], [0], [1], [0, 0, 1, 1], [], []>} : vector<128x8xf32>, vector<8x8xf32>, vector<128x8xf32> -> vector<128x8xf32>
    %34 = arith.addf %28, %33 : vector<128x8xf32>
    %c0_32 = arith.constant 0 : index
    %c36 = arith.constant 36 : index
    %c0_33 = arith.constant 0 : index
    %35 = vector.load %arg1[%c0_32, %c36, %c0_33] : memref<1x342x8xf32, #tpu.memory_space<vmem>>, vector<1x128x8xf32>
    %36 = vector.shape_cast %35 : vector<1x128x8xf32> to vector<128x8xf32>
    %c6 = arith.constant 6 : index
    %c0_34 = arith.constant 0 : index
    %c0_35 = arith.constant 0 : index
    %37 = vector.load %arg2[%c6, %c0_34, %c0_35] : memref<9x8x8xf32, #tpu.memory_space<vmem>>, vector<1x8x8xf32>
    %38 = vector.shape_cast %37 : vector<1x8x8xf32> to vector<8x8xf32>
    %cst_36 = arith.constant dense<0.000000e+00> : vector<128x8xf32>
    %39 = tpu.matmul %36, %38, %cst_36 {dimension_numbers = #tpu.dot_dimension_numbers<[1], [0], [0], [1], [0, 0, 1, 1], [], []>} : vector<128x8xf32>, vector<8x8xf32>, vector<128x8xf32> -> vector<128x8xf32>
    %40 = arith.addf %34, %39 : vector<128x8xf32>
    %c0_37 = arith.constant 0 : index
    %c37 = arith.constant 37 : index
    %c0_38 = arith.constant 0 : index
    %41 = vector.load %arg1[%c0_37, %c37, %c0_38] : memref<1x342x8xf32, #tpu.memory_space<vmem>>, vector<1x128x8xf32>
    %42 = vector.shape_cast %41 : vector<1x128x8xf32> to vector<128x8xf32>
    %c7 = arith.constant 7 : index
    %c0_39 = arith.constant 0 : index
    %c0_40 = arith.constant 0 : index
    %43 = vector.load %arg2[%c7, %c0_39, %c0_40] : memref<9x8x8xf32, #tpu.memory_space<vmem>>, vector<1x8x8xf32>
    %44 = vector.shape_cast %43 : vector<1x8x8xf32> to vector<8x8xf32>
    %cst_41 = arith.constant dense<0.000000e+00> : vector<128x8xf32>
    %45 = tpu.matmul %42, %44, %cst_41 {dimension_numbers = #tpu.dot_dimension_numbers<[1], [0], [0], [1], [0, 0, 1, 1], [], []>} : vector<128x8xf32>, vector<8x8xf32>, vector<128x8xf32> -> vector<128x8xf32>
    %46 = arith.addf %40, %45 : vector<128x8xf32>
    %c0_42 = arith.constant 0 : index
    %c38 = arith.constant 38 : index
    %c0_43 = arith.constant 0 : index
    %47 = vector.load %arg1[%c0_42, %c38, %c0_43] : memref<1x342x8xf32, #tpu.memory_space<vmem>>, vector<1x128x8xf32>
    %48 = vector.shape_cast %47 : vector<1x128x8xf32> to vector<128x8xf32>
    %c8 = arith.constant 8 : index
    %c0_44 = arith.constant 0 : index
    %c0_45 = arith.constant 0 : index
    %49 = vector.load %arg2[%c8, %c0_44, %c0_45] : memref<9x8x8xf32, #tpu.memory_space<vmem>>, vector<1x8x8xf32>
    %50 = vector.shape_cast %49 : vector<1x8x8xf32> to vector<8x8xf32>
    %cst_46 = arith.constant dense<0.000000e+00> : vector<128x8xf32>
    %51 = tpu.matmul %48, %50, %cst_46 {dimension_numbers = #tpu.dot_dimension_numbers<[1], [0], [0], [1], [0, 0, 1, 1], [], []>} : vector<128x8xf32>, vector<8x8xf32>, vector<128x8xf32> -> vector<128x8xf32>
    %52 = arith.addf %46, %51 : vector<128x8xf32>
    %c0_47 = arith.constant 0 : index
    %c0_48 = arith.constant 0 : index
    %53 = vector.load %arg3[%c0_47, %c0_48] : memref<1x8xf32, #tpu.memory_space<vmem>>, vector<1x8xf32>
    %54 = vector.broadcast %53 : vector<1x8xf32> to vector<128x8xf32>
    %55 = arith.addf %52, %54 : vector<128x8xf32>
    %cst_49 = arith.constant 0.000000e+00 : f32
    %56 = vector.broadcast %cst_49 : f32 to vector<128x8xf32>
    %57 = arith.maximumf %55, %56 : vector<128x8xf32>
    %c0_50 = arith.constant 0 : index
    %c0_51 = arith.constant 0 : index
    %58 = vector.load %arg11[%c0_50, %c0_51] : memref<288x8xf32, #tpu.memory_space<vmem>>, vector<128x8xf32>
    tpu.vector_store %arg11[%c0_50, %c0_51], %57 {strides = array<i32>} : memref<288x8xf32, #tpu.memory_space<vmem>>, vector<128x8xf32>,
    %c0_52 = arith.constant 0 : index
    %c128 = arith.constant 128 : index
    %c0_53 = arith.constant 0 : index
    %59 = vector.load %arg1[%c0_52, %c128, %c0_53] : memref<1x342x8xf32, #tpu.memory_space<vmem>>, vector<1x128x8xf32>
    %60 = vector.shape_cast %59 : vector<1x128x8xf32> to vector<128x8xf32>
    %c0_54 = arith.constant 0 : index
    %c0_55 = arith.constant 0 : index
    %c0_56 = arith.constant 0 : index
    %61 = vector.load %arg2[%c0_54, %c0_55, %c0_56] : memref<9x8x8xf32, #tpu.memory_space<vmem>>, vector<1x8x8xf32>
    %62 = vector.shape_cast %61 : vector<1x8x8xf32> to vector<8x8xf32>
    %cst_57 = arith.constant dense<0.000000e+00> : vector<128x8xf32>
    %63 = tpu.matmul %60, %62, %cst_57 {dimension_numbers = #tpu.dot_dimension_numbers<[1], [0], [0], [1], [0, 0, 1, 1], [], []>} : vector<128x8xf32>, vector<8x8xf32>, vector<128x8xf32> -> vector<128x8xf32>
    %c0_58 = arith.constant 0 : index
    %c129 = arith.constant 129 : index
    %c0_59 = arith.constant 0 : index
    %64 = vector.load %arg1[%c0_58, %c129, %c0_59] : memref<1x342x8xf32, #tpu.memory_space<vmem>>, vector<1x128x8xf32>
    %65 = vector.shape_cast %64 : vector<1x128x8xf32> to vector<128x8xf32>
    %c1_60 = arith.constant 1 : index
    %c0_61 = arith.constant 0 : index
    %c0_62 = arith.constant 0 : index
    %66 = vector.load %arg2[%c1_60, %c0_61, %c0_62] : memref<9x8x8xf32, #tpu.memory_space<vmem>>, vector<1x8x8xf32>
    %67 = vector.shape_cast %66 : vector<1x8x8xf32> to vector<8x8xf32>
    %cst_63 = arith.constant dense<0.000000e+00> : vector<128x8xf32>
    %68 = tpu.matmul %65, %67, %cst_63 {dimension_numbers = #tpu.dot_dimension_numbers<[1], [0], [0], [1], [0, 0, 1, 1], [], []>} : vector<128x8xf32>, vector<8x8xf32>, vector<128x8xf32> -> vector<128x8xf32>
    %69 = arith.addf %63, %68 : vector<128x8xf32>
    %c0_64 = arith.constant 0 : index
    %c130 = arith.constant 130 : index
    %c0_65 = arith.constant 0 : index
    %70 = vector.load %arg1[%c0_64, %c130, %c0_65] : memref<1x342x8xf32, #tpu.memory_space<vmem>>, vector<1x128x8xf32>
    %71 = vector.shape_cast %70 : vector<1x128x8xf32> to vector<128x8xf32>
    %c2_66 = arith.constant 2 : index
    %c0_67 = arith.constant 0 : index
    %c0_68 = arith.constant 0 : index
    %72 = vector.load %arg2[%c2_66, %c0_67, %c0_68] : memref<9x8x8xf32, #tpu.memory_space<vmem>>, vector<1x8x8xf32>
    %73 = vector.shape_cast %72 : vector<1x8x8xf32> to vector<8x8xf32>
    %cst_69 = arith.constant dense<0.000000e+00> : vector<128x8xf32>
    %74 = tpu.matmul %71, %73, %cst_69 {dimension_numbers = #tpu.dot_dimension_numbers<[1], [0], [0], [1], [0, 0, 1, 1], [], []>} : vector<128x8xf32>, vector<8x8xf32>, vector<128x8xf32> -> vector<128x8xf32>
    %75 = arith.addf %69, %74 : vector<128x8xf32>
    %c0_70 = arith.constant 0 : index
    %c146 = arith.constant 146 : index
    %c0_71 = arith.constant 0 : index
    %76 = vector.load %arg1[%c0_70, %c146, %c0_71] : memref<1x342x8xf32, #tpu.memory_space<vmem>>, vector<1x128x8xf32>
    %77 = vector.shape_cast %76 : vector<1x128x8xf32> to vector<128x8xf32>
    %c3_72 = arith.constant 3 : index
    %c0_73 = arith.constant 0 : index
    %c0_74 = arith.constant 0 : index
    %78 = vector.load %arg2[%c3_72, %c0_73, %c0_74] : memref<9x8x8xf32, #tpu.memory_space<vmem>>, vector<1x8x8xf32>
    %79 = vector.shape_cast %78 : vector<1x8x8xf32> to vector<8x8xf32>
    %cst_75 = arith.constant dense<0.000000e+00> : vector<128x8xf32>
    %80 = tpu.matmul %77, %79, %cst_75 {dimension_numbers = #tpu.dot_dimension_numbers<[1], [0], [0], [1], [0, 0, 1, 1], [], []>} : vector<128x8xf32>, vector<8x8xf32>, vector<128x8xf32> -> vector<128x8xf32>
    %81 = arith.addf %75, %80 : vector<128x8xf32>
    %c0_76 = arith.constant 0 : index
    %c147 = arith.constant 147 : index
    %c0_77 = arith.constant 0 : index
    %82 = vector.load %arg1[%c0_76, %c147, %c0_77] : memref<1x342x8xf32, #tpu.memory_space<vmem>>, vector<1x128x8xf32>
    %83 = vector.shape_cast %82 : vector<1x128x8xf32> to vector<128x8xf32>
    %c4_78 = arith.constant 4 : index
    %c0_79 = arith.constant 0 : index
    %c0_80 = arith.constant 0 : index
    %84 = vector.load %arg2[%c4_78, %c0_79, %c0_80] : memref<9x8x8xf32, #tpu.memory_space<vmem>>, vector<1x8x8xf32>
    %85 = vector.shape_cast %84 : vector<1x8x8xf32> to vector<8x8xf32>
    %cst_81 = arith.constant dense<0.000000e+00> : vector<128x8xf32>
    %86 = tpu.matmul %83, %85, %cst_81 {dimension_numbers = #tpu.dot_dimension_numbers<[1], [0], [0], [1], [0, 0, 1, 1], [], []>} : vector<128x8xf32>, vector<8x8xf32>, vector<128x8xf32> -> vector<128x8xf32>
    %87 = arith.addf %81, %86 : vector<128x8xf32>
    %c0_82 = arith.constant 0 : index
    %c148 = arith.constant 148 : index
    %c0_83 = arith.constant 0 : index
    %88 = vector.load %arg1[%c0_82, %c148, %c0_83] : memref<1x342x8xf32, #tpu.memory_space<vmem>>, vector<1x128x8xf32>
    %89 = vector.shape_cast %88 : vector<1x128x8xf32> to vector<128x8xf32>
    %c5_84 = arith.constant 5 : index
    %c0_85 = arith.constant 0 : index
    %c0_86 = arith.constant 0 : index
    %90 = vector.load %arg2[%c5_84, %c0_85, %c0_86] : memref<9x8x8xf32, #tpu.memory_space<vmem>>, vector<1x8x8xf32>
    %91 = vector.shape_cast %90 : vector<1x8x8xf32> to vector<8x8xf32>
    %cst_87 = arith.constant dense<0.000000e+00> : vector<128x8xf32>
    %92 = tpu.matmul %89, %91, %cst_87 {dimension_numbers = #tpu.dot_dimension_numbers<[1], [0], [0], [1], [0, 0, 1, 1], [], []>} : vector<128x8xf32>, vector<8x8xf32>, vector<128x8xf32> -> vector<128x8xf32>
    %93 = arith.addf %87, %92 : vector<128x8xf32>
    %c0_88 = arith.constant 0 : index
    %c164 = arith.constant 164 : index
    %c0_89 = arith.constant 0 : index
    %94 = vector.load %arg1[%c0_88, %c164, %c0_89] : memref<1x342x8xf32, #tpu.memory_space<vmem>>, vector<1x128x8xf32>
    %95 = vector.shape_cast %94 : vector<1x128x8xf32> to vector<128x8xf32>
    %c6_90 = arith.constant 6 : index
    %c0_91 = arith.constant 0 : index
    %c0_92 = arith.constant 0 : index
    %96 = vector.load %arg2[%c6_90, %c0_91, %c0_92] : memref<9x8x8xf32, #tpu.memory_space<vmem>>, vector<1x8x8xf32>
    %97 = vector.shape_cast %96 : vector<1x8x8xf32> to vector<8x8xf32>
    %cst_93 = arith.constant dense<0.000000e+00> : vector<128x8xf32>
    %98 = tpu.matmul %95, %97, %cst_93 {dimension_numbers = #tpu.dot_dimension_numbers<[1], [0], [0], [1], [0, 0, 1, 1], [], []>} : vector<128x8xf32>, vector<8x8xf32>, vector<128x8xf32> -> vector<128x8xf32>
    %99 = arith.addf %93, %98 : vector<128x8xf32>
    %c0_94 = arith.constant 0 : index
    %c165 = arith.constant 165 : index
    %c0_95 = arith.constant 0 : index
    %100 = vector.load %arg1[%c0_94, %c165, %c0_95] : memref<1x342x8xf32, #tpu.memory_space<vmem>>, vector<1x128x8xf32>
    %101 = vector.shape_cast %100 : vector<1x128x8xf32> to vector<128x8xf32>
    %c7_96 = arith.constant 7 : index
    %c0_97 = arith.constant 0 : index
    %c0_98 = arith.constant 0 : index
    %102 = vector.load %arg2[%c7_96, %c0_97, %c0_98] : memref<9x8x8xf32, #tpu.memory_space<vmem>>, vector<1x8x8xf32>
    %103 = vector.shape_cast %102 : vector<1x8x8xf32> to vector<8x8xf32>
    %cst_99 = arith.constant dense<0.000000e+00> : vector<128x8xf32>
    %104 = tpu.matmul %101, %103, %cst_99 {dimension_numbers = #tpu.dot_dimension_numbers<[1], [0], [0], [1], [0, 0, 1, 1], [], []>} : vector<128x8xf32>, vector<8x8xf32>, vector<128x8xf32> -> vector<128x8xf32>
    %105 = arith.addf %99, %104 : vector<128x8xf32>
    %c0_100 = arith.constant 0 : index
    %c166 = arith.constant 166 : index
    %c0_101 = arith.constant 0 : index
    %106 = vector.load %arg1[%c0_100, %c166, %c0_101] : memref<1x342x8xf32, #tpu.memory_space<vmem>>, vector<1x128x8xf32>
    %107 = vector.shape_cast %106 : vector<1x128x8xf32> to vector<128x8xf32>
    %c8_102 = arith.constant 8 : index
    %c0_103 = arith.constant 0 : index
    %c0_104 = arith.constant 0 : index
    %108 = vector.load %arg2[%c8_102, %c0_103, %c0_104] : memref<9x8x8xf32, #tpu.memory_space<vmem>>, vector<1x8x8xf32>
    %109 = vector.shape_cast %108 : vector<1x8x8xf32> to vector<8x8xf32>
    %cst_105 = arith.constant dense<0.000000e+00> : vector<128x8xf32>
    %110 = tpu.matmul %107, %109, %cst_105 {dimension_numbers = #tpu.dot_dimension_numbers<[1], [0], [0], [1], [0, 0, 1, 1], [], []>} : vector<128x8xf32>, vector<8x8xf32>, vector<128x8xf32> -> vector<128x8xf32>
    %111 = arith.addf %105, %110 : vector<128x8xf32>
    %c0_106 = arith.constant 0 : index
    %c0_107 = arith.constant 0 : index
    %112 = vector.load %arg3[%c0_106, %c0_107] : memref<1x8xf32, #tpu.memory_space<vmem>>, vector<1x8xf32>
    %113 = vector.broadcast %112 : vector<1x8xf32> to vector<128x8xf32>
    %114 = arith.addf %111, %113 : vector<128x8xf32>
    %cst_108 = arith.constant 0.000000e+00 : f32
    %115 = vector.broadcast %cst_108 : f32 to vector<128x8xf32>
    %116 = arith.maximumf %114, %115 : vector<128x8xf32>
    %c128_109 = arith.constant 128 : index
    %c0_110 = arith.constant 0 : index
    %117 = vector.load %arg11[%c128_109, %c0_110] : memref<288x8xf32, #tpu.memory_space<vmem>>, vector<128x8xf32>
    tpu.vector_store %arg11[%c128_109, %c0_110], %116 {strides = array<i32>} : memref<288x8xf32, #tpu.memory_space<vmem>>, vector<128x8xf32>,
    %c0_111 = arith.constant 0 : index
    %c256 = arith.constant 256 : index
    %c0_112 = arith.constant 0 : index
    %118 = vector.load %arg1[%c0_111, %c256, %c0_112] : memref<1x342x8xf32, #tpu.memory_space<vmem>>, vector<1x32x8xf32>
    %119 = vector.shape_cast %118 : vector<1x32x8xf32> to vector<32x8xf32>
    %c0_113 = arith.constant 0 : index
    %c0_114 = arith.constant 0 : index
    %c0_115 = arith.constant 0 : index
    %120 = vector.load %arg2[%c0_113, %c0_114, %c0_115] : memref<9x8x8xf32, #tpu.memory_space<vmem>>, vector<1x8x8xf32>
    %121 = vector.shape_cast %120 : vector<1x8x8xf32> to vector<8x8xf32>
    %cst_116 = arith.constant dense<0.000000e+00> : vector<32x8xf32>
    %122 = tpu.matmul %119, %121, %cst_116 {dimension_numbers = #tpu.dot_dimension_numbers<[1], [0], [0], [1], [0, 0, 1, 1], [], []>} : vector<32x8xf32>, vector<8x8xf32>, vector<32x8xf32> -> vector<32x8xf32>
    %c0_117 = arith.constant 0 : index
    %c257 = arith.constant 257 : index
    %c0_118 = arith.constant 0 : index
    %123 = vector.load %arg1[%c0_117, %c257, %c0_118] : memref<1x342x8xf32, #tpu.memory_space<vmem>>, vector<1x32x8xf32>
    %124 = vector.shape_cast %123 : vector<1x32x8xf32> to vector<32x8xf32>
    %c1_119 = arith.constant 1 : index
    %c0_120 = arith.constant 0 : index
    %c0_121 = arith.constant 0 : index
    %125 = vector.load %arg2[%c1_119, %c0_120, %c0_121] : memref<9x8x8xf32, #tpu.memory_space<vmem>>, vector<1x8x8xf32>
    %126 = vector.shape_cast %125 : vector<1x8x8xf32> to vector<8x8xf32>
    %cst_122 = arith.constant dense<0.000000e+00> : vector<32x8xf32>
    %127 = tpu.matmul %124, %126, %cst_122 {dimension_numbers = #tpu.dot_dimension_numbers<[1], [0], [0], [1], [0, 0, 1, 1], [], []>} : vector<32x8xf32>, vector<8x8xf32>, vector<32x8xf32> -> vector<32x8xf32>
    %128 = arith.addf %122, %127 : vector<32x8xf32>
    %c0_123 = arith.constant 0 : index
    %c258 = arith.constant 258 : index
    %c0_124 = arith.constant 0 : index
    %129 = vector.load %arg1[%c0_123, %c258, %c0_124] : memref<1x342x8xf32, #tpu.memory_space<vmem>>, vector<1x32x8xf32>
    %130 = vector.shape_cast %129 : vector<1x32x8xf32> to vector<32x8xf32>
    %c2_125 = arith.constant 2 : index
    %c0_126 = arith.constant 0 : index
    %c0_127 = arith.constant 0 : index
    %131 = vector.load %arg2[%c2_125, %c0_126, %c0_127] : memref<9x8x8xf32, #tpu.memory_space<vmem>>, vector<1x8x8xf32>
    %132 = vector.shape_cast %131 : vector<1x8x8xf32> to vector<8x8xf32>
    %cst_128 = arith.constant dense<0.000000e+00> : vector<32x8xf32>
    %133 = tpu.matmul %130, %132, %cst_128 {dimension_numbers = #tpu.dot_dimension_numbers<[1], [0], [0], [1], [0, 0, 1, 1], [], []>} : vector<32x8xf32>, vector<8x8xf32>, vector<32x8xf32> -> vector<32x8xf32>
    %134 = arith.addf %128, %133 : vector<32x8xf32>
    %c0_129 = arith.constant 0 : index
    %c274 = arith.constant 274 : index
    %c0_130 = arith.constant 0 : index
    %135 = vector.load %arg1[%c0_129, %c274, %c0_130] : memref<1x342x8xf32, #tpu.memory_space<vmem>>, vector<1x32x8xf32>
    %136 = vector.shape_cast %135 : vector<1x32x8xf32> to vector<32x8xf32>
    %c3_131 = arith.constant 3 : index
    %c0_132 = arith.constant 0 : index
    %c0_133 = arith.constant 0 : index
    %137 = vector.load %arg2[%c3_131, %c0_132, %c0_133] : memref<9x8x8xf32, #tpu.memory_space<vmem>>, vector<1x8x8xf32>
    %138 = vector.shape_cast %137 : vector<1x8x8xf32> to vector<8x8xf32>
    %cst_134 = arith.constant dense<0.000000e+00> : vector<32x8xf32>
    %139 = tpu.matmul %136, %138, %cst_134 {dimension_numbers = #tpu.dot_dimension_numbers<[1], [0], [0], [1], [0, 0, 1, 1], [], []>} : vector<32x8xf32>, vector<8x8xf32>, vector<32x8xf32> -> vector<32x8xf32>
    %140 = arith.addf %134, %139 : vector<32x8xf32>
    %c0_135 = arith.constant 0 : index
    %c275 = arith.constant 275 : index
    %c0_136 = arith.constant 0 : index
    %141 = vector.load %arg1[%c0_135, %c275, %c0_136] : memref<1x342x8xf32, #tpu.memory_space<vmem>>, vector<1x32x8xf32>
    %142 = vector.shape_cast %141 : vector<1x32x8xf32> to vector<32x8xf32>
    %c4_137 = arith.constant 4 : index
    %c0_138 = arith.constant 0 : index
    %c0_139 = arith.constant 0 : index
    %143 = vector.load %arg2[%c4_137, %c0_138, %c0_139] : memref<9x8x8xf32, #tpu.memory_space<vmem>>, vector<1x8x8xf32>
    %144 = vector.shape_cast %143 : vector<1x8x8xf32> to vector<8x8xf32>
    %cst_140 = arith.constant dense<0.000000e+00> : vector<32x8xf32>
    %145 = tpu.matmul %142, %144, %cst_140 {dimension_numbers = #tpu.dot_dimension_numbers<[1], [0], [0], [1], [0, 0, 1, 1], [], []>} : vector<32x8xf32>, vector<8x8xf32>, vector<32x8xf32> -> vector<32x8xf32>
    %146 = arith.addf %140, %145 : vector<32x8xf32>
    %c0_141 = arith.constant 0 : index
    %c276 = arith.constant 276 : index
    %c0_142 = arith.constant 0 : index
    %147 = vector.load %arg1[%c0_141, %c276, %c0_142] : memref<1x342x8xf32, #tpu.memory_space<vmem>>, vector<1x32x8xf32>
    %148 = vector.shape_cast %147 : vector<1x32x8xf32> to vector<32x8xf32>
    %c5_143 = arith.constant 5 : index
    %c0_144 = arith.constant 0 : index
    %c0_145 = arith.constant 0 : index
    %149 = vector.load %arg2[%c5_143, %c0_144, %c0_145] : memref<9x8x8xf32, #tpu.memory_space<vmem>>, vector<1x8x8xf32>
    %150 = vector.shape_cast %149 : vector<1x8x8xf32> to vector<8x8xf32>
    %cst_146 = arith.constant dense<0.000000e+00> : vector<32x8xf32>
    %151 = tpu.matmul %148, %150, %cst_146 {dimension_numbers = #tpu.dot_dimension_numbers<[1], [0], [0], [1], [0, 0, 1, 1], [], []>} : vector<32x8xf32>, vector<8x8xf32>, vector<32x8xf32> -> vector<32x8xf32>
    %152 = arith.addf %146, %151 : vector<32x8xf32>
    %c0_147 = arith.constant 0 : index
    %c292 = arith.constant 292 : index
    %c0_148 = arith.constant 0 : index
    %153 = vector.load %arg1[%c0_147, %c292, %c0_148] : memref<1x342x8xf32, #tpu.memory_space<vmem>>, vector<1x32x8xf32>
    %154 = vector.shape_cast %153 : vector<1x32x8xf32> to vector<32x8xf32>
    %c6_149 = arith.constant 6 : index
    %c0_150 = arith.constant 0 : index
    %c0_151 = arith.constant 0 : index
    %155 = vector.load %arg2[%c6_149, %c0_150, %c0_151] : memref<9x8x8xf32, #tpu.memory_space<vmem>>, vector<1x8x8xf32>
    %156 = vector.shape_cast %155 : vector<1x8x8xf32> to vector<8x8xf32>
    %cst_152 = arith.constant dense<0.000000e+00> : vector<32x8xf32>
    %157 = tpu.matmul %154, %156, %cst_152 {dimension_numbers = #tpu.dot_dimension_numbers<[1], [0], [0], [1], [0, 0, 1, 1], [], []>} : vector<32x8xf32>, vector<8x8xf32>, vector<32x8xf32> -> vector<32x8xf32>
    %158 = arith.addf %152, %157 : vector<32x8xf32>
    %c0_153 = arith.constant 0 : index
    %c293 = arith.constant 293 : index
    %c0_154 = arith.constant 0 : index
    %159 = vector.load %arg1[%c0_153, %c293, %c0_154] : memref<1x342x8xf32, #tpu.memory_space<vmem>>, vector<1x32x8xf32>
    %160 = vector.shape_cast %159 : vector<1x32x8xf32> to vector<32x8xf32>
    %c7_155 = arith.constant 7 : index
    %c0_156 = arith.constant 0 : index
    %c0_157 = arith.constant 0 : index
    %161 = vector.load %arg2[%c7_155, %c0_156, %c0_157] : memref<9x8x8xf32, #tpu.memory_space<vmem>>, vector<1x8x8xf32>
    %162 = vector.shape_cast %161 : vector<1x8x8xf32> to vector<8x8xf32>
    %cst_158 = arith.constant dense<0.000000e+00> : vector<32x8xf32>
    %163 = tpu.matmul %160, %162, %cst_158 {dimension_numbers = #tpu.dot_dimension_numbers<[1], [0], [0], [1], [0, 0, 1, 1], [], []>} : vector<32x8xf32>, vector<8x8xf32>, vector<32x8xf32> -> vector<32x8xf32>
    %164 = arith.addf %158, %163 : vector<32x8xf32>
    %c0_159 = arith.constant 0 : index
    %c294 = arith.constant 294 : index
    %c0_160 = arith.constant 0 : index
    %165 = vector.load %arg1[%c0_159, %c294, %c0_160] : memref<1x342x8xf32, #tpu.memory_space<vmem>>, vector<1x32x8xf32>
    %166 = vector.shape_cast %165 : vector<1x32x8xf32> to vector<32x8xf32>
    %c8_161 = arith.constant 8 : index
    %c0_162 = arith.constant 0 : index
    %c0_163 = arith.constant 0 : index
    %167 = vector.load %arg2[%c8_161, %c0_162, %c0_163] : memref<9x8x8xf32, #tpu.memory_space<vmem>>, vector<1x8x8xf32>
    %168 = vector.shape_cast %167 : vector<1x8x8xf32> to vector<8x8xf32>
    %cst_164 = arith.constant dense<0.000000e+00> : vector<32x8xf32>
    %169 = tpu.matmul %166, %168, %cst_164 {dimension_numbers = #tpu.dot_dimension_numbers<[1], [0], [0], [1], [0, 0, 1, 1], [], []>} : vector<32x8xf32>, vector<8x8xf32>, vector<32x8xf32> -> vector<32x8xf32>
    %170 = arith.addf %164, %169 : vector<32x8xf32>
    %c0_165 = arith.constant 0 : index
    %c0_166 = arith.constant 0 : index
    %171 = vector.load %arg3[%c0_165, %c0_166] : memref<1x8xf32, #tpu.memory_space<vmem>>, vector<1x8xf32>
    %172 = vector.broadcast %171 : vector<1x8xf32> to vector<32x8xf32>
    %173 = arith.addf %170, %172 : vector<32x8xf32>
    %cst_167 = arith.constant 0.000000e+00 : f32
    %174 = vector.broadcast %cst_167 : f32 to vector<32x8xf32>
    %175 = arith.maximumf %173, %174 : vector<32x8xf32>
    %c256_168 = arith.constant 256 : index
    %c0_169 = arith.constant 0 : index
    %176 = vector.load %arg11[%c256_168, %c0_169] : memref<288x8xf32, #tpu.memory_space<vmem>>, vector<32x8xf32>
    tpu.vector_store %arg11[%c256_168, %c0_169], %175 {strides = array<i32>} : memref<288x8xf32, #tpu.memory_space<vmem>>, vector<32x8xf32>,
    %cst_170 = arith.constant 0.000000e+00 : f32
    %177 = vector.broadcast %cst_170 : f32 to vector<110x8xf32>
    %c0_171 = arith.constant 0 : index
    %c0_172 = arith.constant 0 : index
    %178 = vector.load %arg12[%c0_171, %c0_172] : memref<110x8xf32, #tpu.memory_space<vmem>>, vector<110x8xf32>
    tpu.vector_store %arg12[%c0_171, %c0_172], %177 {strides = array<i32>} : memref<110x8xf32, #tpu.memory_space<vmem>>, vector<110x8xf32>,
    %c0_173 = arith.constant 0 : index
    %c0_174 = arith.constant 0 : index
    %179 = tpu.strided_load %arg11[%c0_173, %c0_174] {strides = array<i32: 2, 1>} : memref<288x8xf32, #tpu.memory_space<vmem>>, vector<8x8xf32>
    %c1_175 = arith.constant 1 : index
    %c0_176 = arith.constant 0 : index
    %180 = tpu.strided_load %arg11[%c1_175, %c0_176] {strides = array<i32: 2, 1>} : memref<288x8xf32, #tpu.memory_space<vmem>>, vector<8x8xf32>
    %181 = arith.maximumf %179, %180 : vector<8x8xf32>
    %c18_177 = arith.constant 18 : index
    %c0_178 = arith.constant 0 : index
    %182 = tpu.strided_load %arg11[%c18_177, %c0_178] {strides = array<i32: 2, 1>} : memref<288x8xf32, #tpu.memory_space<vmem>>, vector<8x8xf32>
    %183 = arith.maximumf %181, %182 : vector<8x8xf32>
    %c19_179 = arith.constant 19 : index
    %c0_180 = arith.constant 0 : index
    %184 = tpu.strided_load %arg11[%c19_179, %c0_180] {strides = array<i32: 2, 1>} : memref<288x8xf32, #tpu.memory_space<vmem>>, vector<8x8xf32>
    %185 = arith.maximumf %183, %184 : vector<8x8xf32>
    %c11 = arith.constant 11 : index
    %c0_181 = arith.constant 0 : index
    %186 = vector.load %arg12[%c11, %c0_181] : memref<110x8xf32, #tpu.memory_space<vmem>>, vector<8x8xf32>
    tpu.vector_store %arg12[%c11, %c0_181], %185 {strides = array<i32>} : memref<110x8xf32, #tpu.memory_space<vmem>>, vector<8x8xf32>,
    %c36_182 = arith.constant 36 : index
    %c0_183 = arith.constant 0 : index
    %187 = tpu.strided_load %arg11[%c36_182, %c0_183] {strides = array<i32: 2, 1>} : memref<288x8xf32, #tpu.memory_space<vmem>>, vector<8x8xf32>
    %c37_184 = arith.constant 37 : index
    %c0_185 = arith.constant 0 : index
    %188 = tpu.strided_load %arg11[%c37_184, %c0_185] {strides = array<i32: 2, 1>} : memref<288x8xf32, #tpu.memory_space<vmem>>, vector<8x8xf32>
    %189 = arith.maximumf %187, %188 : vector<8x8xf32>
    %c54 = arith.constant 54 : index
    %c0_186 = arith.constant 0 : index
    %190 = tpu.strided_load %arg11[%c54, %c0_186] {strides = array<i32: 2, 1>} : memref<288x8xf32, #tpu.memory_space<vmem>>, vector<8x8xf32>
    %191 = arith.maximumf %189, %190 : vector<8x8xf32>
    %c55 = arith.constant 55 : index
    %c0_187 = arith.constant 0 : index
    %192 = tpu.strided_load %arg11[%c55, %c0_187] {strides = array<i32: 2, 1>} : memref<288x8xf32, #tpu.memory_space<vmem>>, vector<8x8xf32>
    %193 = arith.maximumf %191, %192 : vector<8x8xf32>
    %c21 = arith.constant 21 : index
    %c0_188 = arith.constant 0 : index
    %194 = vector.load %arg12[%c21, %c0_188] : memref<110x8xf32, #tpu.memory_space<vmem>>, vector<8x8xf32>
    tpu.vector_store %arg12[%c21, %c0_188], %193 {strides = array<i32>} : memref<110x8xf32, #tpu.memory_space<vmem>>, vector<8x8xf32>,
    %c72 = arith.constant 72 : index
    %c0_189 = arith.constant 0 : index
    %195 = tpu.strided_load %arg11[%c72, %c0_189] {strides = array<i32: 2, 1>} : memref<288x8xf32, #tpu.memory_space<vmem>>, vector<8x8xf32>
    %c73 = arith.constant 73 : index
    %c0_190 = arith.constant 0 : index
    %196 = tpu.strided_load %arg11[%c73, %c0_190] {strides = array<i32: 2, 1>} : memref<288x8xf32, #tpu.memory_space<vmem>>, vector<8x8xf32>
    %197 = arith.maximumf %195, %196 : vector<8x8xf32>
    %c90 = arith.constant 90 : index
    %c0_191 = arith.constant 0 : index
    %198 = tpu.strided_load %arg11[%c90, %c0_191] {strides = array<i32: 2, 1>} : memref<288x8xf32, #tpu.memory_space<vmem>>, vector<8x8xf32>
    %199 = arith.maximumf %197, %198 : vector<8x8xf32>
    %c91 = arith.constant 91 : index
    %c0_192 = arith.constant 0 : index
    %200 = tpu.strided_load %arg11[%c91, %c0_192] {strides = array<i32: 2, 1>} : memref<288x8xf32, #tpu.memory_space<vmem>>, vector<8x8xf32>
    %201 = arith.maximumf %199, %200 : vector<8x8xf32>
    %c31 = arith.constant 31 : index
    %c0_193 = arith.constant 0 : index
    %202 = vector.load %arg12[%c31, %c0_193] : memref<110x8xf32, #tpu.memory_space<vmem>>, vector<8x8xf32>
    tpu.vector_store %arg12[%c31, %c0_193], %201 {strides = array<i32>} : memref<110x8xf32, #tpu.memory_space<vmem>>, vector<8x8xf32>,
    %c108 = arith.constant 108 : index
    %c0_194 = arith.constant 0 : index
    %203 = tpu.strided_load %arg11[%c108, %c0_194] {strides = array<i32: 2, 1>} : memref<288x8xf32, #tpu.memory_space<vmem>>, vector<8x8xf32>
    %c109 = arith.constant 109 : index
    %c0_195 = arith.constant 0 : index
    %204 = tpu.strided_load %arg11[%c109, %c0_195] {strides = array<i32: 2, 1>} : memref<288x8xf32, #tpu.memory_space<vmem>>, vector<8x8xf32>
    %205 = arith.maximumf %203, %204 : vector<8x8xf32>
    %c126 = arith.constant 126 : index
    %c0_196 = arith.constant 0 : index
    %206 = tpu.strided_load %arg11[%c126, %c0_196] {strides = array<i32: 2, 1>} : memref<288x8xf32, #tpu.memory_space<vmem>>, vector<8x8xf32>
    %207 = arith.maximumf %205, %206 : vector<8x8xf32>
    %c127 = arith.constant 127 : index
    %c0_197 = arith.constant 0 : index
    %208 = tpu.strided_load %arg11[%c127, %c0_197] {strides = array<i32: 2, 1>} : memref<288x8xf32, #tpu.memory_space<vmem>>, vector<8x8xf32>
    %209 = arith.maximumf %207, %208 : vector<8x8xf32>
    %c41 = arith.constant 41 : index
    %c0_198 = arith.constant 0 : index
    %210 = vector.load %arg12[%c41, %c0_198] : memref<110x8xf32, #tpu.memory_space<vmem>>, vector<8x8xf32>
    tpu.vector_store %arg12[%c41, %c0_198], %209 {strides = array<i32>} : memref<110x8xf32, #tpu.memory_space<vmem>>, vector<8x8xf32>,
    %c144 = arith.constant 144 : index
    %c0_199 = arith.constant 0 : index
    %211 = tpu.strided_load %arg11[%c144, %c0_199] {strides = array<i32: 2, 1>} : memref<288x8xf32, #tpu.memory_space<vmem>>, vector<8x8xf32>
    %c145 = arith.constant 145 : index
    %c0_200 = arith.constant 0 : index
    %212 = tpu.strided_load %arg11[%c145, %c0_200] {strides = array<i32: 2, 1>} : memref<288x8xf32, #tpu.memory_space<vmem>>, vector<8x8xf32>
    %213 = arith.maximumf %211, %212 : vector<8x8xf32>
    %c162 = arith.constant 162 : index
    %c0_201 = arith.constant 0 : index
    %214 = tpu.strided_load %arg11[%c162, %c0_201] {strides = array<i32: 2, 1>} : memref<288x8xf32, #tpu.memory_space<vmem>>, vector<8x8xf32>
    %215 = arith.maximumf %213, %214 : vector<8x8xf32>
    %c163 = arith.constant 163 : index
    %c0_202 = arith.constant 0 : index
    %216 = tpu.strided_load %arg11[%c163, %c0_202] {strides = array<i32: 2, 1>} : memref<288x8xf32, #tpu.memory_space<vmem>>, vector<8x8xf32>
    %217 = arith.maximumf %215, %216 : vector<8x8xf32>
    %c51 = arith.constant 51 : index
    %c0_203 = arith.constant 0 : index
    %218 = vector.load %arg12[%c51, %c0_203] : memref<110x8xf32, #tpu.memory_space<vmem>>, vector<8x8xf32>
    tpu.vector_store %arg12[%c51, %c0_203], %217 {strides = array<i32>} : memref<110x8xf32, #tpu.memory_space<vmem>>, vector<8x8xf32>,
    %c180 = arith.constant 180 : index
    %c0_204 = arith.constant 0 : index
    %219 = tpu.strided_load %arg11[%c180, %c0_204] {strides = array<i32: 2, 1>} : memref<288x8xf32, #tpu.memory_space<vmem>>, vector<8x8xf32>
    %c181 = arith.constant 181 : index
    %c0_205 = arith.constant 0 : index
    %220 = tpu.strided_load %arg11[%c181, %c0_205] {strides = array<i32: 2, 1>} : memref<288x8xf32, #tpu.memory_space<vmem>>, vector<8x8xf32>
    %221 = arith.maximumf %219, %220 : vector<8x8xf32>
    %c198 = arith.constant 198 : index
    %c0_206 = arith.constant 0 : index
    %222 = tpu.strided_load %arg11[%c198, %c0_206] {strides = array<i32: 2, 1>} : memref<288x8xf32, #tpu.memory_space<vmem>>, vector<8x8xf32>
    %223 = arith.maximumf %221, %222 : vector<8x8xf32>
    %c199 = arith.constant 199 : index
    %c0_207 = arith.constant 0 : index
    %224 = tpu.strided_load %arg11[%c199, %c0_207] {strides = array<i32: 2, 1>} : memref<288x8xf32, #tpu.memory_space<vmem>>, vector<8x8xf32>
    %225 = arith.maximumf %223, %224 : vector<8x8xf32>
    %c61 = arith.constant 61 : index
    %c0_208 = arith.constant 0 : index
    %226 = vector.load %arg12[%c61, %c0_208] : memref<110x8xf32, #tpu.memory_space<vmem>>, vector<8x8xf32>
    tpu.vector_store %arg12[%c61, %c0_208], %225 {strides = array<i32>} : memref<110x8xf32, #tpu.memory_space<vmem>>, vector<8x8xf32>,
    %c216 = arith.constant 216 : index
    %c0_209 = arith.constant 0 : index
    %227 = tpu.strided_load %arg11[%c216, %c0_209] {strides = array<i32: 2, 1>} : memref<288x8xf32, #tpu.memory_space<vmem>>, vector<8x8xf32>
    %c217 = arith.constant 217 : index
    %c0_210 = arith.constant 0 : index
    %228 = tpu.strided_load %arg11[%c217, %c0_210] {strides = array<i32: 2, 1>} : memref<288x8xf32, #tpu.memory_space<vmem>>, vector<8x8xf32>
    %229 = arith.maximumf %227, %228 : vector<8x8xf32>
    %c234 = arith.constant 234 : index
    %c0_211 = arith.constant 0 : index
    %230 = tpu.strided_load %arg11[%c234, %c0_211] {strides = array<i32: 2, 1>} : memref<288x8xf32, #tpu.memory_space<vmem>>, vector<8x8xf32>
    %231 = arith.maximumf %229, %230 : vector<8x8xf32>
    %c235 = arith.constant 235 : index
    %c0_212 = arith.constant 0 : index
    %232 = tpu.strided_load %arg11[%c235, %c0_212] {strides = array<i32: 2, 1>} : memref<288x8xf32, #tpu.memory_space<vmem>>, vector<8x8xf32>
    %233 = arith.maximumf %231, %232 : vector<8x8xf32>
    %c71 = arith.constant 71 : index
    %c0_213 = arith.constant 0 : index
    %234 = vector.load %arg12[%c71, %c0_213] : memref<110x8xf32, #tpu.memory_space<vmem>>, vector<8x8xf32>
    tpu.vector_store %arg12[%c71, %c0_213], %233 {strides = array<i32>} : memref<110x8xf32, #tpu.memory_space<vmem>>, vector<8x8xf32>,
    %c252 = arith.constant 252 : index
    %c0_214 = arith.constant 0 : index
    %235 = tpu.strided_load %arg11[%c252, %c0_214] {strides = array<i32: 2, 1>} : memref<288x8xf32, #tpu.memory_space<vmem>>, vector<8x8xf32>
    %c253 = arith.constant 253 : index
    %c0_215 = arith.constant 0 : index
    %236 = tpu.strided_load %arg11[%c253, %c0_215] {strides = array<i32: 2, 1>} : memref<288x8xf32, #tpu.memory_space<vmem>>, vector<8x8xf32>
    %237 = arith.maximumf %235, %236 : vector<8x8xf32>
    %c270 = arith.constant 270 : index
    %c0_216 = arith.constant 0 : index
    %238 = tpu.strided_load %arg11[%c270, %c0_216] {strides = array<i32: 2, 1>} : memref<288x8xf32, #tpu.memory_space<vmem>>, vector<8x8xf32>
    %239 = arith.maximumf %237, %238 : vector<8x8xf32>
    %c271 = arith.constant 271 : index
    %c0_217 = arith.constant 0 : index
    %240 = tpu.strided_load %arg11[%c271, %c0_217] {strides = array<i32: 2, 1>} : memref<288x8xf32, #tpu.memory_space<vmem>>, vector<8x8xf32>
    %241 = arith.maximumf %239, %240 : vector<8x8xf32>
    %c81 = arith.constant 81 : index
    %c0_218 = arith.constant 0 : index
    %242 = vector.load %arg12[%c81, %c0_218] : memref<110x8xf32, #tpu.memory_space<vmem>>, vector<8x8xf32>
    tpu.vector_store %arg12[%c81, %c0_218], %241 {strides = array<i32>} : memref<110x8xf32, #tpu.memory_space<vmem>>, vector<8x8xf32>,
    %c0_219 = arith.constant 0 : index
    %c0_220 = arith.constant 0 : index
    %243 = vector.load %arg12[%c0_219, %c0_220] : memref<110x8xf32, #tpu.memory_space<vmem>>, vector<80x8xf32>
    %c0_221 = arith.constant 0 : index
    %c0_222 = arith.constant 0 : index
    %c0_223 = arith.constant 0 : index
    %244 = vector.load %arg4[%c0_221, %c0_222, %c0_223] : memref<9x8x16xf32, #tpu.memory_space<vmem>>, vector<1x8x16xf32>
    %245 = vector.shape_cast %244 : vector<1x8x16xf32> to vector<8x16xf32>
    %cst_224 = arith.constant dense<0.000000e+00> : vector<80x16xf32>
    %246 = tpu.matmul %243, %245, %cst_224 {dimension_numbers = #tpu.dot_dimension_numbers<[1], [0], [0], [1], [0, 0, 1, 1], [], []>} : vector<80x8xf32>, vector<8x16xf32>, vector<80x16xf32> -> vector<80x16xf32>
    %c1_225 = arith.constant 1 : index
    %c0_226 = arith.constant 0 : index
    %247 = vector.load %arg12[%c1_225, %c0_226] : memref<110x8xf32, #tpu.memory_space<vmem>>, vector<80x8xf32>
    %c1_227 = arith.constant 1 : index
    %c0_228 = arith.constant 0 : index
    %c0_229 = arith.constant 0 : index
    %248 = vector.load %arg4[%c1_227, %c0_228, %c0_229] : memref<9x8x16xf32, #tpu.memory_space<vmem>>, vector<1x8x16xf32>
    %249 = vector.shape_cast %248 : vector<1x8x16xf32> to vector<8x16xf32>
    %cst_230 = arith.constant dense<0.000000e+00> : vector<80x16xf32>
    %250 = tpu.matmul %247, %249, %cst_230 {dimension_numbers = #tpu.dot_dimension_numbers<[1], [0], [0], [1], [0, 0, 1, 1], [], []>} : vector<80x8xf32>, vector<8x16xf32>, vector<80x16xf32> -> vector<80x16xf32>
    %251 = arith.addf %246, %250 : vector<80x16xf32>
    %c2_231 = arith.constant 2 : index
    %c0_232 = arith.constant 0 : index
    %252 = vector.load %arg12[%c2_231, %c0_232] : memref<110x8xf32, #tpu.memory_space<vmem>>, vector<80x8xf32>
    %c2_233 = arith.constant 2 : index
    %c0_234 = arith.constant 0 : index
    %c0_235 = arith.constant 0 : index
    %253 = vector.load %arg4[%c2_233, %c0_234, %c0_235] : memref<9x8x16xf32, #tpu.memory_space<vmem>>, vector<1x8x16xf32>
    %254 = vector.shape_cast %253 : vector<1x8x16xf32> to vector<8x16xf32>
    %cst_236 = arith.constant dense<0.000000e+00> : vector<80x16xf32>
    %255 = tpu.matmul %252, %254, %cst_236 {dimension_numbers = #tpu.dot_dimension_numbers<[1], [0], [0], [1], [0, 0, 1, 1], [], []>} : vector<80x8xf32>, vector<8x16xf32>, vector<80x16xf32> -> vector<80x16xf32>
    %256 = arith.addf %251, %255 : vector<80x16xf32>
    %c10 = arith.constant 10 : index
    %c0_237 = arith.constant 0 : index
    %257 = vector.load %arg12[%c10, %c0_237] : memref<110x8xf32, #tpu.memory_space<vmem>>, vector<80x8xf32>
    %c3_238 = arith.constant 3 : index
    %c0_239 = arith.constant 0 : index
    %c0_240 = arith.constant 0 : index
    %258 = vector.load %arg4[%c3_238, %c0_239, %c0_240] : memref<9x8x16xf32, #tpu.memory_space<vmem>>, vector<1x8x16xf32>
    %259 = vector.shape_cast %258 : vector<1x8x16xf32> to vector<8x16xf32>
    %cst_241 = arith.constant dense<0.000000e+00> : vector<80x16xf32>
    %260 = tpu.matmul %257, %259, %cst_241 {dimension_numbers = #tpu.dot_dimension_numbers<[1], [0], [0], [1], [0, 0, 1, 1], [], []>} : vector<80x8xf32>, vector<8x16xf32>, vector<80x16xf32> -> vector<80x16xf32>
    %261 = arith.addf %256, %260 : vector<80x16xf32>
    %c11_242 = arith.constant 11 : index
    %c0_243 = arith.constant 0 : index
    %262 = vector.load %arg12[%c11_242, %c0_243] : memref<110x8xf32, #tpu.memory_space<vmem>>, vector<80x8xf32>
    %c4_244 = arith.constant 4 : index
    %c0_245 = arith.constant 0 : index
    %c0_246 = arith.constant 0 : index
    %263 = vector.load %arg4[%c4_244, %c0_245, %c0_246] : memref<9x8x16xf32, #tpu.memory_space<vmem>>, vector<1x8x16xf32>
    %264 = vector.shape_cast %263 : vector<1x8x16xf32> to vector<8x16xf32>
    %cst_247 = arith.constant dense<0.000000e+00> : vector<80x16xf32>
    %265 = tpu.matmul %262, %264, %cst_247 {dimension_numbers = #tpu.dot_dimension_numbers<[1], [0], [0], [1], [0, 0, 1, 1], [], []>} : vector<80x8xf32>, vector<8x16xf32>, vector<80x16xf32> -> vector<80x16xf32>
    %266 = arith.addf %261, %265 : vector<80x16xf32>
    %c12 = arith.constant 12 : index
    %c0_248 = arith.constant 0 : index
    %267 = vector.load %arg12[%c12, %c0_248] : memref<110x8xf32, #tpu.memory_space<vmem>>, vector<80x8xf32>
    %c5_249 = arith.constant 5 : index
    %c0_250 = arith.constant 0 : index
    %c0_251 = arith.constant 0 : index
    %268 = vector.load %arg4[%c5_249, %c0_250, %c0_251] : memref<9x8x16xf32, #tpu.memory_space<vmem>>, vector<1x8x16xf32>
    %269 = vector.shape_cast %268 : vector<1x8x16xf32> to vector<8x16xf32>
    %cst_252 = arith.constant dense<0.000000e+00> : vector<80x16xf32>
    %270 = tpu.matmul %267, %269, %cst_252 {dimension_numbers = #tpu.dot_dimension_numbers<[1], [0], [0], [1], [0, 0, 1, 1], [], []>} : vector<80x8xf32>, vector<8x16xf32>, vector<80x16xf32> -> vector<80x16xf32>
    %271 = arith.addf %266, %270 : vector<80x16xf32>
    %c20_253 = arith.constant 20 : index
    %c0_254 = arith.constant 0 : index
    %272 = vector.load %arg12[%c20_253, %c0_254] : memref<110x8xf32, #tpu.memory_space<vmem>>, vector<80x8xf32>
    %c6_255 = arith.constant 6 : index
    %c0_256 = arith.constant 0 : index
    %c0_257 = arith.constant 0 : index
    %273 = vector.load %arg4[%c6_255, %c0_256, %c0_257] : memref<9x8x16xf32, #tpu.memory_space<vmem>>, vector<1x8x16xf32>
    %274 = vector.shape_cast %273 : vector<1x8x16xf32> to vector<8x16xf32>
    %cst_258 = arith.constant dense<0.000000e+00> : vector<80x16xf32>
    %275 = tpu.matmul %272, %274, %cst_258 {dimension_numbers = #tpu.dot_dimension_numbers<[1], [0], [0], [1], [0, 0, 1, 1], [], []>} : vector<80x8xf32>, vector<8x16xf32>, vector<80x16xf32> -> vector<80x16xf32>
    %276 = arith.addf %271, %275 : vector<80x16xf32>
    %c21_259 = arith.constant 21 : index
    %c0_260 = arith.constant 0 : index
    %277 = vector.load %arg12[%c21_259, %c0_260] : memref<110x8xf32, #tpu.memory_space<vmem>>, vector<80x8xf32>
    %c7_261 = arith.constant 7 : index
    %c0_262 = arith.constant 0 : index
    %c0_263 = arith.constant 0 : index
    %278 = vector.load %arg4[%c7_261, %c0_262, %c0_263] : memref<9x8x16xf32, #tpu.memory_space<vmem>>, vector<1x8x16xf32>
    %279 = vector.shape_cast %278 : vector<1x8x16xf32> to vector<8x16xf32>
    %cst_264 = arith.constant dense<0.000000e+00> : vector<80x16xf32>
    %280 = tpu.matmul %277, %279, %cst_264 {dimension_numbers = #tpu.dot_dimension_numbers<[1], [0], [0], [1], [0, 0, 1, 1], [], []>} : vector<80x8xf32>, vector<8x16xf32>, vector<80x16xf32> -> vector<80x16xf32>
    %281 = arith.addf %276, %280 : vector<80x16xf32>
    %c22 = arith.constant 22 : index
    %c0_265 = arith.constant 0 : index
    %282 = vector.load %arg12[%c22, %c0_265] : memref<110x8xf32, #tpu.memory_space<vmem>>, vector<80x8xf32>
    %c8_266 = arith.constant 8 : index
    %c0_267 = arith.constant 0 : index
    %c0_268 = arith.constant 0 : index
    %283 = vector.load %arg4[%c8_266, %c0_267, %c0_268] : memref<9x8x16xf32, #tpu.memory_space<vmem>>, vector<1x8x16xf32>
    %284 = vector.shape_cast %283 : vector<1x8x16xf32> to vector<8x16xf32>
    %cst_269 = arith.constant dense<0.000000e+00> : vector<80x16xf32>
    %285 = tpu.matmul %282, %284, %cst_269 {dimension_numbers = #tpu.dot_dimension_numbers<[1], [0], [0], [1], [0, 0, 1, 1], [], []>} : vector<80x8xf32>, vector<8x16xf32>, vector<80x16xf32> -> vector<80x16xf32>
    %286 = arith.addf %281, %285 : vector<80x16xf32>
    %c0_270 = arith.constant 0 : index
    %c0_271 = arith.constant 0 : index
    %287 = vector.load %arg5[%c0_270, %c0_271] : memref<1x16xf32, #tpu.memory_space<vmem>>, vector<1x16xf32>
    %288 = vector.broadcast %287 : vector<1x16xf32> to vector<80x16xf32>
    %289 = arith.addf %286, %288 : vector<80x16xf32>
    %cst_272 = arith.constant 0.000000e+00 : f32
    %290 = vector.broadcast %cst_272 : f32 to vector<80x16xf32>
    %291 = arith.maximumf %289, %290 : vector<80x16xf32>
    %c0_273 = arith.constant 0 : index
    %c0_274 = arith.constant 0 : index
    %292 = vector.load %arg13[%c0_273, %c0_274] : memref<80x16xf32, #tpu.memory_space<vmem>>, vector<80x16xf32>
    tpu.vector_store %arg13[%c0_273, %c0_274], %291 {strides = array<i32>} : memref<80x16xf32, #tpu.memory_space<vmem>>, vector<80x16xf32>,
    %cst_275 = arith.constant 0.000000e+00 : f32
    %293 = vector.broadcast %cst_275 : f32 to vector<42x16xf32>
    %c0_276 = arith.constant 0 : index
    %c0_277 = arith.constant 0 : index
    %294 = vector.load %arg14[%c0_276, %c0_277] : memref<42x16xf32, #tpu.memory_space<vmem>>, vector<42x16xf32>
    tpu.vector_store %arg14[%c0_276, %c0_277], %293 {strides = array<i32>} : memref<42x16xf32, #tpu.memory_space<vmem>>, vector<42x16xf32>,
    %c0_278 = arith.constant 0 : index
    %c0_279 = arith.constant 0 : index
    %295 = tpu.strided_load %arg13[%c0_278, %c0_279] {strides = array<i32: 2, 1>} : memref<80x16xf32, #tpu.memory_space<vmem>>, vector<4x16xf32>
    %c1_280 = arith.constant 1 : index
    %c0_281 = arith.constant 0 : index
    %296 = tpu.strided_load %arg13[%c1_280, %c0_281] {strides = array<i32: 2, 1>} : memref<80x16xf32, #tpu.memory_space<vmem>>, vector<4x16xf32>
    %297 = arith.maximumf %295, %296 : vector<4x16xf32>
    %c10_282 = arith.constant 10 : index
    %c0_283 = arith.constant 0 : index
    %298 = tpu.strided_load %arg13[%c10_282, %c0_283] {strides = array<i32: 2, 1>} : memref<80x16xf32, #tpu.memory_space<vmem>>, vector<4x16xf32>
    %299 = arith.maximumf %297, %298 : vector<4x16xf32>
    %c11_284 = arith.constant 11 : index
    %c0_285 = arith.constant 0 : index
    %300 = tpu.strided_load %arg13[%c11_284, %c0_285] {strides = array<i32: 2, 1>} : memref<80x16xf32, #tpu.memory_space<vmem>>, vector<4x16xf32>
    %301 = arith.maximumf %299, %300 : vector<4x16xf32>
    %c7_286 = arith.constant 7 : index
    %c0_287 = arith.constant 0 : index
    %302 = vector.load %arg14[%c7_286, %c0_287] : memref<42x16xf32, #tpu.memory_space<vmem>>, vector<4x16xf32>
    tpu.vector_store %arg14[%c7_286, %c0_287], %301 {strides = array<i32>} : memref<42x16xf32, #tpu.memory_space<vmem>>, vector<4x16xf32>,
    %c20_288 = arith.constant 20 : index
    %c0_289 = arith.constant 0 : index
    %303 = tpu.strided_load %arg13[%c20_288, %c0_289] {strides = array<i32: 2, 1>} : memref<80x16xf32, #tpu.memory_space<vmem>>, vector<4x16xf32>
    %c21_290 = arith.constant 21 : index
    %c0_291 = arith.constant 0 : index
    %304 = tpu.strided_load %arg13[%c21_290, %c0_291] {strides = array<i32: 2, 1>} : memref<80x16xf32, #tpu.memory_space<vmem>>, vector<4x16xf32>
    %305 = arith.maximumf %303, %304 : vector<4x16xf32>
    %c30 = arith.constant 30 : index
    %c0_292 = arith.constant 0 : index
    %306 = tpu.strided_load %arg13[%c30, %c0_292] {strides = array<i32: 2, 1>} : memref<80x16xf32, #tpu.memory_space<vmem>>, vector<4x16xf32>
    %307 = arith.maximumf %305, %306 : vector<4x16xf32>
    %c31_293 = arith.constant 31 : index
    %c0_294 = arith.constant 0 : index
    %308 = tpu.strided_load %arg13[%c31_293, %c0_294] {strides = array<i32: 2, 1>} : memref<80x16xf32, #tpu.memory_space<vmem>>, vector<4x16xf32>
    %309 = arith.maximumf %307, %308 : vector<4x16xf32>
    %c13 = arith.constant 13 : index
    %c0_295 = arith.constant 0 : index
    %310 = vector.load %arg14[%c13, %c0_295] : memref<42x16xf32, #tpu.memory_space<vmem>>, vector<4x16xf32>
    tpu.vector_store %arg14[%c13, %c0_295], %309 {strides = array<i32>} : memref<42x16xf32, #tpu.memory_space<vmem>>, vector<4x16xf32>,
    %c40 = arith.constant 40 : index
    %c0_296 = arith.constant 0 : index
    %311 = tpu.strided_load %arg13[%c40, %c0_296] {strides = array<i32: 2, 1>} : memref<80x16xf32, #tpu.memory_space<vmem>>, vector<4x16xf32>
    %c41_297 = arith.constant 41 : index
    %c0_298 = arith.constant 0 : index
    %312 = tpu.strided_load %arg13[%c41_297, %c0_298] {strides = array<i32: 2, 1>} : memref<80x16xf32, #tpu.memory_space<vmem>>, vector<4x16xf32>
    %313 = arith.maximumf %311, %312 : vector<4x16xf32>
    %c50 = arith.constant 50 : index
    %c0_299 = arith.constant 0 : index
    %314 = tpu.strided_load %arg13[%c50, %c0_299] {strides = array<i32: 2, 1>} : memref<80x16xf32, #tpu.memory_space<vmem>>, vector<4x16xf32>
    %315 = arith.maximumf %313, %314 : vector<4x16xf32>
    %c51_300 = arith.constant 51 : index
    %c0_301 = arith.constant 0 : index
    %316 = tpu.strided_load %arg13[%c51_300, %c0_301] {strides = array<i32: 2, 1>} : memref<80x16xf32, #tpu.memory_space<vmem>>, vector<4x16xf32>
    %317 = arith.maximumf %315, %316 : vector<4x16xf32>
    %c19_302 = arith.constant 19 : index
    %c0_303 = arith.constant 0 : index
    %318 = vector.load %arg14[%c19_302, %c0_303] : memref<42x16xf32, #tpu.memory_space<vmem>>, vector<4x16xf32>
    tpu.vector_store %arg14[%c19_302, %c0_303], %317 {strides = array<i32>} : memref<42x16xf32, #tpu.memory_space<vmem>>, vector<4x16xf32>,
    %c60 = arith.constant 60 : index
    %c0_304 = arith.constant 0 : index
    %319 = tpu.strided_load %arg13[%c60, %c0_304] {strides = array<i32: 2, 1>} : memref<80x16xf32, #tpu.memory_space<vmem>>, vector<4x16xf32>
    %c61_305 = arith.constant 61 : index
    %c0_306 = arith.constant 0 : index
    %320 = tpu.strided_load %arg13[%c61_305, %c0_306] {strides = array<i32: 2, 1>} : memref<80x16xf32, #tpu.memory_space<vmem>>, vector<4x16xf32>
    %321 = arith.maximumf %319, %320 : vector<4x16xf32>
    %c70 = arith.constant 70 : index
    %c0_307 = arith.constant 0 : index
    %322 = tpu.strided_load %arg13[%c70, %c0_307] {strides = array<i32: 2, 1>} : memref<80x16xf32, #tpu.memory_space<vmem>>, vector<4x16xf32>
    %323 = arith.maximumf %321, %322 : vector<4x16xf32>
    %c71_308 = arith.constant 71 : index
    %c0_309 = arith.constant 0 : index
    %324 = tpu.strided_load %arg13[%c71_308, %c0_309] {strides = array<i32: 2, 1>} : memref<80x16xf32, #tpu.memory_space<vmem>>, vector<4x16xf32>
    %325 = arith.maximumf %323, %324 : vector<4x16xf32>
    %c25 = arith.constant 25 : index
    %c0_310 = arith.constant 0 : index
    %326 = vector.load %arg14[%c25, %c0_310] : memref<42x16xf32, #tpu.memory_space<vmem>>, vector<4x16xf32>
    tpu.vector_store %arg14[%c25, %c0_310], %325 {strides = array<i32>} : memref<42x16xf32, #tpu.memory_space<vmem>>, vector<4x16xf32>,
    %c0_311 = arith.constant 0 : index
    %c0_312 = arith.constant 0 : index
    %327 = vector.load %arg14[%c0_311, %c0_312] : memref<42x16xf32, #tpu.memory_space<vmem>>, vector<24x16xf32>
    %c0_313 = arith.constant 0 : index
    %c0_314 = arith.constant 0 : index
    %c0_315 = arith.constant 0 : index
    %328 = vector.load %arg6[%c0_313, %c0_314, %c0_315] : memref<9x16x32xf32, #tpu.memory_space<vmem>>, vector<1x16x32xf32>
    %329 = vector.shape_cast %328 : vector<1x16x32xf32> to vector<16x32xf32>
    %cst_316 = arith.constant dense<0.000000e+00> : vector<24x32xf32>
    %330 = tpu.matmul %327, %329, %cst_316 {dimension_numbers = #tpu.dot_dimension_numbers<[1], [0], [0], [1], [0, 0, 1, 1], [], []>} : vector<24x16xf32>, vector<16x32xf32>, vector<24x32xf32> -> vector<24x32xf32>
    %c1_317 = arith.constant 1 : index
    %c0_318 = arith.constant 0 : index
    %331 = vector.load %arg14[%c1_317, %c0_318] : memref<42x16xf32, #tpu.memory_space<vmem>>, vector<24x16xf32>
    %c1_319 = arith.constant 1 : index
    %c0_320 = arith.constant 0 : index
    %c0_321 = arith.constant 0 : index
    %332 = vector.load %arg6[%c1_319, %c0_320, %c0_321] : memref<9x16x32xf32, #tpu.memory_space<vmem>>, vector<1x16x32xf32>
    %333 = vector.shape_cast %332 : vector<1x16x32xf32> to vector<16x32xf32>
    %cst_322 = arith.constant dense<0.000000e+00> : vector<24x32xf32>
    %334 = tpu.matmul %331, %333, %cst_322 {dimension_numbers = #tpu.dot_dimension_numbers<[1], [0], [0], [1], [0, 0, 1, 1], [], []>} : vector<24x16xf32>, vector<16x32xf32>, vector<24x32xf32> -> vector<24x32xf32>
    %335 = arith.addf %330, %334 : vector<24x32xf32>
    %c2_323 = arith.constant 2 : index
    %c0_324 = arith.constant 0 : index
    %336 = vector.load %arg14[%c2_323, %c0_324] : memref<42x16xf32, #tpu.memory_space<vmem>>, vector<24x16xf32>
    %c2_325 = arith.constant 2 : index
    %c0_326 = arith.constant 0 : index
    %c0_327 = arith.constant 0 : index
    %337 = vector.load %arg6[%c2_325, %c0_326, %c0_327] : memref<9x16x32xf32, #tpu.memory_space<vmem>>, vector<1x16x32xf32>
    %338 = vector.shape_cast %337 : vector<1x16x32xf32> to vector<16x32xf32>
    %cst_328 = arith.constant dense<0.000000e+00> : vector<24x32xf32>
    %339 = tpu.matmul %336, %338, %cst_328 {dimension_numbers = #tpu.dot_dimension_numbers<[1], [0], [0], [1], [0, 0, 1, 1], [], []>} : vector<24x16xf32>, vector<16x32xf32>, vector<24x32xf32> -> vector<24x32xf32>
    %340 = arith.addf %335, %339 : vector<24x32xf32>
    %c6_329 = arith.constant 6 : index
    %c0_330 = arith.constant 0 : index
    %341 = vector.load %arg14[%c6_329, %c0_330] : memref<42x16xf32, #tpu.memory_space<vmem>>, vector<24x16xf32>
    %c3_331 = arith.constant 3 : index
    %c0_332 = arith.constant 0 : index
    %c0_333 = arith.constant 0 : index
    %342 = vector.load %arg6[%c3_331, %c0_332, %c0_333] : memref<9x16x32xf32, #tpu.memory_space<vmem>>, vector<1x16x32xf32>
    %343 = vector.shape_cast %342 : vector<1x16x32xf32> to vector<16x32xf32>
    %cst_334 = arith.constant dense<0.000000e+00> : vector<24x32xf32>
    %344 = tpu.matmul %341, %343, %cst_334 {dimension_numbers = #tpu.dot_dimension_numbers<[1], [0], [0], [1], [0, 0, 1, 1], [], []>} : vector<24x16xf32>, vector<16x32xf32>, vector<24x32xf32> -> vector<24x32xf32>
    %345 = arith.addf %340, %344 : vector<24x32xf32>
    %c7_335 = arith.constant 7 : index
    %c0_336 = arith.constant 0 : index
    %346 = vector.load %arg14[%c7_335, %c0_336] : memref<42x16xf32, #tpu.memory_space<vmem>>, vector<24x16xf32>
    %c4_337 = arith.constant 4 : index
    %c0_338 = arith.constant 0 : index
    %c0_339 = arith.constant 0 : index
    %347 = vector.load %arg6[%c4_337, %c0_338, %c0_339] : memref<9x16x32xf32, #tpu.memory_space<vmem>>, vector<1x16x32xf32>
    %348 = vector.shape_cast %347 : vector<1x16x32xf32> to vector<16x32xf32>
    %cst_340 = arith.constant dense<0.000000e+00> : vector<24x32xf32>
    %349 = tpu.matmul %346, %348, %cst_340 {dimension_numbers = #tpu.dot_dimension_numbers<[1], [0], [0], [1], [0, 0, 1, 1], [], []>} : vector<24x16xf32>, vector<16x32xf32>, vector<24x32xf32> -> vector<24x32xf32>
    %350 = arith.addf %345, %349 : vector<24x32xf32>
    %c8_341 = arith.constant 8 : index
    %c0_342 = arith.constant 0 : index
    %351 = vector.load %arg14[%c8_341, %c0_342] : memref<42x16xf32, #tpu.memory_space<vmem>>, vector<24x16xf32>
    %c5_343 = arith.constant 5 : index
    %c0_344 = arith.constant 0 : index
    %c0_345 = arith.constant 0 : index
    %352 = vector.load %arg6[%c5_343, %c0_344, %c0_345] : memref<9x16x32xf32, #tpu.memory_space<vmem>>, vector<1x16x32xf32>
    %353 = vector.shape_cast %352 : vector<1x16x32xf32> to vector<16x32xf32>
    %cst_346 = arith.constant dense<0.000000e+00> : vector<24x32xf32>
    %354 = tpu.matmul %351, %353, %cst_346 {dimension_numbers = #tpu.dot_dimension_numbers<[1], [0], [0], [1], [0, 0, 1, 1], [], []>} : vector<24x16xf32>, vector<16x32xf32>, vector<24x32xf32> -> vector<24x32xf32>
    %355 = arith.addf %350, %354 : vector<24x32xf32>
    %c12_347 = arith.constant 12 : index
    %c0_348 = arith.constant 0 : index
    %356 = vector.load %arg14[%c12_347, %c0_348] : memref<42x16xf32, #tpu.memory_space<vmem>>, vector<24x16xf32>
    %c6_349 = arith.constant 6 : index
    %c0_350 = arith.constant 0 : index
    %c0_351 = arith.constant 0 : index
    %357 = vector.load %arg6[%c6_349, %c0_350, %c0_351] : memref<9x16x32xf32, #tpu.memory_space<vmem>>, vector<1x16x32xf32>
    %358 = vector.shape_cast %357 : vector<1x16x32xf32> to vector<16x32xf32>
    %cst_352 = arith.constant dense<0.000000e+00> : vector<24x32xf32>
    %359 = tpu.matmul %356, %358, %cst_352 {dimension_numbers = #tpu.dot_dimension_numbers<[1], [0], [0], [1], [0, 0, 1, 1], [], []>} : vector<24x16xf32>, vector<16x32xf32>, vector<24x32xf32> -> vector<24x32xf32>
    %360 = arith.addf %355, %359 : vector<24x32xf32>
    %c13_353 = arith.constant 13 : index
    %c0_354 = arith.constant 0 : index
    %361 = vector.load %arg14[%c13_353, %c0_354] : memref<42x16xf32, #tpu.memory_space<vmem>>, vector<24x16xf32>
    %c7_355 = arith.constant 7 : index
    %c0_356 = arith.constant 0 : index
    %c0_357 = arith.constant 0 : index
    %362 = vector.load %arg6[%c7_355, %c0_356, %c0_357] : memref<9x16x32xf32, #tpu.memory_space<vmem>>, vector<1x16x32xf32>
    %363 = vector.shape_cast %362 : vector<1x16x32xf32> to vector<16x32xf32>
    %cst_358 = arith.constant dense<0.000000e+00> : vector<24x32xf32>
    %364 = tpu.matmul %361, %363, %cst_358 {dimension_numbers = #tpu.dot_dimension_numbers<[1], [0], [0], [1], [0, 0, 1, 1], [], []>} : vector<24x16xf32>, vector<16x32xf32>, vector<24x32xf32> -> vector<24x32xf32>
    %365 = arith.addf %360, %364 : vector<24x32xf32>
    %c14 = arith.constant 14 : index
    %c0_359 = arith.constant 0 : index
    %366 = vector.load %arg14[%c14, %c0_359] : memref<42x16xf32, #tpu.memory_space<vmem>>, vector<24x16xf32>
    %c8_360 = arith.constant 8 : index
    %c0_361 = arith.constant 0 : index
    %c0_362 = arith.constant 0 : index
    %367 = vector.load %arg6[%c8_360, %c0_361, %c0_362] : memref<9x16x32xf32, #tpu.memory_space<vmem>>, vector<1x16x32xf32>
    %368 = vector.shape_cast %367 : vector<1x16x32xf32> to vector<16x32xf32>
    %cst_363 = arith.constant dense<0.000000e+00> : vector<24x32xf32>
    %369 = tpu.matmul %366, %368, %cst_363 {dimension_numbers = #tpu.dot_dimension_numbers<[1], [0], [0], [1], [0, 0, 1, 1], [], []>} : vector<24x16xf32>, vector<16x32xf32>, vector<24x32xf32> -> vector<24x32xf32>
    %370 = arith.addf %365, %369 : vector<24x32xf32>
    %c0_364 = arith.constant 0 : index
    %c0_365 = arith.constant 0 : index
    %371 = vector.load %arg7[%c0_364, %c0_365] : memref<1x32xf32, #tpu.memory_space<vmem>>, vector<1x32xf32>
    %372 = vector.broadcast %371 : vector<1x32xf32> to vector<24x32xf32>
    %373 = arith.addf %370, %372 : vector<24x32xf32>
    %cst_366 = arith.constant 0.000000e+00 : f32
    %374 = vector.broadcast %cst_366 : f32 to vector<24x32xf32>
    %375 = arith.maximumf %373, %374 : vector<24x32xf32>
    %c0_367 = arith.constant 0 : index
    %c0_368 = arith.constant 0 : index
    %376 = vector.load %arg15[%c0_367, %c0_368] : memref<24x32xf32, #tpu.memory_space<vmem>>, vector<24x32xf32>
    tpu.vector_store %arg15[%c0_367, %c0_368], %375 {strides = array<i32>} : memref<24x32xf32, #tpu.memory_space<vmem>>, vector<24x32xf32>,
    %cst_369 = arith.constant 0.000000e+00 : f32
    %377 = vector.broadcast %cst_369 : f32 to vector<20x32xf32>
    %c0_370 = arith.constant 0 : index
    %c0_371 = arith.constant 0 : index
    %378 = vector.load %arg16[%c0_370, %c0_371] : memref<20x32xf32, #tpu.memory_space<vmem>>, vector<20x32xf32>
    tpu.vector_store %arg16[%c0_370, %c0_371], %377 {strides = array<i32>} : memref<20x32xf32, #tpu.memory_space<vmem>>, vector<20x32xf32>,
    %c0_372 = arith.constant 0 : index
    %c0_373 = arith.constant 0 : index
    %379 = tpu.strided_load %arg15[%c0_372, %c0_373] {strides = array<i32: 2, 1>} : memref<24x32xf32, #tpu.memory_space<vmem>>, vector<2x32xf32>
    %c1_374 = arith.constant 1 : index
    %c0_375 = arith.constant 0 : index
    %380 = tpu.strided_load %arg15[%c1_374, %c0_375] {strides = array<i32: 2, 1>} : memref<24x32xf32, #tpu.memory_space<vmem>>, vector<2x32xf32>
    %381 = arith.maximumf %379, %380 : vector<2x32xf32>
    %c6_376 = arith.constant 6 : index
    %c0_377 = arith.constant 0 : index
    %382 = tpu.strided_load %arg15[%c6_376, %c0_377] {strides = array<i32: 2, 1>} : memref<24x32xf32, #tpu.memory_space<vmem>>, vector<2x32xf32>
    %383 = arith.maximumf %381, %382 : vector<2x32xf32>
    %c7_378 = arith.constant 7 : index
    %c0_379 = arith.constant 0 : index
    %384 = tpu.strided_load %arg15[%c7_378, %c0_379] {strides = array<i32: 2, 1>} : memref<24x32xf32, #tpu.memory_space<vmem>>, vector<2x32xf32>
    %385 = arith.maximumf %383, %384 : vector<2x32xf32>
    %c5_380 = arith.constant 5 : index
    %c0_381 = arith.constant 0 : index
    %386 = vector.load %arg16[%c5_380, %c0_381] : memref<20x32xf32, #tpu.memory_space<vmem>>, vector<2x32xf32>
    tpu.vector_store %arg16[%c5_380, %c0_381], %385 {strides = array<i32>} : memref<20x32xf32, #tpu.memory_space<vmem>>, vector<2x32xf32>,
    %c12_382 = arith.constant 12 : index
    %c0_383 = arith.constant 0 : index
    %387 = tpu.strided_load %arg15[%c12_382, %c0_383] {strides = array<i32: 2, 1>} : memref<24x32xf32, #tpu.memory_space<vmem>>, vector<2x32xf32>
    %c13_384 = arith.constant 13 : index
    %c0_385 = arith.constant 0 : index
    %388 = tpu.strided_load %arg15[%c13_384, %c0_385] {strides = array<i32: 2, 1>} : memref<24x32xf32, #tpu.memory_space<vmem>>, vector<2x32xf32>
    %389 = arith.maximumf %387, %388 : vector<2x32xf32>
    %c18_386 = arith.constant 18 : index
    %c0_387 = arith.constant 0 : index
    %390 = tpu.strided_load %arg15[%c18_386, %c0_387] {strides = array<i32: 2, 1>} : memref<24x32xf32, #tpu.memory_space<vmem>>, vector<2x32xf32>
    %391 = arith.maximumf %389, %390 : vector<2x32xf32>
    %c19_388 = arith.constant 19 : index
    %c0_389 = arith.constant 0 : index
    %392 = tpu.strided_load %arg15[%c19_388, %c0_389] {strides = array<i32: 2, 1>} : memref<24x32xf32, #tpu.memory_space<vmem>>, vector<2x32xf32>
    %393 = arith.maximumf %391, %392 : vector<2x32xf32>
    %c9 = arith.constant 9 : index
    %c0_390 = arith.constant 0 : index
    %394 = vector.load %arg16[%c9, %c0_390] : memref<20x32xf32, #tpu.memory_space<vmem>>, vector<2x32xf32>
    tpu.vector_store %arg16[%c9, %c0_390], %393 {strides = array<i32>} : memref<20x32xf32, #tpu.memory_space<vmem>>, vector<2x32xf32>,
    %c0_391 = arith.constant 0 : index
    %c0_392 = arith.constant 0 : index
    %395 = vector.load %arg16[%c0_391, %c0_392] : memref<20x32xf32, #tpu.memory_space<vmem>>, vector<8x32xf32>
    %c0_393 = arith.constant 0 : index
    %c0_394 = arith.constant 0 : index
    %c0_395 = arith.constant 0 : index
    %396 = vector.load %arg8[%c0_393, %c0_394, %c0_395] : memref<9x32x8xf32, #tpu.memory_space<vmem>>, vector<1x32x8xf32>
    %397 = vector.shape_cast %396 : vector<1x32x8xf32> to vector<32x8xf32>
    %cst_396 = arith.constant dense<0.000000e+00> : vector<8x8xf32>
    %398 = tpu.matmul %395, %397, %cst_396 {dimension_numbers = #tpu.dot_dimension_numbers<[1], [0], [0], [1], [0, 0, 1, 1], [], []>} : vector<8x32xf32>, vector<32x8xf32>, vector<8x8xf32> -> vector<8x8xf32>
    %c1_397 = arith.constant 1 : index
    %c0_398 = arith.constant 0 : index
    %399 = vector.load %arg16[%c1_397, %c0_398] : memref<20x32xf32, #tpu.memory_space<vmem>>, vector<8x32xf32>
    %c1_399 = arith.constant 1 : index
    %c0_400 = arith.constant 0 : index
    %c0_401 = arith.constant 0 : index
    %400 = vector.load %arg8[%c1_399, %c0_400, %c0_401] : memref<9x32x8xf32, #tpu.memory_space<vmem>>, vector<1x32x8xf32>
    %401 = vector.shape_cast %400 : vector<1x32x8xf32> to vector<32x8xf32>
    %cst_402 = arith.constant dense<0.000000e+00> : vector<8x8xf32>
    %402 = tpu.matmul %399, %401, %cst_402 {dimension_numbers = #tpu.dot_dimension_numbers<[1], [0], [0], [1], [0, 0, 1, 1], [], []>} : vector<8x32xf32>, vector<32x8xf32>, vector<8x8xf32> -> vector<8x8xf32>
    %403 = arith.addf %398, %402 : vector<8x8xf32>
    %c2_403 = arith.constant 2 : index
    %c0_404 = arith.constant 0 : index
    %404 = vector.load %arg16[%c2_403, %c0_404] : memref<20x32xf32, #tpu.memory_space<vmem>>, vector<8x32xf32>
    %c2_405 = arith.constant 2 : index
    %c0_406 = arith.constant 0 : index
    %c0_407 = arith.constant 0 : index
    %405 = vector.load %arg8[%c2_405, %c0_406, %c0_407] : memref<9x32x8xf32, #tpu.memory_space<vmem>>, vector<1x32x8xf32>
    %406 = vector.shape_cast %405 : vector<1x32x8xf32> to vector<32x8xf32>
    %cst_408 = arith.constant dense<0.000000e+00> : vector<8x8xf32>
    %407 = tpu.matmul %404, %406, %cst_408 {dimension_numbers = #tpu.dot_dimension_numbers<[1], [0], [0], [1], [0, 0, 1, 1], [], []>} : vector<8x32xf32>, vector<32x8xf32>, vector<8x8xf32> -> vector<8x8xf32>
    %408 = arith.addf %403, %407 : vector<8x8xf32>
    %c4_409 = arith.constant 4 : index
    %c0_410 = arith.constant 0 : index
    %409 = vector.load %arg16[%c4_409, %c0_410] : memref<20x32xf32, #tpu.memory_space<vmem>>, vector<8x32xf32>
    %c3_411 = arith.constant 3 : index
    %c0_412 = arith.constant 0 : index
    %c0_413 = arith.constant 0 : index
    %410 = vector.load %arg8[%c3_411, %c0_412, %c0_413] : memref<9x32x8xf32, #tpu.memory_space<vmem>>, vector<1x32x8xf32>
    %411 = vector.shape_cast %410 : vector<1x32x8xf32> to vector<32x8xf32>
    %cst_414 = arith.constant dense<0.000000e+00> : vector<8x8xf32>
    %412 = tpu.matmul %409, %411, %cst_414 {dimension_numbers = #tpu.dot_dimension_numbers<[1], [0], [0], [1], [0, 0, 1, 1], [], []>} : vector<8x32xf32>, vector<32x8xf32>, vector<8x8xf32> -> vector<8x8xf32>
    %413 = arith.addf %408, %412 : vector<8x8xf32>
    %c5_415 = arith.constant 5 : index
    %c0_416 = arith.constant 0 : index
    %414 = vector.load %arg16[%c5_415, %c0_416] : memref<20x32xf32, #tpu.memory_space<vmem>>, vector<8x32xf32>
    %c4_417 = arith.constant 4 : index
    %c0_418 = arith.constant 0 : index
    %c0_419 = arith.constant 0 : index
    %415 = vector.load %arg8[%c4_417, %c0_418, %c0_419] : memref<9x32x8xf32, #tpu.memory_space<vmem>>, vector<1x32x8xf32>
    %416 = vector.shape_cast %415 : vector<1x32x8xf32> to vector<32x8xf32>
    %cst_420 = arith.constant dense<0.000000e+00> : vector<8x8xf32>
    %417 = tpu.matmul %414, %416, %cst_420 {dimension_numbers = #tpu.dot_dimension_numbers<[1], [0], [0], [1], [0, 0, 1, 1], [], []>} : vector<8x32xf32>, vector<32x8xf32>, vector<8x8xf32> -> vector<8x8xf32>
    %418 = arith.addf %413, %417 : vector<8x8xf32>
    %c6_421 = arith.constant 6 : index
    %c0_422 = arith.constant 0 : index
    %419 = vector.load %arg16[%c6_421, %c0_422] : memref<20x32xf32, #tpu.memory_space<vmem>>, vector<8x32xf32>
    %c5_423 = arith.constant 5 : index
    %c0_424 = arith.constant 0 : index
    %c0_425 = arith.constant 0 : index
    %420 = vector.load %arg8[%c5_423, %c0_424, %c0_425] : memref<9x32x8xf32, #tpu.memory_space<vmem>>, vector<1x32x8xf32>
    %421 = vector.shape_cast %420 : vector<1x32x8xf32> to vector<32x8xf32>
    %cst_426 = arith.constant dense<0.000000e+00> : vector<8x8xf32>
    %422 = tpu.matmul %419, %421, %cst_426 {dimension_numbers = #tpu.dot_dimension_numbers<[1], [0], [0], [1], [0, 0, 1, 1], [], []>} : vector<8x32xf32>, vector<32x8xf32>, vector<8x8xf32> -> vector<8x8xf32>
    %423 = arith.addf %418, %422 : vector<8x8xf32>
    %c8_427 = arith.constant 8 : index
    %c0_428 = arith.constant 0 : index
    %424 = vector.load %arg16[%c8_427, %c0_428] : memref<20x32xf32, #tpu.memory_space<vmem>>, vector<8x32xf32>
    %c6_429 = arith.constant 6 : index
    %c0_430 = arith.constant 0 : index
    %c0_431 = arith.constant 0 : index
    %425 = vector.load %arg8[%c6_429, %c0_430, %c0_431] : memref<9x32x8xf32, #tpu.memory_space<vmem>>, vector<1x32x8xf32>
    %426 = vector.shape_cast %425 : vector<1x32x8xf32> to vector<32x8xf32>
    %cst_432 = arith.constant dense<0.000000e+00> : vector<8x8xf32>
    %427 = tpu.matmul %424, %426, %cst_432 {dimension_numbers = #tpu.dot_dimension_numbers<[1], [0], [0], [1], [0, 0, 1, 1], [], []>} : vector<8x32xf32>, vector<32x8xf32>, vector<8x8xf32> -> vector<8x8xf32>
    %428 = arith.addf %423, %427 : vector<8x8xf32>
    %c9_433 = arith.constant 9 : index
    %c0_434 = arith.constant 0 : index
    %429 = vector.load %arg16[%c9_433, %c0_434] : memref<20x32xf32, #tpu.memory_space<vmem>>, vector<8x32xf32>
    %c7_435 = arith.constant 7 : index
    %c0_436 = arith.constant 0 : index
    %c0_437 = arith.constant 0 : index
    %430 = vector.load %arg8[%c7_435, %c0_436, %c0_437] : memref<9x32x8xf32, #tpu.memory_space<vmem>>, vector<1x32x8xf32>
    %431 = vector.shape_cast %430 : vector<1x32x8xf32> to vector<32x8xf32>
    %cst_438 = arith.constant dense<0.000000e+00> : vector<8x8xf32>
    %432 = tpu.matmul %429, %431, %cst_438 {dimension_numbers = #tpu.dot_dimension_numbers<[1], [0], [0], [1], [0, 0, 1, 1], [], []>} : vector<8x32xf32>, vector<32x8xf32>, vector<8x8xf32> -> vector<8x8xf32>
    %433 = arith.addf %428, %432 : vector<8x8xf32>
    %c10_439 = arith.constant 10 : index
    %c0_440 = arith.constant 0 : index
    %434 = vector.load %arg16[%c10_439, %c0_440] : memref<20x32xf32, #tpu.memory_space<vmem>>, vector<8x32xf32>
    %c8_441 = arith.constant 8 : index
    %c0_442 = arith.constant 0 : index
    %c0_443 = arith.constant 0 : index
    %435 = vector.load %arg8[%c8_441, %c0_442, %c0_443] : memref<9x32x8xf32, #tpu.memory_space<vmem>>, vector<1x32x8xf32>
    %436 = vector.shape_cast %435 : vector<1x32x8xf32> to vector<32x8xf32>
    %cst_444 = arith.constant dense<0.000000e+00> : vector<8x8xf32>
    %437 = tpu.matmul %434, %436, %cst_444 {dimension_numbers = #tpu.dot_dimension_numbers<[1], [0], [0], [1], [0, 0, 1, 1], [], []>} : vector<8x32xf32>, vector<32x8xf32>, vector<8x8xf32> -> vector<8x8xf32>
    %438 = arith.addf %433, %437 : vector<8x8xf32>
    %c0_445 = arith.constant 0 : index
    %c0_446 = arith.constant 0 : index
    %439 = vector.load %arg9[%c0_445, %c0_446] : memref<1x8xf32, #tpu.memory_space<vmem>>, vector<1x8xf32>
    %440 = vector.broadcast %439 : vector<1x8xf32> to vector<8x8xf32>
    %441 = arith.addf %438, %440 : vector<8x8xf32>
    %c0_447 = arith.constant 0 : index
    %c0_448 = arith.constant 0 : index
    %442 = vector.load %arg17[%c0_447, %c0_448] : memref<8x8xf32, #tpu.memory_space<vmem>>, vector<8x8xf32>
    tpu.vector_store %arg17[%c0_447, %c0_448], %441 {strides = array<i32>} : memref<8x8xf32, #tpu.memory_space<vmem>>, vector<8x8xf32>,
    %c0_449 = arith.constant 0 : index
    %c0_450 = arith.constant 0 : index
    %443 = vector.load %arg17[%c0_449, %c0_450] : memref<8x8xf32, #tpu.memory_space<vmem>>, vector<2x8xf32>
    %444 = vector.extract_strided_slice %443 {offsets = [0, 0], sizes = [2, 1], strides = [1, 1]} : vector<2x8xf32> to vector<2x1xf32>
    %c0_451 = arith.constant 0 : index
    %c0_452 = arith.constant 0 : index
    %c0_453 = arith.constant 0 : index
    %c0_454 = arith.constant 0 : index
    %445 = vector.load %arg10[%c0_451, %c0_452, %c0_453, %c0_454] : memref<1x2x2x1xf32, #tpu.memory_space<vmem>>, vector<1x1x2x1xf32>
    %446 = vector.shape_cast %445 : vector<1x1x2x1xf32> to vector<2x1xf32>
    %447 = vector.shape_cast %444 : vector<2x1xf32> to vector<1x1x2x1xf32>
    tpu.vector_store %arg10[%c0_451, %c0_452, %c0_453, %c0_454], %447 {strides = array<i32>} : memref<1x2x2x1xf32, #tpu.memory_space<vmem>>, vector<1x1x2x1xf32>,
    %c4_455 = arith.constant 4 : index
    %c0_456 = arith.constant 0 : index
    %448 = vector.load %arg17[%c4_455, %c0_456] : memref<8x8xf32, #tpu.memory_space<vmem>>, vector<2x8xf32>
    %449 = vector.extract_strided_slice %448 {offsets = [0, 0], sizes = [2, 1], strides = [1, 1]} : vector<2x8xf32> to vector<2x1xf32>
    %c0_457 = arith.constant 0 : index
    %c1_458 = arith.constant 1 : index
    %c0_459 = arith.constant 0 : index
    %c0_460 = arith.constant 0 : index
    %450 = vector.load %arg10[%c0_457, %c1_458, %c0_459, %c0_460] : memref<1x2x2x1xf32, #tpu.memory_space<vmem>>, vector<1x1x2x1xf32>
    %451 = vector.shape_cast %450 : vector<1x1x2x1xf32> to vector<2x1xf32>
    %452 = vector.shape_cast %449 : vector<2x1xf32> to vector<1x1x2x1xf32>
    tpu.vector_store %arg10[%c0_457, %c1_458, %c0_459, %c0_460], %452 {strides = array<i32>} : memref<1x2x2x1xf32, #tpu.memory_space<vmem>>, vector<1x1x2x1xf32>,
    return
  }
  func.func @transform_0(%arg0: i32) -> (i32, i32, i32) {
    %c0_i32 = arith.constant 0 : i32
    %c0_i32_0 = arith.constant 0 : i32
    %c0_i32_1 = arith.constant 0 : i32
    return %arg0, %c0_i32, %c0_i32_0 : i32, i32, i32
  }
  func.func @transform_1(%arg0: i32) -> (i32, i32, i32) {
    %c0_i32 = arith.constant 0 : i32
    %c0_i32_0 = arith.constant 0 : i32
    %c0_i32_1 = arith.constant 0 : i32
    %c0_i32_2 = arith.constant 0 : i32
    return %c0_i32, %c0_i32_0, %c0_i32_1 : i32, i32, i32
  }
  func.func @transform_2(%arg0: i32) -> (i32, i32) {
    %c0_i32 = arith.constant 0 : i32
    %c0_i32_0 = arith.constant 0 : i32
    %c0_i32_1 = arith.constant 0 : i32
    return %c0_i32, %c0_i32_0 : i32, i32
  }
  func.func @transform_3(%arg0: i32) -> (i32, i32, i32) {
    %c0_i32 = arith.constant 0 : i32
    %c0_i32_0 = arith.constant 0 : i32
    %c0_i32_1 = arith.constant 0 : i32
    %c0_i32_2 = arith.constant 0 : i32
    return %c0_i32, %c0_i32_0, %c0_i32_1 : i32, i32, i32
  }
  func.func @transform_4(%arg0: i32) -> (i32, i32) {
    %c0_i32 = arith.constant 0 : i32
    %c0_i32_0 = arith.constant 0 : i32
    %c0_i32_1 = arith.constant 0 : i32
    return %c0_i32, %c0_i32_0 : i32, i32
  }
  func.func @transform_5(%arg0: i32) -> (i32, i32, i32) {
    %c0_i32 = arith.constant 0 : i32
    %c0_i32_0 = arith.constant 0 : i32
    %c0_i32_1 = arith.constant 0 : i32
    %c0_i32_2 = arith.constant 0 : i32
    return %c0_i32, %c0_i32_0, %c0_i32_1 : i32, i32, i32
  }
  func.func @transform_6(%arg0: i32) -> (i32, i32) {
    %c0_i32 = arith.constant 0 : i32
    %c0_i32_0 = arith.constant 0 : i32
    %c0_i32_1 = arith.constant 0 : i32
    return %c0_i32, %c0_i32_0 : i32, i32
  }
  func.func @transform_7(%arg0: i32) -> (i32, i32, i32) {
    %c0_i32 = arith.constant 0 : i32
    %c0_i32_0 = arith.constant 0 : i32
    %c0_i32_1 = arith.constant 0 : i32
    %c0_i32_2 = arith.constant 0 : i32
    return %c0_i32, %c0_i32_0, %c0_i32_1 : i32, i32, i32
  }
  func.func @transform_8(%arg0: i32) -> (i32, i32) {
    %c0_i32 = arith.constant 0 : i32
    %c0_i32_0 = arith.constant 0 : i32
    %c0_i32_1 = arith.constant 0 : i32
    return %c0_i32, %c0_i32_0 : i32, i32
  }
  func.func @transform_9(%arg0: i32) -> (i32, i32, i32, i32) {
    %c0_i32 = arith.constant 0 : i32
    %c0_i32_0 = arith.constant 0 : i32
    %c0_i32_1 = arith.constant 0 : i32
    %c0_i32_2 = arith.constant 0 : i32
    return %arg0, %c0_i32, %c0_i32_0, %c0_i32_1 : i32, i32, i32, i32
  }
}

</mosaic_0001>

<bundles_post_ra>
// kernel: patch_discriminator_forward.1
= control target key start
LH: loop header
LB: loop body
LE: loop exit
PB: predicated region body
PF: predicated region fallthrough
CT: control target
= control target key end

     0   :  { %s11334_s30 = smov 0   ;;  %s12657_s0 = inlined_call_operand.vmem [shape: f32[2,342,8], index: 0, kind: input, shape index: {}]   ;;  %s12658_s1 = inlined_call_operand.vmem [shape: f32[9,8,8], index: 1, kind: input, shape index: {}]   ;;  %s12659_s2 = inlined_call_operand.vmem [shape: f32[1,8], index: 2, kind: input, shape index: {}]   ;;  %s12660_s3 = inlined_call_operand.vmem [shape: f32[9,8,16], index: 3, kind: input, shape index: {}]   ;;  %s12661_s4 = inlined_call_operand.vmem [shape: f32[1,16], index: 4, kind: input, shape index: {}]   ;;  %s12662_s5 = inlined_call_operand.vmem [shape: f32[9,16,32], index: 5, kind: input, shape index: {}]   ;;  %s12663_s6 = inlined_call_operand.vmem [shape: f32[1,32], index: 6, kind: input, shape index: {}]   ;;  %s12664_s7 = inlined_call_operand.vmem [shape: f32[9,32,8], index: 7, kind: input, shape index: {}]   ;;  %s12665_s8 = inlined_call_operand.vmem [shape: f32[1,8], index: 8, kind: input, shape index: {}]   ;;  %s12666_s9 = inlined_call_operand.vmem [shape: f32[2,2,2,1], index: 9, kind: output, shape index: {}]  }
   0x1 LB: > { %s8813_s10 = sadd.s32 4294967295, %s11279_s30   ;;  %p8817_p0 = scmp.ge.s32.totalorder %s11279_s30, 1  ;;  %s11279_s30 = sphi %s11334_s30, %s19_s30  }
   0x2   : > { %p287_p1 = scmp.lt.s32.totalorder %s11279_s30, 3 }
   0x4   : > { %p288_p2 = pnand %p8817_p0, %p287_p1 }
   0x5   : > { %v8821_v0 = vld [vmem:[%s12658_s1 + $0x8] sm:$0xff] (!%p288_p2)  ;;  %p323_p3 = scmp.lt.s32.totalorder (!%p288_p2), %s8813_s10, 1  ;;  %v349_v1 = vld [vmem:[%s12658_s1] sm:$0xff] (!%p288_p2)  ;;  %vm368_vm0 = vcmask (!%p288_p2), 64512   ;;  %v11369_v8 = vld [vmem:[%s12658_s1 + $0x10] sm:$0xff] (!%p288_p2)  ;;  %vm7040_vm1 = vcmask (!%p288_p2), 130048  }
   0x6   : > { %291 = sbr.rel (%p288_p2) target bundleno = 1550 (0x60e), region = 56  ;;  %9901 = vmatprep.subr.mxu0 (!%p288_p2), %v8821_v0  ;;  %10891 = vmatprep.subr.mxu1 (!%p288_p2), %v8821_v0  ;;  %v11430_v37 = vld [vmem:[%s12658_s1 + $0x18] sm:$0xff] (!%p288_p2)  ;;  %vm11283_vm2 = vmmov (!%p288_p2), 0   ;;  %vm7068_vm3 = vcmask (!%p288_p2), 125952   ;;  %vm7994_vm4 = vcmask (!%p288_p2), 261120   ;;  %vm8000_vm5 = vcmask (!%p288_p2), 257024  }
   0x7   : > { %9902 = vmatpush3.msra.mxu0 (!%p288_p2), %v8821_v0  ;;  %10892 = vmatpush3.msra.mxu1 (!%p288_p2), %v8821_v0  ;;  %vm8012_vm6 = vcmask (!%p288_p2), 254976   ;;  %vm8753_vm7 = vcmask (!%p288_p2), 1024  }
   0x8   : > { %9927 = vmatprep.subr.mxu0 (!%p288_p2), %v349_v1  ;;  %10135 = vmatprep.subr.mxu1 (!%p288_p2), %v8821_v0 }
   0xd   : > { %s12668_s10 = smov (!%p323_p3, %s8813_s10), 1 }
   0xe   : > { %s11261_s15 = smul.u32 344, %s12668_s10  ;;  %s9360_s23 = sshll.u32 %s12668_s10, 2 }
   0xf   : > { %s332_s26 = scalar_lea.vmem %s12666_s9, %s9360_s23 }
  0x10   : > { %s11354_s18 = scalar_lea.vmem %s12657_s0, %s11261_s15 }
  0x11   : > { %v350_v2 = vld [vmem:[%s11354_s18 + $0x1] sm:$0xff]  ;;  %v364_v3 = vld [vmem:[%s11354_s18 + $0x71] sm:$0xff]  ;;  %v351_v4 = vld [vmem:[%s11354_s18 + $0x9] sm:$0xff] }
  0x12   : > { %9903 = vmatprep.mubr.msk.f32.mxu0 %vm368_vm0, %v350_v2  ;;  %9924 = vmatprep.mubr.msk.f32.mxu1 %vm368_vm0, %v364_v3  ;;  %v365_v5 = vld [vmem:[%s11354_s18 + $0x79] sm:$0xff]  ;;  %v352_v6 = vld [vmem:[%s11354_s18 + $0x11] sm:$0xff]  ;;  %v2416_v7 = vld [vmem:[%s11354_s18 + $0x81] sm:$0xff] }
  0x13   : > { %9904 = vmatmul.mubr.msk.f32.vlgmr.msra.gmra.mrb[0].mxu0 %vm368_vm0, %v351_v4  ;;  %9925 = vmatmul.mubr.msk.f32.vlgmr.msra.gmra.mrb[0].mxu1 %vm368_vm0, %v365_v5  ;;  %v353_v9 = vld [vmem:[%s11354_s18 + $0x19] sm:$0xff]  ;;  %v2417_v10 = vld [vmem:[%s11354_s18 + $0x89] sm:$0xff]  ;;  %v354_v11 = vld [vmem:[%s11354_s18 + $0x21] sm:$0xff] }
  0x14   : > { %9928 = vmatpush3.msra.mxu0 %v349_v1  ;;  %9906 = vmatprep.mubr.msk.f32.mxu0 %vm368_vm0, %v352_v6  ;;  %v2418_v12 = vld [vmem:[%s11354_s18 + $0x91] sm:$0xff]  ;;  %v355_v13 = vld [vmem:[%s11354_s18 + $0x29] sm:$0xff]  ;;  %v2419_v14 = vld [vmem:[%s11354_s18 + $0x99] sm:$0xff] }
  0x15   : > { %10136 = vmatpush3.msra.mxu1 %v8821_v0  ;;  %10137 = vmatprep.mubr.msk.f32.mxu1 %vm368_vm0, %v2416_v7  ;;  %v356_v15 = vld [vmem:[%s11354_s18 + $0x31] sm:$0xff]  ;;  %v2420_v16 = vld [vmem:[%s11354_s18 + $0xa1] sm:$0xff]  ;;  %v357_v17 = vld [vmem:[%s11354_s18 + $0x39] sm:$0xff] }
  0x16   : > { %10161 = vmatprep.subr.mxu1 %v349_v1  ;;  %9953 = vmatprep.subr.mxu0 %v11369_v8  ;;  %v2421_v18 = vld [vmem:[%s11354_s18 + $0xa9] sm:$0xff]  ;;  %v358_v19 = vld [vmem:[%s11354_s18 + $0x41] sm:$0xff]  ;;  %v2422_v20 = vld [vmem:[%s11354_s18 + $0xb1] sm:$0xff] }
  0x17   : > { %9907 = vmatmul.mubr.msk.f32.gmra.mrb[2].mxu0 %vm368_vm0, %v353_v9  ;;  %10138 = vmatmul.mubr.msk.f32.vlgmr.msra.gmra.mrb[2].mxu1 %vm368_vm0, %v2417_v10  ;;  %v359_v21 = vld [vmem:[%s11354_s18 + $0x49] sm:$0xff]  ;;  %v2423_v22 = vld [vmem:[%s11354_s18 + $0xb9] sm:$0xff]  ;;  %v360_v23 = vld [vmem:[%s11354_s18 + $0x51] sm:$0xff] }
  0x18   : > { %9909 = vmatprep.mubr.msk.f32.mxu0 %vm368_vm0, %v354_v11  ;;  %10140 = vmatprep.mubr.msk.f32.mxu1 %vm368_vm0, %v2418_v12  ;;  %v2424_v24 = vld [vmem:[%s11354_s18 + $0xc1] sm:$0xff]  ;;  %v361_v25 = vld [vmem:[%s11354_s18 + $0x59] sm:$0xff]  ;;  %v2425_v26 = vld [vmem:[%s11354_s18 + $0xc9] sm:$0xff] }
  0x19   : > { %10162 = vmatpush3.msra.mxu1 %v349_v1  ;;  %v362_v27 = vld [vmem:[%s11354_s18 + $0x61] sm:$0xff]  ;;  %v2426_v28 = vld [vmem:[%s11354_s18 + $0xd1] sm:$0xff]  ;;  %v363_v29 = vld [vmem:[%s11354_s18 + $0x69] sm:$0xff] }
  0x1a   : > { %10187 = vmatprep.subr.mxu1 %v11369_v8  ;;  %v2427_v30 = vld [vmem:[%s11354_s18 + $0xd9] sm:$0xff]  ;;  %v2428_v32 = vld [vmem:[%s11354_s18 + $0xe1] sm:$0xff]  ;;  %v2429_v34 = vld [vmem:[%s11354_s18 + $0xe9] sm:$0xff] }
  0x1b   : > { %9910 = vmatmul.mubr.msk.f32.gmra.mrb[4].mxu0 %vm368_vm0, %v355_v13  ;;  %10141 = vmatmul.mubr.msk.f32.gmra.mrb[4].mxu1 %vm368_vm0, %v2419_v14  ;;  %v333_v31 = vld [vmem:[%s11354_s18] sm:$0xff]  ;;  %v334_v33 = vld [vmem:[%s11354_s18 + $0x8] sm:$0xff]  ;;  %v335_v35 = vld [vmem:[%s11354_s18 + $0x10] sm:$0xff] }
  0x1c   : > { %9912 = vmatprep.mubr.msk.f32.mxu0 %vm368_vm0, %v356_v15  ;;  %10143 = vmatprep.mubr.msk.f32.mxu1 %vm368_vm0, %v2420_v16  ;;  %v2430_v36 = vld [vmem:[%s11354_s18 + $0xf1] sm:$0xff]  ;;  %v2431_v39 = vld [vmem:[%s11354_s18 + $0xf9] sm:$0xff]  ;;  %v338_v42 = vld [vmem:[%s11354_s18 + $0x28] sm:$0xff] }
  0x1d   : > { %v336_v38 = vld [vmem:[%s11354_s18 + $0x18] sm:$0xff]  ;;  %v337_v40 = vld [vmem:[%s11354_s18 + $0x20] sm:$0xff]  ;;  %v2400_v43 = vld [vmem:[%s11354_s18 + $0x88] sm:$0xff] }
  0x1e   : > { %v2399_v41 = vld [vmem:[%s11354_s18 + $0x80] sm:$0xff]  ;;  %v339_v44 = vld [vmem:[%s11354_s18 + $0x30] sm:$0xff]  ;;  %v340_v46 = vld [vmem:[%s11354_s18 + $0x38] sm:$0xff] }
  0x1f   : > { %9913 = vmatmul.mubr.msk.f32.gmra.mrb[6].mxu0 %vm368_vm0, %v357_v17  ;;  %10144 = vmatmul.mubr.msk.f32.gmra.mrb[6].mxu1 %vm368_vm0, %v2421_v18  ;;  %v2401_v45 = vld [vmem:[%s11354_s18 + $0x90] sm:$0xff]  ;;  %v2402_v47 = vld [vmem:[%s11354_s18 + $0x98] sm:$0xff]  ;;  %v341_v48 = vld [vmem:[%s11354_s18 + $0x40] sm:$0xff] }
  0x20   : > { %9915 = vmatprep.mubr.msk.f32.mxu0 %vm368_vm0, %v358_v19  ;;  %10146 = vmatprep.mubr.msk.f32.mxu1 %vm368_vm0, %v2422_v20  ;;  %v2403_v49 = vld [vmem:[%s11354_s18 + $0xa0] sm:$0xff]  ;;  %v342_v50 = vld [vmem:[%s11354_s18 + $0x48] sm:$0xff]  ;;  %v343_v52 = vld [vmem:[%s11354_s18 + $0x50] sm:$0xff] }
  0x21   : > { %v2404_v51 = vld [vmem:[%s11354_s18 + $0xa8] sm:$0xff]  ;;  %v2405_v53 = vld [vmem:[%s11354_s18 + $0xb0] sm:$0xff]  ;;  %v344_v54 = vld [vmem:[%s11354_s18 + $0x58] sm:$0xff] }
  0x22   : > { %v2406_v55 = vld [vmem:[%s11354_s18 + $0xb8] sm:$0xff]  ;;  %v345_v56 = vld [vmem:[%s11354_s18 + $0x60] sm:$0xff]  ;;  %v346_v58 = vld [vmem:[%s11354_s18 + $0x68] sm:$0xff] }
  0x23   : > { %9916 = vmatmul.mubr.msk.f32.gmra.mrb[8].mxu0 %vm368_vm0, %v359_v21  ;;  %10147 = vmatmul.mubr.msk.f32.gmra.mrb[8].mxu1 %vm368_vm0, %v2423_v22  ;;  %v2407_v57 = vld [vmem:[%s11354_s18 + $0xc0] sm:$0xff]  ;;  %v2408_v59 = vld [vmem:[%s11354_s18 + $0xc8] sm:$0xff]  ;;  %v347_v60 = vld [vmem:[%s11354_s18 + $0x70] sm:$0xff] }
  0x24   : > { %9918 = vmatprep.mubr.msk.f32.mxu0 %vm368_vm0, %v360_v23  ;;  %10149 = vmatprep.mubr.msk.f32.mxu1 %vm368_vm0, %v2424_v24  ;;  %v2409_v61 = vld [vmem:[%s11354_s18 + $0xd0] sm:$0xff]  ;;  %v348_v62 = vld [vmem:[%s11354_s18 + $0x78] sm:$0xff]  ;;  %v755_v0 = vld [vmem:[%s11354_s18 + $0x2] sm:$0xff] }
  0x25   : > { %v2410_v63 = vld [vmem:[%s11354_s18 + $0xd8] sm:$0xff]  ;;  %v2411_v1 = vld [vmem:[%s11354_s18 + $0xe0] sm:$0xff]  ;;  %v756_v2 = vld [vmem:[%s11354_s18 + $0xa] sm:$0xff] }
  0x26   : > { %v2412_v3 = vld [vmem:[%s11354_s18 + $0xe8] sm:$0xff]  ;;  %v11499_v4 = vld [vmem:[%s11354_s18 + $0x12] sm:$0xff]  ;;  %v11505_v6 = vld [vmem:[%s12658_s1 + $0x20] sm:$0xff] }
  0x27   : > { %9919 = vmatmul.mubr.msk.f32.gmra.mrb[10].mxu0 %vm368_vm0, %v361_v25  ;;  %10150 = vmatmul.mubr.msk.f32.gmra.mrb[10].mxu1 %vm368_vm0, %v2425_v26  ;;  %v2413_v5 = vld [vmem:[%s11354_s18 + $0xf0] sm:$0xff]  ;;  %v758_v7 = vld [vmem:[%s11354_s18 + $0x1a] sm:$0xff]  ;;  %v759_v9 = vld [vmem:[%s11354_s18 + $0x22] sm:$0xff] }
  0x28   : > { %9921 = vmatprep.mubr.msk.f32.mxu0 %vm368_vm0, %v362_v27  ;;  %10152 = vmatprep.mubr.msk.f32.mxu1 %vm368_vm0, %v2426_v28  ;;  %v11517_v10 = vld [vmem:[%s11354_s18 + $0x82] sm:$0xff]  ;;  %v760_v11 = vld [vmem:[%s11354_s18 + $0x2a] sm:$0xff]  ;;  %v761_v13 = vld [vmem:[%s11354_s18 + $0x32] sm:$0xff] }
  0x29   : > { %v11527_v12 = vld [vmem:[%s11354_s18 + $0x8a] sm:$0xff]  ;;  %v2821_v14 = vld [vmem:[%s11354_s18 + $0x92] sm:$0xff]  ;;  %v762_v15 = vld [vmem:[%s11354_s18 + $0x3a] sm:$0xff] }
  0x2a   : > { %v2822_v16 = vld [vmem:[%s11354_s18 + $0x9a] sm:$0xff]  ;;  %v763_v17 = vld [vmem:[%s11354_s18 + $0x42] sm:$0xff]  ;;  %v764_v19 = vld [vmem:[%s11354_s18 + $0x4a] sm:$0xff] }
  0x2b   : > { %9922 = vmatmul.mubr.msk.f32.gmra.mrb[12].mxu0 %vm368_vm0, %v363_v29  ;;  %10153 = vmatmul.mubr.msk.f32.gmra.mrb[12].mxu1 %vm368_vm0, %v2427_v30  ;;  %v2823_v18 = vld [vmem:[%s11354_s18 + $0xa2] sm:$0xff]  ;;  %v2824_v20 = vld [vmem:[%s11354_s18 + $0xaa] sm:$0xff]  ;;  %v765_v21 = vld [vmem:[%s11354_s18 + $0x52] sm:$0xff] }
  0x2c   : > { %9929 = vmatprep.mubr.msk.f32.mxu0 %vm368_vm0, %v333_v31  ;;  %10155 = vmatprep.mubr.msk.f32.mxu1 %vm368_vm0, %v2428_v32  ;;  %v2825_v22 = vld [vmem:[%s11354_s18 + $0xb2] sm:$0xff]  ;;  %v766_v23 = vld [vmem:[%s11354_s18 + $0x5a] sm:$0xff]  ;;  %v767_v25 = vld [vmem:[%s11354_s18 + $0x62] sm:$0xff] }
  0x2d   : > { %v2826_v24 = vld [vmem:[%s11354_s18 + $0xba] sm:$0xff]  ;;  %v2827_v26 = vld [vmem:[%s11354_s18 + $0xc2] sm:$0xff]  ;;  %v768_v27 = vld [vmem:[%s11354_s18 + $0x6a] sm:$0xff] }
  0x2e   : > { %v2828_v28 = vld [vmem:[%s11354_s18 + $0xca] sm:$0xff]  ;;  %v769_v29 = vld [vmem:[%s11354_s18 + $0x72] sm:$0xff]  ;;  %v770_v31 = vld [vmem:[%s11354_s18 + $0x7a] sm:$0xff] }
  0x2f   : > { %9930 = vmatmul.mubr.msk.f32.vlgmr.msra.gmra.mrb[0].mxu0 %vm368_vm0, %v334_v33  ;;  %10156 = vmatmul.mubr.msk.f32.gmra.mrb[14].mxu1 %vm368_vm0, %v2429_v34  ;;  %v2829_v30 = vld [vmem:[%s11354_s18 + $0xd2] sm:$0xff]  ;;  %v2830_v32 = vld [vmem:[%s11354_s18 + $0xda] sm:$0xff]  ;;  %v2831_v33 = vld [vmem:[%s11354_s18 + $0xe2] sm:$0xff] }
  0x30   : > { %9954 = vmatpush3.msra.mxu0 %v11369_v8  ;;  %9932 = vmatprep.mubr.msk.f32.mxu0 %vm368_vm0, %v335_v35  ;;  %v2832_v34 = vld [vmem:[%s11354_s18 + $0xea] sm:$0xff]  ;;  %v2833_v35 = vld [vmem:[%s11354_s18 + $0xf2] sm:$0xff] }
  0x31   : > { %10158 = vmatprep.mubr.msk.f32.mxu1 %vm368_vm0, %v2430_v36  ;;  %9979 = vmatprep.subr.mxu0 %v11430_v37  ;;  %v11583_v36 = vld [vmem:[%s12658_s1 + $0x28] sm:$0xff] }
  0x33   : > { %9933 = vmatmul.mubr.msk.f32.gmra.mrb[2].mxu0 %vm368_vm0, %v336_v38  ;;  %10159 = vmatmul.mubr.msk.f32.gmra.mrb[16].mxu1 %vm368_vm0, %v2431_v39  ;;  %v1209_v38 = vld [vmem:[%s11354_s18 + $0x13] sm:$0xff]  ;;  %v1210_v39 = vld [vmem:[%s11354_s18 + $0x1b] sm:$0xff] }
  0x34   : > { %9935 = vmatprep.mubr.msk.f32.mxu0 %vm368_vm0, %v337_v40  ;;  %10163 = vmatprep.mubr.msk.f32.mxu1 %vm368_vm0, %v2399_v41  ;;  %v1211_v40 = vld [vmem:[%s11354_s18 + $0x23] sm:$0xff] }
  0x35   : > { %v11628_v41 = vld [vmem:[%s11354_s18 + $0x102] sm:$0xff] }
  0x37   : > { %9936 = vmatmul.mubr.msk.f32.gmra.mrb[4].mxu0 %vm368_vm0, %v338_v42  ;;  %10164 = vmatmul.mubr.msk.f32.vlgmr.msra.gmra.mrb[2].mxu1 %vm368_vm0, %v2400_v43  ;;  %v11633_v42 = vld [vmem:[%s12658_s1 + $0x30] sm:$0xff] }
  0x38   : > { %9938 = vmatprep.mubr.msk.f32.mxu0 %vm368_vm0, %v339_v44  ;;  %10166 = vmatprep.mubr.msk.f32.mxu1 %vm368_vm0, %v2401_v45  ;;  %v1212_v43 = vld [vmem:[%s11354_s18 + $0x2b] sm:$0xff]  ;;  %v1213_v45 = vld [vmem:[%s11354_s18 + $0x33] sm:$0xff] }
  0x39   : > { %10188 = vmatpush3.msra.mxu1 %v11369_v8  ;;  %v2414_v8 = vld [vmem:[%s11354_s18 + $0xf8] sm:$0xff]  ;;  %v11641_v44 = vld [vmem:[%s11354_s18 + $0x10a] sm:$0xff] }
  0x3a   : > { %10213 = vmatprep.subr.mxu1 %v11430_v37 }
  0x3b   : > { %9939 = vmatmul.mubr.msk.f32.gmra.mrb[6].mxu0 %vm368_vm0, %v340_v46  ;;  %10167 = vmatmul.mubr.msk.f32.gmra.mrb[4].mxu1 %vm368_vm0, %v2402_v47  ;;  %v3271_v46 = vld [vmem:[%s11354_s18 + $0x93] sm:$0xff]  ;;  %v1214_v47 = vld [vmem:[%s11354_s18 + $0x3b] sm:$0xff] }
  0x3c   : > { %9941 = vmatprep.mubr.msk.f32.mxu0 %vm368_vm0, %v341_v48  ;;  %10169 = vmatprep.mubr.msk.f32.mxu1 %vm368_vm0, %v2403_v49  ;;  %v3272_v48 = vld [vmem:[%s11354_s18 + $0x9b] sm:$0xff]  ;;  %v1215_v49 = vld [vmem:[%s11354_s18 + $0x43] sm:$0xff] }
  0x3f   : > { %9942 = vmatmul.mubr.msk.f32.gmra.mrb[8].mxu0 %vm368_vm0, %v342_v50  ;;  %10170 = vmatmul.mubr.msk.f32.gmra.mrb[6].mxu1 %vm368_vm0, %v2404_v51  ;;  %v3273_v50 = vld [vmem:[%s11354_s18 + $0xa3] sm:$0xff]  ;;  %v1216_v51 = vld [vmem:[%s11354_s18 + $0x4b] sm:$0xff] }
  0x40   : > { %9944 = vmatprep.mubr.msk.f32.mxu0 %vm368_vm0, %v343_v52  ;;  %10172 = vmatprep.mubr.msk.f32.mxu1 %vm368_vm0, %v2405_v53  ;;  %v3274_v52 = vld [vmem:[%s11354_s18 + $0xab] sm:$0xff]  ;;  %v1217_v53 = vld [vmem:[%s11354_s18 + $0x53] sm:$0xff] }
  0x43   : > { %9945 = vmatmul.mubr.msk.f32.gmra.mrb[10].mxu0 %vm368_vm0, %v344_v54  ;;  %10173 = vmatmul.mubr.msk.f32.gmra.mrb[8].mxu1 %vm368_vm0, %v2406_v55  ;;  %v3275_v54 = vld [vmem:[%s11354_s18 + $0xb3] sm:$0xff]  ;;  %v1218_v55 = vld [vmem:[%s11354_s18 + $0x5b] sm:$0xff] }
  0x44   : > { %9947 = vmatprep.mubr.msk.f32.mxu0 %vm368_vm0, %v345_v56  ;;  %10175 = vmatprep.mubr.msk.f32.mxu1 %vm368_vm0, %v2407_v57  ;;  %v3276_v56 = vld [vmem:[%s11354_s18 + $0xbb] sm:$0xff]  ;;  %v1219_v57 = vld [vmem:[%s11354_s18 + $0x63] sm:$0xff] }
  0x47   : > { %9948 = vmatmul.mubr.msk.f32.gmra.mrb[12].mxu0 %vm368_vm0, %v346_v58  ;;  %10176 = vmatmul.mubr.msk.f32.gmra.mrb[10].mxu1 %vm368_vm0, %v2408_v59  ;;  %v3277_v58 = vld [vmem:[%s11354_s18 + $0xc3] sm:$0xff]  ;;  %v1220_v59 = vld [vmem:[%s11354_s18 + $0x6b] sm:$0xff] }
  0x48   : > { %9950 = vmatprep.mubr.msk.f32.mxu0 %vm368_vm0, %v347_v60  ;;  %10178 = vmatprep.mubr.msk.f32.mxu1 %vm368_vm0, %v2409_v61  ;;  %v3278_v60 = vld [vmem:[%s11354_s18 + $0xcb] sm:$0xff]  ;;  %v1221_v61 = vld [vmem:[%s11354_s18 + $0x73] sm:$0xff] }
  0x4b   : > { %9951 = vmatmul.mubr.msk.f32.gmra.mrb[14].mxu0 %vm368_vm0, %v348_v62  ;;  %10179 = vmatmul.mubr.msk.f32.gmra.mrb[12].mxu1 %vm368_vm0, %v2410_v63  ;;  %v3279_v62 = vld [vmem:[%s11354_s18 + $0xd3] sm:$0xff]  ;;  %v1222_v63 = vld [vmem:[%s11354_s18 + $0x7b] sm:$0xff] }
  0x4c   : > { %9955 = vmatprep.mubr.msk.f32.mxu0 %vm368_vm0, %v755_v0  ;;  %10181 = vmatprep.mubr.msk.f32.mxu1 %vm368_vm0, %v2411_v1  ;;  %v3280_v0 = vld [vmem:[%s11354_s18 + $0xdb] sm:$0xff]  ;;  %v1223_v1 = vld [vmem:[%s11354_s18 + $0x83] sm:$0xff] }
  0x4f   : > { %9956 = vmatmul.mubr.msk.f32.vlgmr.msra.gmra.mrb[0].mxu0 %vm368_vm0, %v756_v2  ;;  %10182 = vmatmul.mubr.msk.f32.gmra.mrb[14].mxu1 %vm368_vm0, %v2412_v3  ;;  %v3281_v2 = vld [vmem:[%s11354_s18 + $0xe3] sm:$0xff]  ;;  %v1224_v3 = vld [vmem:[%s11354_s18 + $0x8b] sm:$0xff] }
  0x50   : > { %9980 = vmatpush3.msra.mxu0 %v11430_v37  ;;  %9958 = vmatprep.mubr.msk.f32.mxu0 %vm368_vm0, %v11499_v4 }
  0x51   : > { %10184 = vmatprep.mubr.msk.f32.mxu1 %vm368_vm0, %v2413_v5  ;;  %10005 = vmatprep.subr.mxu0 %v11505_v6  ;;  %v1436_v5 = vld [vmem:[%s11354_s18 + $0x14] sm:$0xff] }
  0x53   : > { %9959 = vmatmul.mubr.msk.f32.gmra.mrb[2].mxu0 %vm368_vm0, %v758_v7  ;;  %10185 = vmatmul.mubr.msk.f32.gmra.mrb[16].mxu1 %vm368_vm0, %v2414_v8  ;;  %v1437_v8 = vld [vmem:[%s11354_s18 + $0x1c] sm:$0xff] }
  0x54   : > { %9961 = vmatprep.mubr.msk.f32.mxu0 %vm368_vm0, %v759_v9  ;;  %10189 = vmatprep.mubr.msk.f32.mxu1 %vm368_vm0, %v11517_v10 }
  0x57   : > { %9962 = vmatmul.mubr.msk.f32.gmra.mrb[4].mxu0 %vm368_vm0, %v760_v11  ;;  %10190 = vmatmul.mubr.msk.f32.vlgmr.msra.gmra.mrb[2].mxu1 %vm368_vm0, %v11527_v12 }
  0x58   : > { %9964 = vmatprep.mubr.msk.f32.mxu0 %vm368_vm0, %v761_v13  ;;  %10192 = vmatprep.mubr.msk.f32.mxu1 %vm368_vm0, %v2821_v14 }
  0x59   : > { %10214 = vmatpush3.msra.mxu1 %v11430_v37  ;;  %v2834_v37 = vld [vmem:[%s11354_s18 + $0xfa] sm:$0xff] }
  0x5a   : > { %10239 = vmatprep.subr.mxu1 %v11505_v6 }
  0x5b   : > { %9965 = vmatmul.mubr.msk.f32.gmra.mrb[6].mxu0 %vm368_vm0, %v762_v15  ;;  %10193 = vmatmul.mubr.msk.f32.gmra.mrb[4].mxu1 %vm368_vm0, %v2822_v16 }
  0x5c   : > { %9967 = vmatprep.mubr.msk.f32.mxu0 %vm368_vm0, %v763_v17  ;;  %10195 = vmatprep.mubr.msk.f32.mxu1 %vm368_vm0, %v2823_v18 }
  0x5f   : > { %9968 = vmatmul.mubr.msk.f32.gmra.mrb[8].mxu0 %vm368_vm0, %v764_v19  ;;  %10196 = vmatmul.mubr.msk.f32.gmra.mrb[6].mxu1 %vm368_vm0, %v2824_v20 }
  0x60   : > { %9970 = vmatprep.mubr.msk.f32.mxu0 %vm368_vm0, %v765_v21  ;;  %10198 = vmatprep.mubr.msk.f32.mxu1 %vm368_vm0, %v2825_v22 }
  0x63   : > { %9971 = vmatmul.mubr.msk.f32.gmra.mrb[10].mxu0 %vm368_vm0, %v766_v23  ;;  %10199 = vmatmul.mubr.msk.f32.gmra.mrb[8].mxu1 %vm368_vm0, %v2826_v24 }
  0x64   : > { %9973 = vmatprep.mubr.msk.f32.mxu0 %vm368_vm0, %v767_v25  ;;  %10201 = vmatprep.mubr.msk.f32.mxu1 %vm368_vm0, %v2827_v26 }
  0x67   : > { %9974 = vmatmul.mubr.msk.f32.gmra.mrb[12].mxu0 %vm368_vm0, %v768_v27  ;;  %10202 = vmatmul.mubr.msk.f32.gmra.mrb[10].mxu1 %vm368_vm0, %v2828_v28 }
  0x68   : > { %9976 = vmatprep.mubr.msk.f32.mxu0 %vm368_vm0, %v769_v29  ;;  %10204 = vmatprep.mubr.msk.f32.mxu1 %vm368_vm0, %v2829_v30 }
  0x6b   : > { %9977 = vmatmul.mubr.msk.f32.gmra.mrb[14].mxu0 %vm368_vm0, %v770_v31  ;;  %10205 = vmatmul.mubr.msk.f32.gmra.mrb[12].mxu1 %vm368_vm0, %v2830_v32 }
  0x6c   : > { %9981 = vmatprep.mubr.msk.f32.mxu0 %vm368_vm0, %v11499_v4  ;;  %10207 = vmatprep.mubr.msk.f32.mxu1 %vm368_vm0, %v2831_v33  ;;  %v3282_v4 = vld [vmem:[%s11354_s18 + $0xeb] sm:$0xff] }
  0x6f   : > { %9982 = vmatmul.mubr.msk.f32.vlgmr.msra.gmra.mrb[0].mxu0 %vm368_vm0, %v758_v7  ;;  %10208 = vmatmul.mubr.msk.f32.gmra.mrb[14].mxu1 %vm368_vm0, %v2832_v34  ;;  %v3283_v7 = vld [vmem:[%s11354_s18 + $0xf3] sm:$0xff] }
  0x70   : > { %10006 = vmatpush3.msra.mxu0 %v11505_v6  ;;  %9984 = vmatprep.mubr.msk.f32.mxu0 %vm368_vm0, %v759_v9  ;;  %v3284_v9 = vld [vmem:[%s11354_s18 + $0xfb] sm:$0xff] }
  0x71   : > { %10210 = vmatprep.mubr.msk.f32.mxu1 %vm368_vm0, %v2833_v35  ;;  %10031 = vmatprep.subr.mxu0 %v11583_v36 }
  0x73   : > { %9985 = vmatmul.mubr.msk.f32.gmra.mrb[2].mxu0 %vm368_vm0, %v760_v11  ;;  %10211 = vmatmul.mubr.msk.f32.gmra.mrb[16].mxu1 %vm368_vm0, %v2834_v37  ;;  %v3285_v11 = vld [vmem:[%s11354_s18 + $0x103] sm:$0xff] }
  0x74   : > { %9987 = vmatprep.mubr.msk.f32.mxu0 %vm368_vm0, %v761_v13  ;;  %10215 = vmatprep.mubr.msk.f32.mxu1 %vm368_vm0, %v2821_v14  ;;  %v1439_v13 = vld [vmem:[%s11354_s18 + $0x2c] sm:$0xff] }
  0x75   : > { %v3286_v14 = vld [vmem:[%s11354_s18 + $0x10b] sm:$0xff] }
  0x77   : > { %9988 = vmatmul.mubr.msk.f32.gmra.mrb[4].mxu0 %vm368_vm0, %v762_v15  ;;  %10216 = vmatmul.mubr.msk.f32.vlgmr.msra.gmra.mrb[2].mxu1 %vm368_vm0, %v2822_v16  ;;  %v1440_v15 = vld [vmem:[%s11354_s18 + $0x34] sm:$0xff] }
  0x78   : > { %9990 = vmatprep.mubr.msk.f32.mxu0 %vm368_vm0, %v763_v17  ;;  %10218 = vmatprep.mubr.msk.f32.mxu1 %vm368_vm0, %v2823_v18  ;;  %v11724_v16 = vld [vmem:[%s11354_s18 + $0x94] sm:$0xff]  ;;  %v1441_v17 = vld [vmem:[%s11354_s18 + $0x3c] sm:$0xff] }
  0x79   : > { %10240 = vmatpush3.msra.mxu1 %v11505_v6  ;;  %v11734_v18 = vld [vmem:[%s11354_s18 + $0x9c] sm:$0xff] }
  0x7a   : > { %10265 = vmatprep.subr.mxu1 %v11583_v36 }
  0x7b   : > { %9991 = vmatmul.mubr.msk.f32.gmra.mrb[6].mxu0 %vm368_vm0, %v764_v19  ;;  %10219 = vmatmul.mubr.msk.f32.gmra.mrb[4].mxu1 %vm368_vm0, %v2824_v20  ;;  %v1442_v19 = vld [vmem:[%s11354_s18 + $0x44] sm:$0xff] }
  0x7c   : > { %9993 = vmatprep.mubr.msk.f32.mxu0 %vm368_vm0, %v765_v21  ;;  %10221 = vmatprep.mubr.msk.f32.mxu1 %vm368_vm0, %v2825_v22  ;;  %v3499_v20 = vld [vmem:[%s11354_s18 + $0xa4] sm:$0xff]  ;;  %v1443_v21 = vld [vmem:[%s11354_s18 + $0x4c] sm:$0xff] }
  0x7d   : > { %v3500_v22 = vld [vmem:[%s11354_s18 + $0xac] sm:$0xff] }
  0x7f   : > { %9994 = vmatmul.mubr.msk.f32.gmra.mrb[8].mxu0 %vm368_vm0, %v766_v23  ;;  %10222 = vmatmul.mubr.msk.f32.gmra.mrb[6].mxu1 %vm368_vm0, %v2826_v24  ;;  %v1444_v23 = vld [vmem:[%s11354_s18 + $0x54] sm:$0xff] }
  0x80   : > { %9996 = vmatprep.mubr.msk.f32.mxu0 %vm368_vm0, %v767_v25  ;;  %10224 = vmatprep.mubr.msk.f32.mxu1 %vm368_vm0, %v2827_v26  ;;  %v3501_v24 = vld [vmem:[%s11354_s18 + $0xb4] sm:$0xff]  ;;  %v1445_v25 = vld [vmem:[%s11354_s18 + $0x5c] sm:$0xff] }
  0x81   : > { %v3502_v26 = vld [vmem:[%s11354_s18 + $0xbc] sm:$0xff] }
  0x83   : > { %9997 = vmatmul.mubr.msk.f32.gmra.mrb[10].mxu0 %vm368_vm0, %v768_v27  ;;  %10225 = vmatmul.mubr.msk.f32.gmra.mrb[8].mxu1 %vm368_vm0, %v2828_v28  ;;  %v1446_v27 = vld [vmem:[%s11354_s18 + $0x64] sm:$0xff] }
  0x84   : > { %9999 = vmatprep.mubr.msk.f32.mxu0 %vm368_vm0, %v769_v29  ;;  %10227 = vmatprep.mubr.msk.f32.mxu1 %vm368_vm0, %v2829_v30  ;;  %v3503_v28 = vld [vmem:[%s11354_s18 + $0xc4] sm:$0xff]  ;;  %v1447_v29 = vld [vmem:[%s11354_s18 + $0x6c] sm:$0xff] }
  0x85   : > { %v3504_v30 = vld [vmem:[%s11354_s18 + $0xcc] sm:$0xff] }
  0x87   : > { %10000 = vmatmul.mubr.msk.f32.gmra.mrb[12].mxu0 %vm368_vm0, %v770_v31  ;;  %10228 = vmatmul.mubr.msk.f32.gmra.mrb[10].mxu1 %vm368_vm0, %v2830_v32  ;;  %v1448_v31 = vld [vmem:[%s11354_s18 + $0x74] sm:$0xff] }
  0x88   : > { %10002 = vmatprep.mubr.msk.f32.mxu0 %vm368_vm0, %v11517_v10  ;;  %10230 = vmatprep.mubr.msk.f32.mxu1 %vm368_vm0, %v2831_v33  ;;  %v11706_v10 = vld [vmem:[%s11354_s18 + $0x24] sm:$0xff]  ;;  %v3505_v32 = vld [vmem:[%s11354_s18 + $0xd4] sm:$0xff]  ;;  %v1449_v33 = vld [vmem:[%s11354_s18 + $0x7c] sm:$0xff] }
  0x8b   : > { %10003 = vmatmul.mubr.msk.f32.gmra.mrb[14].mxu0 %vm368_vm0, %v11527_v12  ;;  %10231 = vmatmul.mubr.msk.f32.gmra.mrb[12].mxu1 %vm368_vm0, %v2832_v34  ;;  %v11712_v12 = vld [vmem:[%s12658_s1 + $0x38] sm:$0xff] }
  0x8c   : > { %10007 = vmatprep.mubr.msk.f32.mxu0 %vm368_vm0, %v1209_v38  ;;  %10233 = vmatprep.mubr.msk.f32.mxu1 %vm368_vm0, %v2833_v35  ;;  %v3506_v34 = vld [vmem:[%s11354_s18 + $0xdc] sm:$0xff]  ;;  %v1450_v35 = vld [vmem:[%s11354_s18 + $0x84] sm:$0xff]  ;;  %v1451_v38 = vld [vmem:[%s11354_s18 + $0x8c] sm:$0xff] }
  0x8f   : > { %10008 = vmatmul.mubr.msk.f32.vlgmr.msra.gmra.mrb[0].mxu0 %vm368_vm0, %v1210_v39  ;;  %10234 = vmatmul.mubr.msk.f32.gmra.mrb[14].mxu1 %vm368_vm0, %v2834_v37  ;;  %v3507_v37 = vld [vmem:[%s11354_s18 + $0xe4] sm:$0xff]  ;;  %v3508_v39 = vld [vmem:[%s11354_s18 + $0xec] sm:$0xff] }
  0x90   : > { %10032 = vmatpush3.msra.mxu0 %v11583_v36  ;;  %10010 = vmatprep.mubr.msk.f32.mxu0 %vm368_vm0, %v1211_v40  ;;  %v3509_v40 = vld [vmem:[%s11354_s18 + $0xf4] sm:$0xff] }
  0x91   : > { %10236 = vmatprep.mubr.msk.f32.mxu1 %vm368_vm0, %v11628_v41  ;;  %10057 = vmatprep.subr.mxu0 %v11633_v42 }
  0x93   : > { %10011 = vmatmul.mubr.msk.f32.gmra.mrb[2].mxu0 %vm368_vm0, %v1212_v43  ;;  %10237 = vmatmul.mubr.msk.f32.gmra.mrb[16].mxu1 %vm368_vm0, %v11641_v44  ;;  %v3510_v43 = vld [vmem:[%s11354_s18 + $0xfc] sm:$0xff] }
  0x94   : > { %10013 = vmatprep.mubr.msk.f32.mxu0 %vm368_vm0, %v1213_v45  ;;  %10241 = vmatprep.mubr.msk.f32.mxu1 %vm368_vm0, %v3271_v46  ;;  %v3511_v45 = vld [vmem:[%s11354_s18 + $0x104] sm:$0xff] }
  0x95   : > { %v11790_v46 = vld [vmem:[%s12658_s1 + $0x40] sm:$0xff] }
  0x97   : > { %10014 = vmatmul.mubr.msk.f32.gmra.mrb[4].mxu0 %vm368_vm0, %v1214_v47  ;;  %10242 = vmatmul.mubr.msk.f32.vlgmr.msra.gmra.mrb[2].mxu1 %vm368_vm0, %v3272_v48  ;;  %v3512_v47 = vld [vmem:[%s11354_s18 + $0x10c] sm:$0xff] }
  0x98   : > { %10016 = vmatprep.mubr.msk.f32.mxu0 %vm368_vm0, %v1215_v49  ;;  %10244 = vmatprep.mubr.msk.f32.mxu1 %vm368_vm0, %v3273_v50  ;;  %v1890_v50 = vld [vmem:[%s11354_s18 + $0x25] sm:$0xff] }
  0x99   : > { %10266 = vmatpush3.msra.mxu1 %v11583_v36 }
  0x9a   : > { %10291 = vmatprep.subr.mxu1 %v11633_v42 }
  0x9b   : > { %10017 = vmatmul.mubr.msk.f32.gmra.mrb[6].mxu0 %vm368_vm0, %v1216_v51  ;;  %10245 = vmatmul.mubr.msk.f32.gmra.mrb[4].mxu1 %vm368_vm0, %v3274_v52  ;;  %v1891_v51 = vld [vmem:[%s11354_s18 + $0x2d] sm:$0xff]  ;;  %v1892_v52 = vld [vmem:[%s11354_s18 + $0x35] sm:$0xff] }
  0x9c   : > { %10019 = vmatprep.mubr.msk.f32.mxu0 %vm368_vm0, %v1217_v53  ;;  %10247 = vmatprep.mubr.msk.f32.mxu1 %vm368_vm0, %v3275_v54  ;;  %v11839_v53 = vld [vmem:[%s11354_s18 + $0x114] sm:$0xff]  ;;  %v11844_v54 = vld [vmem:[%s12658_s1 + $0x8] sm:$0xff] }
  0x9f   : > { %10020 = vmatmul.mubr.msk.f32.gmra.mrb[8].mxu0 %vm368_vm0, %v1218_v55  ;;  %10248 = vmatmul.mubr.msk.f32.gmra.mrb[6].mxu1 %vm368_vm0, %v3276_v56  ;;  %v1893_v55 = vld [vmem:[%s11354_s18 + $0x3d] sm:$0xff] }
  0xa0   : > { %10022 = vmatprep.mubr.msk.f32.mxu0 %vm368_vm0, %v1219_v57  ;;  %10250 = vmatprep.mubr.msk.f32.mxu1 %vm368_vm0, %v3277_v58  ;;  %v11852_v56 = vld [vmem:[%s11354_s18 + $0x11c] sm:$0xff]  ;;  %v1894_v57 = vld [vmem:[%s11354_s18 + $0x45] sm:$0xff] }
  0xa1   : > { %v3949_v58 = vld [vmem:[%s11354_s18 + $0xa5] sm:$0xff] }
  0xa3   : > { %10023 = vmatmul.mubr.msk.f32.gmra.mrb[10].mxu0 %vm368_vm0, %v1220_v59  ;;  %10251 = vmatmul.mubr.msk.f32.gmra.mrb[8].mxu1 %vm368_vm0, %v3278_v60  ;;  %v1895_v59 = vld [vmem:[%s11354_s18 + $0x4d] sm:$0xff] }
  0xa4   : > { %10025 = vmatprep.mubr.msk.f32.mxu0 %vm368_vm0, %v1221_v61  ;;  %10253 = vmatprep.mubr.msk.f32.mxu1 %vm368_vm0, %v3279_v62  ;;  %v3950_v60 = vld [vmem:[%s11354_s18 + $0xad] sm:$0xff]  ;;  %v1896_v61 = vld [vmem:[%s11354_s18 + $0x55] sm:$0xff] }
  0xa5   : > { %v3951_v62 = vld [vmem:[%s11354_s18 + $0xb5] sm:$0xff] }
  0xa7   : > { %10026 = vmatmul.mubr.msk.f32.gmra.mrb[12].mxu0 %vm368_vm0, %v1222_v63  ;;  %10254 = vmatmul.mubr.msk.f32.gmra.mrb[10].mxu1 %vm368_vm0, %v3280_v0  ;;  %v1897_v63 = vld [vmem:[%s11354_s18 + $0x5d] sm:$0xff] }
  0xa8   : > { %10028 = vmatprep.mubr.msk.f32.mxu0 %vm368_vm0, %v1223_v1  ;;  %10256 = vmatprep.mubr.msk.f32.mxu1 %vm368_vm0, %v3281_v2  ;;  %v3952_v0 = vld [vmem:[%s11354_s18 + $0xbd] sm:$0xff]  ;;  %v1898_v1 = vld [vmem:[%s11354_s18 + $0x65] sm:$0xff] }
  0xa9   : > { %v3953_v2 = vld [vmem:[%s11354_s18 + $0xc5] sm:$0xff] }
  0xab   : > { %10029 = vmatmul.mubr.msk.f32.gmra.mrb[14].mxu0 %vm368_vm0, %v1224_v3  ;;  %10257 = vmatmul.mubr.msk.f32.gmra.mrb[12].mxu1 %vm368_vm0, %v3282_v4  ;;  %v1899_v3 = vld [vmem:[%s11354_s18 + $0x6d] sm:$0xff] }
  0xac   : > { %10033 = vmatprep.mubr.msk.f32.mxu0 %vm368_vm0, %v1436_v5  ;;  %10259 = vmatprep.mubr.msk.f32.mxu1 %vm368_vm0, %v3283_v7  ;;  %v3954_v4 = vld [vmem:[%s11354_s18 + $0xcd] sm:$0xff]  ;;  %v1900_v5 = vld [vmem:[%s11354_s18 + $0x75] sm:$0xff] }
  0xad   : > { %v3955_v7 = vld [vmem:[%s11354_s18 + $0xd5] sm:$0xff] }
  0xaf   : > { %10034 = vmatmul.mubr.msk.f32.vlgmr.msra.gmra.mrb[0].mxu0 %vm368_vm0, %v1437_v8  ;;  %10260 = vmatmul.mubr.msk.f32.gmra.mrb[14].mxu1 %vm368_vm0, %v3284_v9  ;;  %v1901_v8 = vld [vmem:[%s11354_s18 + $0x7d] sm:$0xff] }
  0xb0   : > { %10058 = vmatpush3.msra.mxu0 %v11633_v42  ;;  %10036 = vmatprep.mubr.msk.f32.mxu0 %vm368_vm0, %v11706_v10  ;;  %v3956_v9 = vld [vmem:[%s11354_s18 + $0xdd] sm:$0xff] }
  0xb1   : > { %10262 = vmatprep.mubr.msk.f32.mxu1 %vm368_vm0, %v3285_v11  ;;  %10083 = vmatprep.subr.mxu0 %v11712_v12  ;;  %v3957_v11 = vld [vmem:[%s11354_s18 + $0xe5] sm:$0xff] }
  0xb3   : > { %10037 = vmatmul.mubr.msk.f32.gmra.mrb[2].mxu0 %vm368_vm0, %v1439_v13  ;;  %10263 = vmatmul.mubr.msk.f32.gmra.mrb[16].mxu1 %vm368_vm0, %v3286_v14  ;;  %v3958_v14 = vld [vmem:[%s11354_s18 + $0xed] sm:$0xff] }
  0xb4   : > { %10039 = vmatprep.mubr.msk.f32.mxu0 %vm368_vm0, %v1440_v15  ;;  %10267 = vmatprep.mubr.msk.f32.mxu1 %vm368_vm0, %v11724_v16 }
  0xb7   : > { %10040 = vmatmul.mubr.msk.f32.gmra.mrb[4].mxu0 %vm368_vm0, %v1441_v17  ;;  %10268 = vmatmul.mubr.msk.f32.vlgmr.msra.gmra.mrb[2].mxu1 %vm368_vm0, %v11734_v18 }
  0xb8   : > { %10042 = vmatprep.mubr.msk.f32.mxu0 %vm368_vm0, %v1442_v19  ;;  %10270 = vmatprep.mubr.msk.f32.mxu1 %vm368_vm0, %v3499_v20 }
  0xb9   : > { %10292 = vmatpush3.msra.mxu1 %v11633_v42 }
  0xba   : > { %10317 = vmatprep.subr.mxu1 %v11712_v12 }
  0xbb   : > { %10043 = vmatmul.mubr.msk.f32.gmra.mrb[6].mxu0 %vm368_vm0, %v1443_v21  ;;  %10271 = vmatmul.mubr.msk.f32.gmra.mrb[4].mxu1 %vm368_vm0, %v3500_v22 }
  0xbc   : > { %10045 = vmatprep.mubr.msk.f32.mxu0 %vm368_vm0, %v1444_v23  ;;  %10273 = vmatprep.mubr.msk.f32.mxu1 %vm368_vm0, %v3501_v24 }
  0xbf   : > { %10046 = vmatmul.mubr.msk.f32.gmra.mrb[8].mxu0 %vm368_vm0, %v1445_v25  ;;  %10274 = vmatmul.mubr.msk.f32.gmra.mrb[6].mxu1 %vm368_vm0, %v3502_v26 }
  0xc0   : > { %10048 = vmatprep.mubr.msk.f32.mxu0 %vm368_vm0, %v1446_v27  ;;  %10276 = vmatprep.mubr.msk.f32.mxu1 %vm368_vm0, %v3503_v28 }
  0xc3   : > { %10049 = vmatmul.mubr.msk.f32.gmra.mrb[10].mxu0 %vm368_vm0, %v1447_v29  ;;  %10277 = vmatmul.mubr.msk.f32.gmra.mrb[8].mxu1 %vm368_vm0, %v3504_v30 }
  0xc4   : > { %10051 = vmatprep.mubr.msk.f32.mxu0 %vm368_vm0, %v1448_v31  ;;  %10279 = vmatprep.mubr.msk.f32.mxu1 %vm368_vm0, %v3505_v32 }
  0xc7   : > { %10052 = vmatmul.mubr.msk.f32.gmra.mrb[12].mxu0 %vm368_vm0, %v1449_v33  ;;  %10280 = vmatmul.mubr.msk.f32.gmra.mrb[10].mxu1 %vm368_vm0, %v3506_v34 }
  0xc8   : > { %10054 = vmatprep.mubr.msk.f32.mxu0 %vm368_vm0, %v1450_v35  ;;  %10282 = vmatprep.mubr.msk.f32.mxu1 %vm368_vm0, %v3507_v37 }
  0xcb   : > { %10055 = vmatmul.mubr.msk.f32.gmra.mrb[14].mxu0 %vm368_vm0, %v1451_v38  ;;  %10283 = vmatmul.mubr.msk.f32.gmra.mrb[12].mxu1 %vm368_vm0, %v3508_v39 }
  0xcc   : > { %10059 = vmatprep.mubr.msk.f32.mxu0 %vm368_vm0, %v11706_v10  ;;  %10285 = vmatprep.mubr.msk.f32.mxu1 %vm368_vm0, %v3509_v40  ;;  %v1902_v10 = vld [vmem:[%s11354_s18 + $0x85] sm:$0xff] }
  0xcf   : > { %10060 = vmatmul.mubr.msk.f32.vlgmr.msra.gmra.mrb[0].mxu0 %vm368_vm0, %v1439_v13  ;;  %10286 = vmatmul.mubr.msk.f32.gmra.mrb[14].mxu1 %vm368_vm0, %v3510_v43  ;;  %v1903_v13 = vld [vmem:[%s11354_s18 + $0x8d] sm:$0xff] }
  0xd0   : > { %10084 = vmatpush3.msra.mxu0 %v11712_v12  ;;  %10062 = vmatprep.mubr.msk.f32.mxu0 %vm368_vm0, %v1440_v15  ;;  %v1904_v15 = vld [vmem:[%s11354_s18 + $0x95] sm:$0xff] }
  0xd1   : > { %10288 = vmatprep.mubr.msk.f32.mxu1 %vm368_vm0, %v3511_v45  ;;  %10109 = vmatprep.subr.mxu0 %v11790_v46 }
  0xd3   : > { %10063 = vmatmul.mubr.msk.f32.gmra.mrb[2].mxu0 %vm368_vm0, %v1441_v17  ;;  %10289 = vmatmul.mubr.msk.f32.gmra.mrb[16].mxu1 %vm368_vm0, %v3512_v47  ;;  %v1905_v17 = vld [vmem:[%s11354_s18 + $0x9d] sm:$0xff] }
  0xd4   : > { %10065 = vmatprep.mubr.msk.f32.mxu0 %vm368_vm0, %v1442_v19  ;;  %10293 = vmatprep.mubr.msk.f32.mxu1 %vm368_vm0, %v3499_v20  ;;  %v2117_v19 = vld [vmem:[%s11354_s18 + $0x26] sm:$0xff] }
  0xd5   : > { %v3961_v20 = vld [vmem:[%s11354_s18 + $0x105] sm:$0xff] }
  0xd7   : > { %10066 = vmatmul.mubr.msk.f32.gmra.mrb[4].mxu0 %vm368_vm0, %v1443_v21  ;;  %10294 = vmatmul.mubr.msk.f32.vlgmr.msra.gmra.mrb[2].mxu1 %vm368_vm0, %v3500_v22  ;;  %v2118_v21 = vld [vmem:[%s11354_s18 + $0x2e] sm:$0xff] }
  0xd8   : > { %10068 = vmatprep.mubr.msk.f32.mxu0 %vm368_vm0, %v1444_v23  ;;  %10296 = vmatprep.mubr.msk.f32.mxu1 %vm368_vm0, %v3501_v24  ;;  %v3962_v22 = vld [vmem:[%s11354_s18 + $0x10d] sm:$0xff]  ;;  %v2119_v23 = vld [vmem:[%s11354_s18 + $0x36] sm:$0xff] }
  0xd9   : > { %10318 = vmatpush3.msra.mxu1 %v11712_v12  ;;  %v3963_v24 = vld [vmem:[%s11354_s18 + $0x115] sm:$0xff] }
  0xda   : > { %10343 = vmatprep.subr.mxu1 %v11790_v46 }
  0xdb   : > { %10069 = vmatmul.mubr.msk.f32.gmra.mrb[6].mxu0 %vm368_vm0, %v1445_v25  ;;  %10297 = vmatmul.mubr.msk.f32.gmra.mrb[4].mxu1 %vm368_vm0, %v3502_v26  ;;  %v11920_v25 = vld [vmem:[%s12658_s1] sm:$0xff] }
  0xdc   : > { %10071 = vmatprep.mubr.msk.f32.mxu0 %vm368_vm0, %v1446_v27  ;;  %10299 = vmatprep.mubr.msk.f32.mxu1 %vm368_vm0, %v3503_v28  ;;  %v2120_v26 = vld [vmem:[%s11354_s18 + $0x3e] sm:$0xff]  ;;  %v2121_v28 = vld [vmem:[%s11354_s18 + $0x46] sm:$0xff] }
  0xdd   : > { %v3964_v27 = vld [vmem:[%s11354_s18 + $0x11d] sm:$0xff] }
  0xdf   : > { %10072 = vmatmul.mubr.msk.f32.gmra.mrb[8].mxu0 %vm368_vm0, %v1447_v29  ;;  %10300 = vmatmul.mubr.msk.f32.gmra.mrb[6].mxu1 %vm368_vm0, %v3504_v30  ;;  %v4175_v29 = vld [vmem:[%s11354_s18 + $0xa6] sm:$0xff]  ;;  %v2122_v30 = vld [vmem:[%s11354_s18 + $0x4e] sm:$0xff] }
  0xe0   : > { %10074 = vmatprep.mubr.msk.f32.mxu0 %vm368_vm0, %v1448_v31  ;;  %10302 = vmatprep.mubr.msk.f32.mxu1 %vm368_vm0, %v3505_v32  ;;  %v4176_v31 = vld [vmem:[%s11354_s18 + $0xae] sm:$0xff]  ;;  %v2123_v32 = vld [vmem:[%s11354_s18 + $0x56] sm:$0xff] }
  0xe3   : > { %10075 = vmatmul.mubr.msk.f32.gmra.mrb[10].mxu0 %vm368_vm0, %v1449_v33  ;;  %10303 = vmatmul.mubr.msk.f32.gmra.mrb[8].mxu1 %vm368_vm0, %v3506_v34  ;;  %v4177_v33 = vld [vmem:[%s11354_s18 + $0xb6] sm:$0xff]  ;;  %v2124_v34 = vld [vmem:[%s11354_s18 + $0x5e] sm:$0xff] }
  0xe4   : > { %10077 = vmatprep.mubr.msk.f32.mxu0 %vm368_vm0, %v1450_v35  ;;  %10305 = vmatprep.mubr.msk.f32.mxu1 %vm368_vm0, %v3507_v37  ;;  %v4178_v35 = vld [vmem:[%s11354_s18 + $0xbe] sm:$0xff]  ;;  %v2125_v37 = vld [vmem:[%s11354_s18 + $0x66] sm:$0xff] }
  0xe6   : > { %v11821_v48 = vpop.f32.mrb[0].mxu1 }
  0xe7   : > { %10078 = vmatmul.mubr.msk.f32.gmra.mrb[12].mxu0 %vm368_vm0, %v1451_v38  ;;  %10306 = vmatmul.mubr.msk.f32.gmra.mrb[10].mxu1 %vm368_vm0, %v3508_v39  ;;  %v11825_v49 = vpop.f32.mrb[1].mxu1  ;;  %v4179_v38 = vld [vmem:[%s11354_s18 + $0xc6] sm:$0xff]  ;;  %v2126_v39 = vld [vmem:[%s11354_s18 + $0x6e] sm:$0xff] }
  0xe8   : > { %10080 = vmatprep.mubr.msk.f32.mxu0 %vm368_vm0, %v11724_v16  ;;  %10308 = vmatprep.mubr.msk.f32.mxu1 %vm368_vm0, %v3509_v40  ;;  %v3959_v16 = vld [vmem:[%s11354_s18 + $0xf5] sm:$0xff] }
  0xe9   : > { %v4180_v40 = vld [vmem:[%s11354_s18 + $0xce] sm:$0xff] }
  0xeb   : > { %10081 = vmatmul.mubr.msk.f32.gmra.mrb[14].mxu0 %vm368_vm0, %v11734_v18  ;;  %10309 = vmatmul.mubr.msk.f32.gmra.mrb[12].mxu1 %vm368_vm0, %v3510_v43  ;;  %v3960_v18 = vld [vmem:[%s11354_s18 + $0xfd] sm:$0xff] }
  0xec   : > { %10085 = vmatprep.mubr.msk.f32.mxu0 %vm368_vm0, %v1890_v50  ;;  %10311 = vmatprep.mubr.msk.f32.mxu1 %vm368_vm0, %v3511_v45  ;;  %v2127_v43 = vld [vmem:[%s11354_s18 + $0x76] sm:$0xff]  ;;  %v4182_v50 = vld [vmem:[%s11354_s18 + $0xde] sm:$0xff] }
  0xed   : > { %v4181_v45 = vld [vmem:[%s11354_s18 + $0xd6] sm:$0xff] }
  0xef   : > { %10086 = vmatmul.mubr.msk.f32.vlgmr.msra.gmra.mrb[0].mxu0 %vm368_vm0, %v1891_v51  ;;  %10312 = vmatmul.mubr.msk.f32.gmra.mrb[14].mxu1 %vm368_vm0, %v3512_v47  ;;  %v2128_v47 = vld [vmem:[%s11354_s18 + $0x7e] sm:$0xff]  ;;  %v2129_v51 = vld [vmem:[%s11354_s18 + $0x86] sm:$0xff] }
  0xf0   : > { %10110 = vmatpush3.msra.mxu0 %v11790_v46  ;;  %10088 = vmatprep.mubr.msk.f32.mxu0 %vm368_vm0, %v1892_v52  ;;  %v4183_v52 = vld [vmem:[%s11354_s18 + $0xe6] sm:$0xff] }
  0xf1   : > { %10314 = vmatprep.mubr.msk.f32.mxu1 %vm368_vm0, %v11839_v53  ;;  %10369 = vmatprep.subr.mxu0 %v11844_v54 }
  0xf3   : > { %10089 = vmatmul.mubr.msk.f32.gmra.mrb[2].mxu0 %vm368_vm0, %v1893_v55  ;;  %10315 = vmatmul.mubr.msk.f32.gmra.mrb[16].mxu1 %vm368_vm0, %v11852_v56  ;;  %v4184_v55 = vld [vmem:[%s11354_s18 + $0xee] sm:$0xff] }
  0xf4   : > { %10091 = vmatprep.mubr.msk.f32.mxu0 %vm368_vm0, %v1894_v57  ;;  %10319 = vmatprep.mubr.msk.f32.mxu1 %vm368_vm0, %v3949_v58  ;;  %v2131_v57 = vld [vmem:[%s11354_s18 + $0x96] sm:$0xff] }
  0xf5   : > { %v4185_v58 = vld [vmem:[%s11354_s18 + $0xf6] sm:$0xff] }
  0xf7   : > { %10092 = vmatmul.mubr.msk.f32.gmra.mrb[4].mxu0 %vm368_vm0, %v1895_v59  ;;  %10320 = vmatmul.mubr.msk.f32.vlgmr.msra.gmra.mrb[2].mxu1 %vm368_vm0, %v3950_v60  ;;  %v2132_v59 = vld [vmem:[%s11354_s18 + $0x9e] sm:$0xff] }
  0xf8   : > { %10094 = vmatprep.mubr.msk.f32.mxu0 %vm368_vm0, %v1896_v61  ;;  %10322 = vmatprep.mubr.msk.f32.mxu1 %vm368_vm0, %v3951_v62  ;;  %v4186_v60 = vld [vmem:[%s11354_s18 + $0xfe] sm:$0xff]  ;;  %v4187_v61 = vld [vmem:[%s11354_s18 + $0x106] sm:$0xff] }
  0xf9   : > { %10344 = vmatpush3.msra.mxu1 %v11790_v46  ;;  %v4461_v62 = vld [vmem:[%s11354_s18 + $0x101] sm:$0xff] }
  0xfb   : > { %10095 = vmatmul.mubr.msk.f32.gmra.mrb[6].mxu0 %vm368_vm0, %v1897_v63  ;;  %10323 = vmatmul.mubr.msk.f32.gmra.mrb[4].mxu1 %vm368_vm0, %v3952_v0  ;;  %v4188_v63 = vld [vmem:[%s11354_s18 + $0x10e] sm:$0xff] }
  0xfc   : > { %10097 = vmatprep.mubr.msk.f32.mxu0 %vm368_vm0, %v1898_v1  ;;  %10325 = vmatprep.mubr.msk.f32.mxu1 %vm368_vm0, %v3953_v2  ;;  %v4462_v0 = vld [vmem:[%s11354_s18 + $0x109] sm:$0xff]  ;;  %v4189_v1 = vld [vmem:[%s11354_s18 + $0x116] sm:$0xff] }
  0xfd   : > { %v4463_v2 = vld [vmem:[%s11354_s18 + $0x111] sm:$0xff] }
  0xff   : > { %10098 = vmatmul.mubr.msk.f32.gmra.mrb[8].mxu0 %vm368_vm0, %v1899_v3  ;;  %10326 = vmatmul.mubr.msk.f32.gmra.mrb[6].mxu1 %vm368_vm0, %v3954_v4  ;;  %v9136_v3 = vld [vmem:[%s12658_s1 + $0x10] sm:$0xff]  ;;  %v4190_v4 = vld [vmem:[%s11354_s18 + $0x11e] sm:$0xff] }
 0x100   : > { %10100 = vmatprep.mubr.msk.f32.mxu0 %vm368_vm0, %v1900_v5  ;;  %10328 = vmatprep.mubr.msk.f32.mxu1 %vm368_vm0, %v3955_v7  ;;  %v4464_v5 = vld [vmem:[%s11354_s18 + $0x119] sm:$0xff] }
 0x101   : > { %v4456_v7 = vld [vmem:[%s11354_s18 + $0x100] sm:$0xff] }
 0x103   : > { %10101 = vmatmul.mubr.msk.f32.gmra.mrb[10].mxu0 %vm368_vm0, %v1901_v8  ;;  %10329 = vmatmul.mubr.msk.f32.gmra.mrb[8].mxu1 %vm368_vm0, %v3956_v9  ;;  %v4457_v8 = vld [vmem:[%s11354_s18 + $0x108] sm:$0xff]  ;;  %v4458_v9 = vld [vmem:[%s11354_s18 + $0x110] sm:$0xff] }
 0x104   : > { %10103 = vmatprep.mubr.msk.f32.mxu0 %vm368_vm0, %v1902_v10  ;;  %10331 = vmatprep.mubr.msk.f32.mxu1 %vm368_vm0, %v3957_v11  ;;  %v9141_v10 = vld [vmem:[%s12658_s1 + $0x18] sm:$0xff] }
 0x105   : > { %v4459_v11 = vld [vmem:[%s11354_s18 + $0x118] sm:$0xff] }
 0x107   : > { %10104 = vmatmul.mubr.msk.f32.gmra.mrb[12].mxu0 %vm368_vm0, %v1903_v13  ;;  %10332 = vmatmul.mubr.msk.f32.gmra.mrb[10].mxu1 %vm368_vm0, %v3958_v14  ;;  %v4662_v13 = vld [vmem:[%s11354_s18 + $0x112] sm:$0xff]  ;;  %v4663_v14 = vld [vmem:[%s11354_s18 + $0x11a] sm:$0xff] }
 0x108   : > { %10106 = vmatprep.mubr.msk.f32.mxu0 %vm368_vm0, %v1904_v15  ;;  %10334 = vmatprep.mubr.msk.f32.mxu1 %vm368_vm0, %v3959_v16  ;;  %v4768_v15 = vld [vmem:[%s11354_s18 + $0x122] sm:$0xff] }
 0x109   : > { %v4873_v16 = vld [vmem:[%s11354_s18 + $0x11b] sm:$0xff] }
 0x10b   : > { %10107 = vmatmul.mubr.msk.f32.gmra.mrb[14].mxu0 %vm368_vm0, %v1905_v17  ;;  %10335 = vmatmul.mubr.msk.f32.gmra.mrb[12].mxu1 %vm368_vm0, %v3960_v18  ;;  %v4874_v17 = vld [vmem:[%s11354_s18 + $0x123] sm:$0xff] }
 0x10c   : > { %10111 = vmatprep.mubr.msk.f32.mxu0 %vm368_vm0, %v2117_v19  ;;  %10337 = vmatprep.mubr.msk.f32.mxu1 %vm368_vm0, %v3961_v20  ;;  %v4980_v18 = vld [vmem:[%s11354_s18 + $0x124] sm:$0xff]  ;;  %v5191_v19 = vld [vmem:[%s11354_s18 + $0x12d] sm:$0xff]  ;;  %v5192_v20 = vld [vmem:[%s11354_s18 + $0x135] sm:$0xff] }
 0x10f   : > { %10112 = vmatmul.mubr.msk.f32.vlgmr.msra.gmra.mrb[0].mxu0 %vm368_vm0, %v2118_v21  ;;  %10338 = vmatmul.mubr.msk.f32.gmra.mrb[14].mxu1 %vm368_vm0, %v3962_v22  ;;  %v5296_v21 = vld [vmem:[%s11354_s18 + $0x126] sm:$0xff]  ;;  %v5297_v22 = vld [vmem:[%s11354_s18 + $0x12e] sm:$0xff] }
 0x110   : > { %10370 = vmatpush3.msra.mxu0 %v11844_v54  ;;  %10114 = vmatprep.mubr.msk.f32.mxu0 %vm368_vm0, %v2119_v23  ;;  %v2130_v54 = vld [vmem:[%s11354_s18 + $0x8e] sm:$0xff]  ;;  %v5298_v23 = vld [vmem:[%s11354_s18 + $0x136] sm:$0xff] }
 0x111   : > { %10340 = vmatprep.mubr.msk.f32.mxu1 %vm368_vm0, %v3963_v24  ;;  %10377 = vmatprep.subr.mxu0 %v11920_v25  ;;  %v5299_v24 = vld [vmem:[%s11354_s18 + $0x13e] sm:$0xff] }
 0x113   : > { %10115 = vmatmul.mubr.msk.f32.gmra.mrb[2].mxu0 %vm368_vm0, %v2120_v26  ;;  %10341 = vmatmul.mubr.msk.f32.gmra.mrb[16].mxu1 %vm368_vm0, %v3964_v27  ;;  %v12106_v27 = vld [vmem:[%s12660_s3] sm:$0xff] }
 0x114   : > { %10117 = vmatprep.mubr.msk.f32.mxu0 %vm368_vm0, %v2121_v28  ;;  %10345 = vmatprep.mubr.msk.f32.mxu1 %vm368_vm0, %v4175_v29  ;;  %v12112_v28 = vld [vmem:[%s12659_s2] ss:$0 sm:$0xff] }
 0x117   : > { %10118 = vmatmul.mubr.msk.f32.gmra.mrb[4].mxu0 %vm368_vm0, %v2122_v30  ;;  %10346 = vmatmul.mubr.msk.f32.vlgmr.msra.gmra.mrb[2].mxu1 %vm368_vm0, %v4176_v31 }
 0x118   : > { %10120 = vmatprep.mubr.msk.f32.mxu0 %vm368_vm0, %v2123_v32  ;;  %10348 = vmatprep.mubr.msk.f32.mxu1 %vm368_vm0, %v4177_v33 }
 0x11b   : > { %10121 = vmatmul.mubr.msk.f32.gmra.mrb[6].mxu0 %vm368_vm0, %v2124_v34  ;;  %10349 = vmatmul.mubr.msk.f32.gmra.mrb[4].mxu1 %vm368_vm0, %v4178_v35 }
 0x11c   : > { %10123 = vmatprep.mubr.msk.f32.mxu0 %vm368_vm0, %v2125_v37  ;;  %10351 = vmatprep.mubr.msk.f32.mxu1 %vm368_vm0, %v4179_v38 }
 0x11f   : > { %10124 = vmatmul.mubr.msk.f32.gmra.mrb[8].mxu0 %vm368_vm0, %v2126_v39  ;;  %10352 = vmatmul.mubr.msk.f32.gmra.mrb[6].mxu1 %vm368_vm0, %v4180_v40 }
 0x120   : > { %10126 = vmatprep.mubr.msk.f32.mxu0 %vm368_vm0, %v2127_v43  ;;  %10354 = vmatprep.mubr.msk.f32.mxu1 %vm368_vm0, %v4181_v45 }
 0x123   : > { %10127 = vmatmul.mubr.msk.f32.gmra.mrb[10].mxu0 %vm368_vm0, %v2128_v47  ;;  %10355 = vmatmul.mubr.msk.f32.gmra.mrb[8].mxu1 %vm368_vm0, %v4182_v50 }
 0x124   : > { %10129 = vmatprep.mubr.msk.f32.mxu0 %vm368_vm0, %v2129_v51  ;;  %10357 = vmatprep.mubr.msk.f32.mxu1 %vm368_vm0, %v4183_v52 }
 0x127   : > { %10130 = vmatmul.mubr.msk.f32.gmra.mrb[12].mxu0 %vm368_vm0, %v2130_v54  ;;  %10358 = vmatmul.mubr.msk.f32.gmra.mrb[10].mxu1 %vm368_vm0, %v4184_v55 }
 0x128   : > { %10132 = vmatprep.mubr.msk.f32.mxu0 %vm368_vm0, %v2131_v57  ;;  %10360 = vmatprep.mubr.msk.f32.mxu1 %vm368_vm0, %v4185_v58 }
 0x12b   : > { %10133 = vmatmul.mubr.msk.f32.gmra.mrb[14].mxu0 %vm368_vm0, %v2132_v59  ;;  %10361 = vmatmul.mubr.msk.f32.gmra.mrb[12].mxu1 %vm368_vm0, %v4186_v60 }
 0x12c   : > { %10363 = vmatprep.mubr.msk.f32.mxu1 %vm368_vm0, %v4187_v61  ;;  %10371 = vmatprep.mubr.msk.f32.mxu0 %vm368_vm0, %v4461_v62 }
 0x12f   : > { %10364 = vmatmul.mubr.msk.f32.gmra.mrb[14].mxu1 %vm368_vm0, %v4188_v63  ;;  %10372 = vmatmul.mubr.msk.f32.vlgmr.msra.gmra.mrb[16].mxu0 %vm368_vm0, %v4462_v0 }
 0x130   : > { %10378 = vmatpush3.msra.mxu0 %v11920_v25  ;;  %10366 = vmatprep.mubr.msk.f32.mxu1 %vm368_vm0, %v4189_v1  ;;  %v11281_v25 = vmov 0.0  }
 0x131   : > { %10374 = vmatprep.mubr.msk.f32.mxu0 %vm368_vm0, %v4463_v2  ;;  %10385 = vmatprep.subr.mxu0 %v9136_v3  ;;  %5421 = vst.msk [vmem:[#allocation3] sm:$0xff] %vm368_vm0, %v11281_v25  ;;  %5422 = vst.msk [vmem:[#allocation3 + $0x8] sm:$0xff] %vm368_vm0, %v11281_v25 }
 0x132   : > { %5423 = vst.msk [vmem:[#allocation3 + $0x10] sm:$0xff] %vm368_vm0, %v11281_v25  ;;  %5424 = vst.msk [vmem:[#allocation3 + $0x18] sm:$0xff] %vm368_vm0, %v11281_v25 }
 0x133   : > { %10367 = vmatmul.mubr.msk.f32.gmra.mrb[16].mxu1 %vm368_vm0, %v4190_v4  ;;  %10375 = vmatmul.mubr.msk.f32.gmra.mrb[18].mxu0 %vm368_vm0, %v4464_v5  ;;  %5425 = vst.msk [vmem:[#allocation3 + $0x20] sm:$0xff] %vm368_vm0, %v11281_v25  ;;  %5426 = vst.msk [vmem:[#allocation3 + $0x28] sm:$0xff] %vm368_vm0, %v11281_v25 }
 0x134   : > { %10379 = vmatprep.mubr.msk.f32.mxu0 %vm368_vm0, %v4456_v7  ;;  %5427 = vst.msk [vmem:[#allocation3 + $0x30] sm:$0xff] %vm368_vm0, %v11281_v25  ;;  %5428 = vst.msk [vmem:[#allocation3 + $0x38] sm:$0xff] %vm368_vm0, %v11281_v25 }
 0x135   : > { %5429 = vst.msk [vmem:[#allocation3 + $0x40] sm:$0xff] %vm368_vm0, %v11281_v25  ;;  %5430 = vst.msk [vmem:[#allocation3 + $0x48] sm:$0xff] %vm368_vm0, %v11281_v25 }
 0x136   : > { %5431 = vst.msk [vmem:[#allocation3 + $0x50] sm:$0xff] %vm368_vm0, %v11281_v25  ;;  %5432 = vst.msk [vmem:[#allocation3 + $0x58] sm:$0xff] %vm368_vm0, %v11281_v25 }
 0x137   : > { %10380 = vmatmul.mubr.msk.f32.vlgmr.msra.gmra.mrb[16].mxu0 %vm368_vm0, %v4457_v8  ;;  %5433 = vst.msk [vmem:[#allocation3 + $0x60] sm:$0xff] %vm368_vm0, %v11281_v25 }
 0x138   : > { %10386 = vmatpush3.msra.mxu0 %v9136_v3  ;;  %10382 = vmatprep.mubr.msk.f32.mxu0 %vm368_vm0, %v4458_v9  ;;  %v5542_v26 = vld [vmem:[#allocation3 + $0x1] sm:$0xff]  ;;  %7051 = vst.msk [vmem:[#allocation5] sm:$0xff] %vm7040_vm1, %v11281_v25  ;;  %7052 = vst.msk [vmem:[#allocation5 + $0x8] sm:$0xff] %vm7040_vm1, %v11281_v25 }
 0x139   : > { %10393 = vmatprep.subr.mxu0 %v9141_v10  ;;  %10443 = vmatprep.mubr.msk.f32.mxu1 %vm368_vm0, %v5542_v26  ;;  %7053 = vst.msk [vmem:[#allocation5 + $0x10] sm:$0xff] %vm7040_vm1, %v11281_v25  ;;  %7054 = vst.msk [vmem:[#allocation5 + $0x18] sm:$0xff] %vm7040_vm1, %v11281_v25 }
 0x13a   : > { %7055 = vst.msk [vmem:[#allocation5 + $0x20] sm:$0xff] %vm7040_vm1, %v11281_v25 }
 0x13b   : > { %10383 = vmatmul.mubr.msk.f32.gmra.mrb[18].mxu0 %vm368_vm0, %v4459_v11  ;;  %7998 = vst.msk [vmem:[#allocation7] sm:$0xff] %vm7994_vm4, %v11281_v25  ;;  %7999 = vst.msk [vmem:[#allocation7 + $0x8] sm:$0xff] %vm7994_vm4, %v11281_v25 }
 0x13c   : > { %10387 = vmatprep.mubr.msk.f32.mxu0 %vm368_vm0, %v11628_v41  ;;  %v4769_v41 = vld [vmem:[%s11354_s18 + $0x12a] sm:$0xff]  ;;  %8001 = vst.msk [vmem:[#allocation7 + $0x10] sm:$0xf] %vm8000_vm5, %v11281_v25 }
 0x13f   : > { %10388 = vmatmul.mubr.msk.f32.vlgmr.msra.gmra.mrb[16].mxu0 %vm368_vm0, %v11641_v44  ;;  %v4872_v44 = vld [vmem:[%s11354_s18 + $0x113] sm:$0xff] }
 0x140   : > { %10394 = vmatpush3.msra.mxu0 %v9141_v10  ;;  %10390 = vmatprep.mubr.msk.f32.mxu0 %vm368_vm0, %v4662_v13 }
 0x141   : > { %10401 = vmatprep.subr.mxu0 %v11505_v6 }
 0x143   : > { %10391 = vmatmul.mubr.msk.f32.gmra.mrb[18].mxu0 %vm368_vm0, %v4663_v14 }
 0x144   : > { %10395 = vmatprep.mubr.msk.f32.mxu0 %vm368_vm0, %v4662_v13 }
 0x147   : > { %10396 = vmatmul.mubr.msk.f32.vlgmr.msra.gmra.mrb[16].mxu0 %vm368_vm0, %v4663_v14 }
 0x148   : > { %10402 = vmatpush3.msra.mxu0 %v11505_v6  ;;  %10398 = vmatprep.mubr.msk.f32.mxu0 %vm368_vm0, %v4768_v15  ;;  %v4875_v6 = vld [vmem:[%s11354_s18 + $0x12b] sm:$0xff] }
 0x149   : > { %10409 = vmatprep.subr.mxu0 %v11583_v36 }
 0x14b   : > { %10399 = vmatmul.mubr.msk.f32.gmra.mrb[18].mxu0 %vm368_vm0, %v4769_v41 }
 0x14c   : > { %10403 = vmatprep.mubr.msk.f32.mxu0 %vm368_vm0, %v4872_v44 }
 0x14f   : > { %10404 = vmatmul.mubr.msk.f32.vlgmr.msra.gmra.mrb[16].mxu0 %vm368_vm0, %v4873_v16 }
 0x150   : > { %10410 = vmatpush3.msra.mxu0 %v11583_v36  ;;  %10406 = vmatprep.mubr.msk.f32.mxu0 %vm368_vm0, %v4874_v17  ;;  %v4981_v36 = vld [vmem:[%s11354_s18 + $0x12c] sm:$0xff] }
 0x151   : > { %10417 = vmatprep.subr.mxu0 %v11633_v42 }
 0x153   : > { %10407 = vmatmul.mubr.msk.f32.gmra.mrb[18].mxu0 %vm368_vm0, %v4875_v6 }
 0x154   : > { %10411 = vmatprep.mubr.msk.f32.mxu0 %vm368_vm0, %v11839_v53  ;;  %v5086_v53 = vld [vmem:[%s11354_s18 + $0x134] sm:$0xff] }
 0x157   : > { %10412 = vmatmul.mubr.msk.f32.vlgmr.msra.gmra.mrb[16].mxu0 %vm368_vm0, %v11852_v56  ;;  %v5190_v56 = vld [vmem:[%s11354_s18 + $0x125] sm:$0xff] }
 0x158   : > { %10418 = vmatpush3.msra.mxu0 %v11633_v42  ;;  %10414 = vmatprep.mubr.msk.f32.mxu0 %vm368_vm0, %v4980_v18  ;;  %v5087_v42 = vld [vmem:[%s11354_s18 + $0x13c] sm:$0xff] }
 0x159   : > { %10425 = vmatprep.subr.mxu0 %v11712_v12 }
 0x15b   : > { %10415 = vmatmul.mubr.msk.f32.gmra.mrb[18].mxu0 %vm368_vm0, %v4981_v36 }
 0x15c   : > { %10419 = vmatprep.mubr.msk.f32.mxu0 %vm368_vm0, %v4980_v18 }
 0x15f   : > { %10420 = vmatmul.mubr.msk.f32.vlgmr.msra.gmra.mrb[16].mxu0 %vm368_vm0, %v4981_v36 }
 0x160   : > { %10426 = vmatpush3.msra.mxu0 %v11712_v12  ;;  %10422 = vmatprep.mubr.msk.f32.mxu0 %vm368_vm0, %v5086_v53  ;;  %v5193_v12 = vld [vmem:[%s11354_s18 + $0x13d] sm:$0xff] }
 0x161   : > { %10433 = vmatprep.subr.mxu0 %v11790_v46 }
 0x163   : > { %10423 = vmatmul.mubr.msk.f32.gmra.mrb[18].mxu0 %vm368_vm0, %v5087_v42 }
 0x164   : > { %10427 = vmatprep.mubr.msk.f32.mxu0 %vm368_vm0, %v5190_v56 }
 0x167   : > { %10428 = vmatmul.mubr.msk.f32.vlgmr.msra.gmra.mrb[16].mxu0 %vm368_vm0, %v5191_v19 }
 0x168   : > { %10434 = vmatpush3.msra.mxu0 %v11790_v46  ;;  %10430 = vmatprep.mubr.msk.f32.mxu0 %vm368_vm0, %v5192_v20  ;;  %v9172_v46 = vld [vmem:[%s12660_s3 + $0x8] sm:$0xff] }
 0x169   : > { %10441 = vmatprep.subr.mxu1 %v9172_v46 }
 0x16a   : > { %10442 = vmatpush3.msra.mxu1 %v9172_v46 }
 0x16b   : > { %10431 = vmatmul.mubr.msk.f32.gmra.mrb[18].mxu0 %vm368_vm0, %v5193_v12  ;;  %10458 = vmatprep.subr.mxu1 %v12106_v27 }
 0x16c   : > { %10435 = vmatprep.mubr.msk.f32.mxu0 %vm368_vm0, %v5296_v21 }
 0x16f   : > { %10436 = vmatmul.mubr.msk.f32.vlgmr.msra.gmra.mrb[16].mxu0 %vm368_vm0, %v5297_v22 }
 0x170   : > { %10438 = vmatprep.mubr.msk.f32.mxu0 %vm368_vm0, %v5298_v23 }
 0x173   : > { %10439 = vmatmul.mubr.msk.f32.gmra.mrb[18].mxu0 %vm368_vm0, %v5299_v24 }
 0x174   : > { %10598 = vmatprep.mubr.msk.f32.mxu0 %vm11283_vm2, %v11281_v25 }
 0x1e2   : > { %v10113_v29 = vpop.f32.mrb[0].mxu0 }
 0x1e3   : > { %v2352_v30 = vadd.f32 %v10113_v29, %v12112_v28  ;;  %v2249_v31 = vpop.f32.mrb[1].mxu0 }
 0x1e4   : > { %v2351_v32 = vadd.f32 %v12112_v28, %v2249_v31 }
 0x1e5   : > { %v2368_v33 = vmax.f32 %v2352_v30, 0.0 }
 0x1e6   : > { %v2367_v34 = vmax.f32 %v2351_v32, 0.0  ;;  %v10116_v35 = vpop.f32.mrb[2].mxu0 }
 0x1e7   : > { %2384 = vst.msk [vmem:[#allocation2 + $0x8] sm:$0xff] %vm368_vm0, %v2368_v33  ;;  %v2354_v37 = vadd.f32 %v10116_v35, %v12112_v28  ;;  %v2259_v38 = vpop.f32.mrb[3].mxu0 }
 0x1e8   : > { %2383 = vst.msk [vmem:[#allocation2] sm:$0xff] %vm368_vm0, %v2367_v34  ;;  %v2353_v39 = vadd.f32 %v12112_v28, %v2259_v38 }
 0x1e9   : > { %v2370_v40 = vmax.f32 %v2354_v37, 0.0 }
 0x1ea   : > { %v2369_v43 = vmax.f32 %v2353_v39, 0.0  ;;  %v10119_v45 = vpop.f32.mrb[4].mxu0  ;;  %v10347_v47 = vpop.f32.mrb[2].mxu1 }
 0x1eb   : > { %2386 = vst.msk [vmem:[#allocation2 + $0x18] sm:$0xff] %vm368_vm0, %v2370_v40  ;;  %v2356_v50 = vadd.f32 %v10119_v45, %v12112_v28  ;;  %v4409_v51 = vadd.f32 %v10347_v47, %v12112_v28  ;;  %v2269_v52 = vpop.f32.mrb[5].mxu0  ;;  %v4306_v54 = vpop.f32.mrb[3].mxu1 }
 0x1ec   : > { %2385 = vst.msk [vmem:[#allocation2 + $0x10] sm:$0xff] %vm368_vm0, %v2369_v43  ;;  %v2355_v55 = vadd.f32 %v12112_v28, %v2269_v52  ;;  %v4408_v57 = vadd.f32 %v12112_v28, %v4306_v54 }
 0x1ed   : > { %v2372_v58 = vmax.f32 %v2356_v50, 0.0  ;;  %v4425_v59 = vmax.f32 %v4409_v51, 0.0 }
 0x1ee   : > { %v2371_v60 = vmax.f32 %v2355_v55, 0.0  ;;  %v4424_v61 = vmax.f32 %v4408_v57, 0.0  ;;  %v10122_v62 = vpop.f32.mrb[6].mxu0  ;;  %v10350_v63 = vpop.f32.mrb[4].mxu1 }
 0x1ef   : > { %2388 = vst.msk [vmem:[#allocation2 + $0x28] sm:$0xff] %vm368_vm0, %v2372_v58  ;;  %4441 = vst.msk [vmem:[#allocation2 + $0x88] sm:$0xff] %vm368_vm0, %v4425_v59  ;;  %v2358_v0 = vadd.f32 %v10122_v62, %v12112_v28  ;;  %v4411_v1 = vadd.f32 %v10350_v63, %v12112_v28  ;;  %v2279_v2 = vpop.f32.mrb[7].mxu0  ;;  %v4316_v3 = vpop.f32.mrb[5].mxu1  ;;  %v5436_v14 = vld [vmem:[#allocation2] ss:$2 sm:$0xff] }
 0x1f0   : > { %2387 = vst.msk [vmem:[#allocation2 + $0x20] sm:$0xff] %vm368_vm0, %v2371_v60  ;;  %4440 = vst.msk [vmem:[#allocation2 + $0x80] sm:$0xff] %vm368_vm0, %v4424_v61  ;;  %v2357_v4 = vadd.f32 %v12112_v28, %v2279_v2  ;;  %v4410_v5 = vadd.f32 %v12112_v28, %v4316_v3  ;;  %v5438_v15 = vld [vmem:[#allocation2 + $0x1] ss:$2 sm:$0xff] }
 0x1f1   : > { %v2374_v7 = vmax.f32 %v2358_v0, 0.0  ;;  %v4427_v8 = vmax.f32 %v4411_v1, 0.0  ;;  %v5439_v42 = vmax.f32 %v5436_v14, %v5438_v15 }
 0x1f2   : > { %v2373_v9 = vmax.f32 %v2357_v4, 0.0  ;;  %v4426_v10 = vmax.f32 %v4410_v5, 0.0  ;;  %v10125_v11 = vpop.f32.mrb[8].mxu0  ;;  %v10353_v13 = vpop.f32.mrb[6].mxu1 }
 0x1f3   : > { %2390 = vst.msk [vmem:[#allocation2 + $0x38] sm:$0xff] %vm368_vm0, %v2374_v7  ;;  %4443 = vst.msk [vmem:[#allocation2 + $0x98] sm:$0xff] %vm368_vm0, %v4427_v8  ;;  %v2360_v41 = vadd.f32 %v10125_v11, %v12112_v28  ;;  %v4413_v44 = vadd.f32 %v10353_v13, %v12112_v28  ;;  %v2289_v16 = vpop.f32.mrb[9].mxu0  ;;  %v4326_v17 = vpop.f32.mrb[7].mxu1 }
 0x1f4   : > { %2389 = vst.msk [vmem:[#allocation2 + $0x30] sm:$0xff] %vm368_vm0, %v2373_v9  ;;  %4442 = vst.msk [vmem:[#allocation2 + $0x90] sm:$0xff] %vm368_vm0, %v4426_v10  ;;  %v2359_v6 = vadd.f32 %v12112_v28, %v2289_v16  ;;  %v4412_v18 = vadd.f32 %v12112_v28, %v4326_v17  ;;  %v12174_v17 = vld [vmem:[%s12660_s3 + $0x10] sm:$0xff] }
 0x1f5   : > { %v2376_v36 = vmax.f32 %v2360_v41, 0.0  ;;  %v4429_v53 = vmax.f32 %v4413_v44, 0.0 }
 0x1f6   : > { %v2375_v56 = vmax.f32 %v2359_v6, 0.0  ;;  %v4428_v19 = vmax.f32 %v4412_v18, 0.0  ;;  %v10128_v20 = vpop.f32.mrb[10].mxu0  ;;  %v10356_v12 = vpop.f32.mrb[8].mxu1 }
 0x1f7   : > { %v5441_v21 = vld [vmem:[#allocation2 + $0x12] ss:$2 sm:$0xff]  ;;  %2392 = vst.msk [vmem:[#allocation2 + $0x48] sm:$0xff] %vm368_vm0, %v2376_v36  ;;  %4445 = vst.msk [vmem:[#allocation2 + $0xa8] sm:$0xff] %vm368_vm0, %v4429_v53  ;;  %v2362_v22 = vadd.f32 %v10128_v20, %v12112_v28  ;;  %v4415_v23 = vadd.f32 %v10356_v12, %v12112_v28  ;;  %v2299_v24 = vpop.f32.mrb[11].mxu0  ;;  %v4336_v46 = vpop.f32.mrb[9].mxu1 }
 0x1f8   : > { %v5442_v26 = vmax.f32 %v5439_v42, %v5441_v21  ;;  %2391 = vst.msk [vmem:[#allocation2 + $0x40] sm:$0xff] %vm368_vm0, %v2375_v56  ;;  %4444 = vst.msk [vmem:[#allocation2 + $0xa0] sm:$0xff] %vm368_vm0, %v4428_v19  ;;  %v2361_v29 = vadd.f32 %v12112_v28, %v2299_v24  ;;  %v4414_v30 = vadd.f32 %v12112_v28, %v4336_v46  ;;  %v5444_v31 = vld [vmem:[#allocation2 + $0x13] ss:$2 sm:$0xff] }
 0x1f9   : > { %v2378_v32 = vmax.f32 %v2362_v22, 0.0  ;;  %v4431_v33 = vmax.f32 %v4415_v23, 0.0 }
 0x1fa   : > { %v5445_v34 = vmax.f32 %v5442_v26, %v5444_v31  ;;  %v2377_v35 = vmax.f32 %v2361_v29, 0.0  ;;  %v4430_v37 = vmax.f32 %v4414_v30, 0.0  ;;  %v10131_v38 = vpop.f32.mrb[12].mxu0  ;;  %v10359_v39 = vpop.f32.mrb[10].mxu1 }
 0x1fb   : > { %v5448_v40 = vld [vmem:[#allocation2 + $0x24] ss:$2 sm:$0xff]  ;;  %v5450_v43 = vld [vmem:[#allocation2 + $0x25] ss:$2 sm:$0xff]  ;;  %2394 = vst.msk [vmem:[#allocation2 + $0x58] sm:$0xff] %vm368_vm0, %v2378_v32  ;;  %4447 = vst.msk [vmem:[#allocation2 + $0xb8] sm:$0xff] %vm368_vm0, %v4431_v33  ;;  %v2364_v45 = vadd.f32 %v10131_v38, %v12112_v28  ;;  %v4417_v47 = vadd.f32 %v10359_v39, %v12112_v28 }
 0x1fc   : > { %2393 = vst.msk [vmem:[#allocation2 + $0x50] sm:$0xff] %vm368_vm0, %v2377_v35  ;;  %4446 = vst.msk [vmem:[#allocation2 + $0xb0] sm:$0xff] %vm368_vm0, %v4430_v37  ;;  %v2309_v50 = vpop.f32.mrb[13].mxu0  ;;  %v4346_v51 = vpop.f32.mrb[11].mxu1  ;;  %v5451_v57 = vmax.f32 %v5448_v40, %v5450_v43  ;;  %v5484_v58 = vld [vmem:[#allocation2 + $0x90] ss:$2 sm:$0xff] }
 0x1fd   : > { %5446 = vst.msk [vmem:[#allocation3 + $0xb] sm:$0xff] %vm368_vm0, %v5445_v34  ;;  %v2380_v52 = vmax.f32 %v2364_v45, 0.0  ;;  %v4433_v54 = vmax.f32 %v4417_v47, 0.0  ;;  %v2363_v55 = vadd.f32 %v12112_v28, %v2309_v50  ;;  %v4416_v59 = vadd.f32 %v12112_v28, %v4346_v51  ;;  %v5486_v62 = vld [vmem:[#allocation2 + $0x91] ss:$2 sm:$0xff] }
 0x1fe   : > { %v10134_v60 = vpop.f32.mrb[14].mxu0  ;;  %v10362_v61 = vpop.f32.mrb[12].mxu1  ;;  %v5487_v14 = vmax.f32 %v5484_v58, %v5486_v62 }
 0x1ff   : > { %v5453_v63 = vld [vmem:[#allocation2 + $0x36] ss:$2 sm:$0xff]  ;;  %2396 = vst.msk [vmem:[#allocation2 + $0x68] sm:$0xff] %vm368_vm0, %v2380_v52  ;;  %4449 = vst.msk [vmem:[#allocation2 + $0xc8] sm:$0xff] %vm368_vm0, %v4433_v54  ;;  %v2379_v0 = vmax.f32 %v2363_v55, 0.0  ;;  %v10893_v1 = vadd.f32 %v10134_v60, %v11821_v48  ;;  %v4419_v2 = vadd.f32 %v10362_v61, %v12112_v28  ;;  %v2319_v3 = vpop.f32.mrb[15].mxu0 }
 0x200   : > { %v5454_v4 = vmax.f32 %v5451_v57, %v5453_v63  ;;  %v4432_v5 = vmax.f32 %v4416_v59, 0.0  ;;  %v10894_v7 = vadd.f32 %v2319_v3, %v11825_v49  ;;  %v4356_v8 = vpop.f32.mrb[13].mxu1  ;;  %v5456_v9 = vld [vmem:[#allocation2 + $0x37] ss:$2 sm:$0xff] }
 0x201   : > { %2395 = vst.msk [vmem:[#allocation2 + $0x60] sm:$0xff] %vm368_vm0, %v2379_v0  ;;  %v2366_v10 = vadd.f32 %v10893_v1, %v12112_v28  ;;  %v4435_v11 = vmax.f32 %v4419_v2, 0.0  ;;  %v4418_v13 = vadd.f32 %v12112_v28, %v4356_v8 }
 0x202   : > { %v5457_v15 = vmax.f32 %v5454_v4, %v5456_v9  ;;  %4448 = vst.msk [vmem:[#allocation2 + $0xc0] sm:$0xff] %vm368_vm0, %v4432_v5  ;;  %v2365_v48 = vadd.f32 %v10894_v7, %v12112_v28  ;;  %v10365_v41 = vpop.f32.mrb[14].mxu1 }
 0x203   : > { %v5460_v44 = vld [vmem:[#allocation2 + $0x48] ss:$2 sm:$0xff]  ;;  %4451 = vst.msk [vmem:[#allocation2 + $0xd8] sm:$0xff] %vm368_vm0, %v4435_v11  ;;  %v4421_v49 = vadd.f32 %v10365_v41, %v12112_v28  ;;  %v5462_v6 = vld [vmem:[#allocation2 + $0x49] ss:$2 sm:$0xff]  ;;  %v2382_v36 = vmax.f32 %v2366_v10, 0.0 }
 0x204   : > { %v5489_v16 = vld [vmem:[#allocation2 + $0xa2] ss:$2 sm:$0xff]  ;;  %v2381_v53 = vmax.f32 %v2365_v48, 0.0  ;;  %v4366_v42 = vpop.f32.mrb[15].mxu1  ;;  %5458 = vst.msk [vmem:[#allocation3 + $0x15] sm:$0xff] %vm368_vm0, %v5457_v15  ;;  %v4434_v20 = vmax.f32 %v4418_v13, 0.0  ;;  %v5463_v24 = vmax.f32 %v5460_v44, %v5462_v6 }
 0x205   : > { %v5490_v18 = vmax.f32 %v5487_v14, %v5489_v16  ;;  %v5543_v56 = vld [vmem:[#allocation3 + $0x9] sm:$0xff]  ;;  %v4437_v12 = vmax.f32 %v4421_v49, 0.0  ;;  %v4420_v21 = vadd.f32 %v12112_v28, %v4366_v42  ;;  %2398 = vst.msk [vmem:[#allocation2 + $0x78] sm:$0xff] %vm368_vm0, %v2382_v36  ;;  %v5531_v10 = vld [vmem:[#allocation3] sm:$0xff]  ;;  %v9204_v14 = vld [vmem:[%s12660_s3 + $0x18] sm:$0xff] }
 0x206   : > { %v5492_v19 = vld [vmem:[#allocation2 + $0xa3] ss:$2 sm:$0xff]  ;;  %10444 = vmatmul.mubr.msk.f32.vlgmr.msra.gmra.mrb[18].mxu1 %vm368_vm0, %v5543_v56  ;;  %2397 = vst.msk [vmem:[#allocation2 + $0x70] sm:$0xff] %vm368_vm0, %v2381_v53  ;;  %v10368_v23 = vpop.f32.mrb[16].mxu1  ;;  %4450 = vst.msk [vmem:[#allocation2 + $0xd0] sm:$0xff] %vm368_vm0, %v4434_v20 }
 0x207   : > { %v5493_v22 = vmax.f32 %v5490_v18, %v5492_v19  ;;  %10459 = vmatpush3.msra.mxu1 %v12106_v27  ;;  %4453 = vst.msk [vmem:[#allocation2 + $0xe8] sm:$0xff] %vm368_vm0, %v4437_v12  ;;  %v4436_v46 = vmax.f32 %v4420_v21, 0.0  ;;  %v4423_v26 = vadd.f32 %v10368_v23, %v12112_v28  ;;  %v4376_v29 = vpop.f32.mrb[17].mxu1  ;;  %v5532_v13 = vld [vmem:[#allocation3 + $0x8] sm:$0xff]  ;;  %v9215_v53 = vld [vmem:[%s12660_s3 + $0x20] sm:$0xff] }
 0x208   : > { %10475 = vmatprep.subr.mxu1 %v12174_v17  ;;  %v5465_v30 = vld [vmem:[#allocation2 + $0x5a] ss:$2 sm:$0xff]  ;;  %v4422_v31 = vadd.f32 %v12112_v28, %v4376_v29  ;;  %v5468_v33 = vld [vmem:[#allocation2 + $0x5b] ss:$2 sm:$0xff]  ;;  %v5845_v36 = vld [vmem:[#allocation3 + $0xa] sm:$0xff] }
 0x209   : > { %5494 = vst.msk [vmem:[#allocation3 + $0x33] sm:$0xff] %vm368_vm0, %v5493_v22  ;;  %v5466_v32 = vmax.f32 %v5463_v24, %v5465_v30  ;;  %4452 = vst.msk [vmem:[#allocation2 + $0xe0] sm:$0xff] %vm368_vm0, %v4436_v46  ;;  %v4439_v27 = vmax.f32 %v4423_v26, 0.0  ;;  %v5496_v34 = vld [vmem:[#allocation2 + $0xb4] ss:$2 sm:$0xff] }
 0x20a   : > { %v5498_v35 = vld [vmem:[#allocation2 + $0xb5] ss:$2 sm:$0xff]  ;;  %v4438_v37 = vmax.f32 %v4422_v31, 0.0 }
 0x20b   : > { %v5469_v38 = vmax.f32 %v5466_v32, %v5468_v33  ;;  %4455 = vst.msk [vmem:[#allocation2 + $0xf8] sm:$0xff] %vm368_vm0, %v4439_v27  ;;  %v5544_v39 = vld [vmem:[#allocation3 + $0x11] sm:$0xff]  ;;  %v5499_v40 = vmax.f32 %v5496_v34, %v5498_v35 }
 0x20c   : > { %4454 = vst.msk [vmem:[#allocation2 + $0xf0] sm:$0xff] %vm368_vm0, %v4438_v37  ;;  %10446 = vmatprep.mubr.msk.f32.mxu1 %vm368_vm0, %v5544_v39  ;;  %v5477_v50 = vld [vmem:[#allocation2 + $0x7e] ss:$2 sm:$0xff]  ;;  %v5480_v60 = vld [vmem:[#allocation2 + $0x7f] ss:$2 sm:$0xff]  ;;  %v5533_v15 = vld [vmem:[#allocation3 + $0x10] sm:$0xff] }
 0x20d   : > { %v5472_v43 = vld [vmem:[#allocation2 + $0x6c] ss:$2 sm:$0xff]  ;;  %5470 = vst.msk [vmem:[#allocation3 + $0x1f] sm:$0xff] %vm368_vm0, %v5469_v38  ;;  %v5474_v45 = vld [vmem:[#allocation2 + $0x6d] ss:$2 sm:$0xff] }
 0x20e   : > { %v5501_v47 = vld [vmem:[#allocation2 + $0xc6] ss:$2 sm:$0xff]  ;;  %v5475_v51 = vmax.f32 %v5472_v43, %v5474_v45  ;;  %v5504_v54 = vld [vmem:[#allocation2 + $0xc7] ss:$2 sm:$0xff] }
 0x20f   : > { %v5502_v52 = vmax.f32 %v5499_v40, %v5501_v47  ;;  %v5846_v42 = vld [vmem:[#allocation3 + $0x12] sm:$0xff] }
 0x210   : > { %v5508_v55 = vld [vmem:[#allocation2 + $0xd8] ss:$2 sm:$0xff]  ;;  %v5510_v57 = vld [vmem:[#allocation2 + $0xd9] ss:$2 sm:$0xff]  ;;  %v5478_v58 = vmax.f32 %v5475_v51, %v5477_v50  ;;  %v9226_v50 = vld [vmem:[%s12660_s3 + $0x28] sm:$0xff] }
 0x211   : > { %v5505_v59 = vmax.f32 %v5502_v52, %v5504_v54  ;;  %v5511_v61 = vmax.f32 %v5508_v55, %v5510_v57  ;;  %v5548_v7 = vld [vmem:[#allocation3 + $0x31] sm:$0xff] }
 0x212   : > { %v5481_v62 = vmax.f32 %v5478_v58, %v5480_v60  ;;  %v5850_v46 = vld [vmem:[#allocation3 + $0x32] sm:$0xff] }
 0x213   : > { %5506 = vst.msk [vmem:[#allocation3 + $0x3d] sm:$0xff] %vm368_vm0, %v5505_v59  ;;  %v5513_v63 = vld [vmem:[#allocation2 + $0xea] ss:$2 sm:$0xff]  ;;  %v5516_v3 = vld [vmem:[#allocation2 + $0xeb] ss:$2 sm:$0xff] }
 0x214   : > { %v5514_v0 = vmax.f32 %v5511_v61, %v5513_v63  ;;  %v5545_v1 = vld [vmem:[#allocation3 + $0x19] sm:$0xff]  ;;  %v5546_v2 = vld [vmem:[#allocation3 + $0x21] sm:$0xff]  ;;  %5482 = vst.msk [vmem:[#allocation3 + $0x29] sm:$0xff] %vm368_vm0, %v5481_v62  ;;  %v6178_v52 = vld [vmem:[#allocation3 + $0xb] sm:$0xff] }
 0x215   : > { %10447 = vmatmul.mubr.msk.f32.gmra.mrb[20].mxu1 %vm368_vm0, %v5545_v1  ;;  %v5534_v48 = vld [vmem:[#allocation3 + $0x18] sm:$0xff]  ;;  %v5535_v41 = vld [vmem:[#allocation3 + $0x20] sm:$0xff]  ;;  %v9237_v55 = vld [vmem:[%s12660_s3 + $0x30] sm:$0xff] }
 0x216   : > { %v5517_v4 = vmax.f32 %v5514_v0, %v5516_v3  ;;  %10449 = vmatprep.mubr.msk.f32.mxu1 %vm368_vm0, %v5546_v2  ;;  %v5847_v56 = vld [vmem:[#allocation3 + $0x1a] sm:$0xff]  ;;  %v6345_v1 = vld [vmem:[#allocation3 + $0xc] sm:$0xff] }
 0x217   : > { %v6179_v54 = vld [vmem:[#allocation3 + $0x13] sm:$0xff]  ;;  %v6180_v57 = vld [vmem:[#allocation3 + $0x1b] sm:$0xff] }
 0x218   : > { %5518 = vst.msk [vmem:[#allocation3 + $0x47] sm:$0xff] %vm368_vm0, %v5517_v4  ;;  %v6183_v60 = vld [vmem:[#allocation3 + $0x33] sm:$0xff]  ;;  %v6347_v4 = vld [vmem:[#allocation3 + $0x1c] sm:$0xff] }
 0x219   : > { %v6346_v2 = vld [vmem:[#allocation3 + $0x14] sm:$0xff] }
 0x21a   : > { %v5549_v9 = vld [vmem:[#allocation3 + $0x39] sm:$0xff] }
 0x21b   : > { %v5547_v5 = vld [vmem:[#allocation3 + $0x29] sm:$0xff]  ;;  %v5538_v49 = vld [vmem:[#allocation3 + $0x38] sm:$0xff] }
 0x21c   : > { %10450 = vmatmul.mubr.msk.f32.gmra.mrb[22].mxu1 %vm368_vm0, %v5547_v5  ;;  %v5536_v44 = vld [vmem:[#allocation3 + $0x28] sm:$0xff]  ;;  %v5537_v16 = vld [vmem:[#allocation3 + $0x30] sm:$0xff]  ;;  %v5851_v33 = vld [vmem:[#allocation3 + $0x3a] sm:$0xff] }
 0x21d   : > { %10452 = vmatprep.mubr.msk.f32.mxu1 %vm368_vm0, %v5548_v7  ;;  %v5848_v19 = vld [vmem:[#allocation3 + $0x22] sm:$0xff]  ;;  %v5849_v23 = vld [vmem:[#allocation3 + $0x2a] sm:$0xff]  ;;  %v9248_v3 = vld [vmem:[%s12660_s3 + $0x38] sm:$0xff] }
 0x21e   : > { %v6181_v58 = vld [vmem:[#allocation3 + $0x23] sm:$0xff]  ;;  %v6182_v59 = vld [vmem:[#allocation3 + $0x2b] sm:$0xff]  ;;  %v6184_v61 = vld [vmem:[#allocation3 + $0x3b] sm:$0xff] }
 0x21f   : > { %v5550_v8 = vld [vmem:[#allocation3 + $0x41] sm:$0xff]  ;;  %v5551_v11 = vld [vmem:[#allocation3 + $0x49] sm:$0xff] }
 0x220   : > { %10453 = vmatmul.mubr.msk.f32.gmra.mrb[24].mxu1 %vm368_vm0, %v5549_v9  ;;  %v5539_v6 = vld [vmem:[#allocation3 + $0x40] sm:$0xff]  ;;  %v5540_v18 = vld [vmem:[#allocation3 + $0x48] sm:$0xff] }
 0x221   : > { %10455 = vmatprep.mubr.msk.f32.mxu1 %vm368_vm0, %v5550_v8  ;;  %v5852_v34 = vld [vmem:[#allocation3 + $0x42] sm:$0xff]  ;;  %v6349_v7 = vld [vmem:[#allocation3 + $0x2c] sm:$0xff]  ;;  %v6350_v8 = vld [vmem:[#allocation3 + $0x34] sm:$0xff] }
 0x222   : > { %v6185_v62 = vld [vmem:[#allocation3 + $0x43] sm:$0xff] }
 0x223   : > { %v6348_v5 = vld [vmem:[#allocation3 + $0x24] sm:$0xff]  ;;  %v6351_v9 = vld [vmem:[#allocation3 + $0x3c] sm:$0xff] }
 0x224   : > { %10456 = vmatmul.mubr.msk.f32.gmra.mrb[26].mxu1 %vm368_vm0, %v5551_v11 }
 0x225   : > { %10460 = vmatprep.mubr.msk.f32.mxu1 %vm368_vm0, %v5531_v10  ;;  %v6352_v10 = vld [vmem:[#allocation3 + $0x44] sm:$0xff] }
 0x228   : > { %10461 = vmatmul.mubr.msk.f32.vlgmr.msra.gmra.mrb[18].mxu1 %vm368_vm0, %v5532_v13 }
 0x229   : > { %10463 = vmatprep.mubr.msk.f32.mxu1 %vm368_vm0, %v5533_v15  ;;  %10476 = vmatpush3.msra.mxu1 %v12174_v17  ;;  %v5844_v17 = vld [vmem:[#allocation3 + $0x2] sm:$0xff] }
 0x22a   : > { %10492 = vmatprep.subr.mxu1 %v9204_v14  ;;  %v6521_v15 = vld [vmem:[#allocation3 + $0x5c] sm:$0xff] }
 0x22c   : > { %10464 = vmatmul.mubr.msk.f32.gmra.mrb[20].mxu1 %vm368_vm0, %v5534_v48  ;;  %v6679_v48 = vld [vmem:[#allocation3 + $0x15] sm:$0xff] }
 0x22d   : > { %10466 = vmatprep.mubr.msk.f32.mxu1 %vm368_vm0, %v5535_v41  ;;  %v6680_v41 = vld [vmem:[#allocation3 + $0x1d] sm:$0xff] }
 0x230   : > { %10467 = vmatmul.mubr.msk.f32.gmra.mrb[22].mxu1 %vm368_vm0, %v5536_v44  ;;  %v6681_v44 = vld [vmem:[#allocation3 + $0x25] sm:$0xff] }
 0x231   : > { %10469 = vmatprep.mubr.msk.f32.mxu1 %vm368_vm0, %v5537_v16  ;;  %v6682_v16 = vld [vmem:[#allocation3 + $0x2d] sm:$0xff] }
 0x234   : > { %10470 = vmatmul.mubr.msk.f32.gmra.mrb[24].mxu1 %vm368_vm0, %v5538_v49  ;;  %v6683_v49 = vld [vmem:[#allocation3 + $0x35] sm:$0xff] }
 0x235   : > { %10472 = vmatprep.mubr.msk.f32.mxu1 %vm368_vm0, %v5539_v6  ;;  %v6684_v6 = vld [vmem:[#allocation3 + $0x3d] sm:$0xff] }
 0x238   : > { %10473 = vmatmul.mubr.msk.f32.gmra.mrb[26].mxu1 %vm368_vm0, %v5540_v18 }
 0x239   : > { %10477 = vmatprep.mubr.msk.f32.mxu1 %vm368_vm0, %v5844_v17  ;;  %v6685_v17 = vld [vmem:[#allocation3 + $0x45] sm:$0xff] }
 0x23c   : > { %10478 = vmatmul.mubr.msk.f32.vlgmr.msra.gmra.mrb[18].mxu1 %vm368_vm0, %v5845_v36 }
 0x23d   : > { %10480 = vmatprep.mubr.msk.f32.mxu1 %vm368_vm0, %v5846_v42  ;;  %10493 = vmatpush3.msra.mxu1 %v9204_v14  ;;  %v9259_v14 = vld [vmem:[%s12660_s3 + $0x40] sm:$0xff] }
 0x23e   : > { %10509 = vmatprep.subr.mxu1 %v9215_v53 }
 0x240   : > { %10481 = vmatmul.mubr.msk.f32.gmra.mrb[20].mxu1 %vm368_vm0, %v5847_v56 }
 0x241   : > { %10483 = vmatprep.mubr.msk.f32.mxu1 %vm368_vm0, %v5848_v19 }
 0x242   : > { %v10437_v20 = vpop.f32.mrb[16].mxu0 }
 0x243   : > { %v5410_v12 = vadd.f32 %v10437_v20, %v12112_v28  ;;  %v5379_v21 = vpop.f32.mrb[17].mxu0  ;;  %v6849_v20 = vld [vmem:[#allocation3 + $0x2e] sm:$0xff] }
 0x244   : > { %v5409_v22 = vadd.f32 %v12112_v28, %v5379_v21  ;;  %10484 = vmatmul.mubr.msk.f32.gmra.mrb[22].mxu1 %vm368_vm0, %v5849_v23  ;;  %v6851_v21 = vld [vmem:[#allocation3 + $0x3e] sm:$0xff] }
 0x245   : > { %v5414_v24 = vmax.f32 %v5410_v12, 0.0  ;;  %10486 = vmatprep.mubr.msk.f32.mxu1 %vm368_vm0, %v5850_v46  ;;  %v6850_v12 = vld [vmem:[#allocation3 + $0x36] sm:$0xff] }
 0x246   : > { %v5413_v26 = vmax.f32 %v5409_v22, 0.0  ;;  %v10440_v29 = vpop.f32.mrb[18].mxu0  ;;  %v6852_v22 = vld [vmem:[#allocation3 + $0x46] sm:$0xff] }
 0x247   : > { %5418 = vst.msk [vmem:[#allocation2 + $0x108] sm:$0xff] %vm368_vm0, %v5414_v24  ;;  %v5412_v30 = vadd.f32 %v10440_v29, %v12112_v28  ;;  %v5389_v31 = vpop.f32.mrb[19].mxu0  ;;  %v9272_v29 = vld [vmem:[%s12662_s5 + $0x18] sm:$0xff] }
 0x248   : > { %5417 = vst.msk [vmem:[#allocation2 + $0x100] sm:$0xff] %vm368_vm0, %v5413_v26  ;;  %v5411_v32 = vadd.f32 %v12112_v28, %v5389_v31  ;;  %10487 = vmatmul.mubr.msk.f32.gmra.mrb[24].mxu1 %vm368_vm0, %v5851_v33  ;;  %v9271_v26 = vld [vmem:[%s12662_s5 + $0x10] sm:$0xff] }
 0x249   : > { %v5416_v27 = vmax.f32 %v5412_v30, 0.0  ;;  %10489 = vmatprep.mubr.msk.f32.mxu1 %vm368_vm0, %v5852_v34  ;;  %v11282_v30 = vmov 0.0|0.0   ;;  %v10811_v31 = vpack.c.bf16 %v9272_v29, %v9271_v26 }
 0x24a   : > { %v5415_v35 = vmax.f32 %v5411_v32, 0.0  ;;  %10810 = vmatprep.subr.bf16.mxu0 %v11282_v30  ;;  %v9270_v32 = vld [vmem:[%s12661_s4] ss:$0 sm:$0xff] }
 0x24b   : > { %5420 = vst.msk [vmem:[#allocation2 + $0x118] sm:$0xff] %vm368_vm0, %v5416_v27  ;;  %10812 = vmatpush3.bf16.msra.mxu0 %v10811_v31 }
 0x24c   : > { %5419 = vst.msk [vmem:[#allocation2 + $0x110] sm:$0xff] %vm368_vm0, %v5415_v35  ;;  %10813 = vmatprep.subr.bf16.mxu0 %v11282_v30 }
 0x24f   : > { %v5520_v37 = vld [vmem:[#allocation2 + $0xfc] ss:$2 sm:$0xff]  ;;  %v5522_v38 = vld [vmem:[#allocation2 + $0xfd] ss:$2 sm:$0xff] }
 0x250   : > { %v5523_v39 = vmax.f32 %v5520_v37, %v5522_v38 }
 0x253   : > { %v5525_v40 = vld [vmem:[#allocation2 + $0x10e] ss:$2 sm:$0xff]  ;;  %v5528_v45 = vld [vmem:[#allocation2 + $0x10f] ss:$2 sm:$0xff] }
 0x254   : > { %v5526_v43 = vmax.f32 %v5523_v39, %v5525_v40 }
 0x256   : > { %v5529_v47 = vmax.f32 %v5526_v43, %v5528_v45 }
 0x258   : > { %5530 = vst.msk [vmem:[#allocation3 + $0x51] sm:$0xff] %vm368_vm0, %v5529_v47 }
 0x25f   : > { %v5853_v28 = vld [vmem:[#allocation3 + $0x4a] sm:$0xff]  ;;  %v6020_v51 = vld [vmem:[#allocation3 + $0x52] sm:$0xff] }
 0x260   : > { %10490 = vmatmul.mubr.msk.f32.gmra.mrb[26].mxu1 %vm368_vm0, %v5853_v28  ;;  %v6186_v63 = vld [vmem:[#allocation3 + $0x4b] sm:$0xff]  ;;  %v6187_v0 = vld [vmem:[#allocation3 + $0x53] sm:$0xff] }
 0x261   : > { %10494 = vmatprep.mubr.msk.f32.mxu1 %vm368_vm0, %v5845_v36  ;;  %v6353_v11 = vld [vmem:[#allocation3 + $0x4c] sm:$0xff]  ;;  %v6354_v13 = vld [vmem:[#allocation3 + $0x54] sm:$0xff] }
 0x262   : > { %v6686_v18 = vld [vmem:[#allocation3 + $0x4d] sm:$0xff]  ;;  %v6687_v36 = vld [vmem:[#allocation3 + $0x55] sm:$0xff] }
 0x263   : > { %v6854_v24 = vld [vmem:[#allocation3 + $0x56] sm:$0xff] }
 0x264   : > { %10495 = vmatmul.mubr.msk.f32.vlgmr.msra.gmra.mrb[18].mxu1 %vm368_vm0, %v5846_v42  ;;  %v6846_v42 = vld [vmem:[#allocation3 + $0x16] sm:$0xff] }
 0x265   : > { %10510 = vmatpush3.msra.mxu1 %v9215_v53  ;;  %10497 = vmatprep.mubr.msk.f32.mxu1 %vm368_vm0, %v5847_v56  ;;  %v6688_v53 = vld [vmem:[#allocation3 + $0x5d] sm:$0xff] }
 0x266   : > { %10526 = vmatprep.subr.mxu1 %v9226_v50  ;;  %v6847_v56 = vld [vmem:[#allocation3 + $0x1e] sm:$0xff] }
 0x268   : > { %10498 = vmatmul.mubr.msk.f32.gmra.mrb[20].mxu1 %vm368_vm0, %v5848_v19  ;;  %v6848_v19 = vld [vmem:[#allocation3 + $0x26] sm:$0xff] }
 0x269   : > { %10500 = vmatprep.mubr.msk.f32.mxu1 %vm368_vm0, %v5849_v23  ;;  %v6853_v23 = vld [vmem:[#allocation3 + $0x4e] sm:$0xff] }
 0x26c   : > { %10501 = vmatmul.mubr.msk.f32.gmra.mrb[22].mxu1 %vm368_vm0, %v5850_v46  ;;  %v6855_v46 = vld [vmem:[#allocation3 + $0x5e] sm:$0xff] }
 0x26d   : > { %10503 = vmatprep.mubr.msk.f32.mxu1 %vm368_vm0, %v5851_v33 }
 0x270   : > { %10504 = vmatmul.mubr.msk.f32.gmra.mrb[24].mxu1 %vm368_vm0, %v5852_v34 }
 0x271   : > { %10506 = vmatprep.mubr.msk.f32.mxu1 %vm368_vm0, %v5853_v28 }
 0x274   : > { %10507 = vmatmul.mubr.msk.f32.gmra.mrb[26].mxu1 %vm368_vm0, %v6020_v51 }
 0x275   : > { %10511 = vmatprep.mubr.msk.f32.mxu1 %vm368_vm0, %v6178_v52 }
 0x278   : > { %10512 = vmatmul.mubr.msk.f32.vlgmr.msra.gmra.mrb[18].mxu1 %vm368_vm0, %v6179_v54 }
 0x279   : > { %10527 = vmatpush3.msra.mxu1 %v9226_v50  ;;  %10514 = vmatprep.mubr.msk.f32.mxu1 %vm368_vm0, %v6180_v57 }
 0x27a   : > { %10543 = vmatprep.subr.mxu1 %v9237_v55 }
 0x27c   : > { %10515 = vmatmul.mubr.msk.f32.gmra.mrb[20].mxu1 %vm368_vm0, %v6181_v58 }
 0x27d   : > { %10517 = vmatprep.mubr.msk.f32.mxu1 %vm368_vm0, %v6182_v59 }
 0x280   : > { %10518 = vmatmul.mubr.msk.f32.gmra.mrb[22].mxu1 %vm368_vm0, %v6183_v60 }
 0x281   : > { %10520 = vmatprep.mubr.msk.f32.mxu1 %vm368_vm0, %v6184_v61 }
 0x284   : > { %10521 = vmatmul.mubr.msk.f32.gmra.mrb[24].mxu1 %vm368_vm0, %v6185_v62 }
 0x285   : > { %10523 = vmatprep.mubr.msk.f32.mxu1 %vm368_vm0, %v6186_v63 }
 0x288   : > { %10524 = vmatmul.mubr.msk.f32.gmra.mrb[26].mxu1 %vm368_vm0, %v6187_v0 }
 0x289   : > { %10528 = vmatprep.mubr.msk.f32.mxu1 %vm368_vm0, %v6345_v1 }
 0x28c   : > { %10529 = vmatmul.mubr.msk.f32.vlgmr.msra.gmra.mrb[18].mxu1 %vm368_vm0, %v6346_v2 }
 0x28d   : > { %10544 = vmatpush3.msra.mxu1 %v9237_v55  ;;  %10531 = vmatprep.mubr.msk.f32.mxu1 %vm368_vm0, %v6347_v4 }
 0x28e   : > { %10560 = vmatprep.subr.mxu1 %v9248_v3 }
 0x290   : > { %10532 = vmatmul.mubr.msk.f32.gmra.mrb[20].mxu1 %vm368_vm0, %v6348_v5 }
 0x291   : > { %10534 = vmatprep.mubr.msk.f32.mxu1 %vm368_vm0, %v6349_v7 }
 0x294   : > { %10535 = vmatmul.mubr.msk.f32.gmra.mrb[22].mxu1 %vm368_vm0, %v6350_v8 }
 0x295   : > { %10537 = vmatprep.mubr.msk.f32.mxu1 %vm368_vm0, %v6351_v9 }
 0x298   : > { %10538 = vmatmul.mubr.msk.f32.gmra.mrb[24].mxu1 %vm368_vm0, %v6352_v10 }
 0x299   : > { %10540 = vmatprep.mubr.msk.f32.mxu1 %vm368_vm0, %v6353_v11 }
 0x29c   : > { %10541 = vmatmul.mubr.msk.f32.gmra.mrb[26].mxu1 %vm368_vm0, %v6354_v13 }
 0x29d   : > { %10545 = vmatprep.mubr.msk.f32.mxu1 %vm368_vm0, %v6346_v2 }
 0x2a0   : > { %10546 = vmatmul.mubr.msk.f32.vlgmr.msra.gmra.mrb[18].mxu1 %vm368_vm0, %v6347_v4 }
 0x2a1   : > { %10561 = vmatpush3.msra.mxu1 %v9248_v3  ;;  %10548 = vmatprep.mubr.msk.f32.mxu1 %vm368_vm0, %v6348_v5 }
 0x2a2   : > { %10577 = vmatprep.subr.mxu1 %v9259_v14 }
 0x2a4   : > { %10549 = vmatmul.mubr.msk.f32.gmra.mrb[20].mxu1 %vm368_vm0, %v6349_v7 }
 0x2a5   : > { %10551 = vmatprep.mubr.msk.f32.mxu1 %vm368_vm0, %v6350_v8 }
 0x2a8   : > { %10552 = vmatmul.mubr.msk.f32.gmra.mrb[22].mxu1 %vm368_vm0, %v6351_v9 }
 0x2a9   : > { %10554 = vmatprep.mubr.msk.f32.mxu1 %vm368_vm0, %v6352_v10 }
 0x2ac   : > { %10555 = vmatmul.mubr.msk.f32.gmra.mrb[24].mxu1 %vm368_vm0, %v6353_v11 }
 0x2ad   : > { %10557 = vmatprep.mubr.msk.f32.mxu1 %vm368_vm0, %v6354_v13 }
 0x2b0   : > { %10558 = vmatmul.mubr.msk.f32.gmra.mrb[26].mxu1 %vm368_vm0, %v6521_v15 }
 0x2b1   : > { %10562 = vmatprep.mubr.msk.f32.mxu1 %vm368_vm0, %v6679_v48 }
 0x2b4   : > { %10563 = vmatmul.mubr.msk.f32.vlgmr.msra.gmra.mrb[18].mxu1 %vm368_vm0, %v6680_v41 }
 0x2b5   : > { %10578 = vmatpush3.msra.mxu1 %v9259_v14  ;;  %10565 = vmatprep.mubr.msk.f32.mxu1 %vm368_vm0, %v6681_v44 }
 0x2b6   : > { %10843 = vmatprep.subr.bf16.mxu1 %v11282_v30 }
 0x2b8   : > { %10566 = vmatmul.mubr.msk.f32.gmra.mrb[20].mxu1 %vm368_vm0, %v6682_v16 }
 0x2b9   : > { %10568 = vmatprep.mubr.msk.f32.mxu1 %vm368_vm0, %v6683_v49 }
 0x2bc   : > { %10569 = vmatmul.mubr.msk.f32.gmra.mrb[22].mxu1 %vm368_vm0, %v6684_v6  ;;  %v7109_v6 = vld [vmem:[%s12662_s5] sm:$0xff] }
 0x2bd   : > { %10571 = vmatprep.mubr.msk.f32.mxu1 %vm368_vm0, %v6685_v17  ;;  %v7110_v17 = vld [vmem:[%s12662_s5 + $0x8] sm:$0xff] }
 0x2c0   : > { %10572 = vmatmul.mubr.msk.f32.gmra.mrb[24].mxu1 %vm368_vm0, %v6686_v18 }
 0x2c1   : > { %10574 = vmatprep.mubr.msk.f32.mxu1 %vm368_vm0, %v6687_v36 }
 0x2c4   : > { %10575 = vmatmul.mubr.msk.f32.gmra.mrb[26].mxu1 %vm368_vm0, %v6688_v53 }
 0x2c5   : > { %10579 = vmatprep.mubr.msk.f32.mxu1 %vm368_vm0, %v6846_v42 }
 0x2c8   : > { %10580 = vmatmul.mubr.msk.f32.vlgmr.msra.gmra.mrb[18].mxu1 %vm368_vm0, %v6847_v56  ;;  %v10814_v56 = vpack.c.bf16 %v7110_v17, %v7109_v6  ;;  %v8027_v6 = vld [vmem:[%s12664_s7] sm:$0xff]  ;;  %v8028_v17 = vld [vmem:[%s12664_s7 + $0x8] sm:$0xff] }
 0x2c9   : > { %10582 = vmatprep.mubr.msk.f32.mxu1 %vm368_vm0, %v6848_v19 }
 0x2cc   : > { %10583 = vmatmul.mubr.msk.f32.gmra.mrb[20].mxu1 %vm368_vm0, %v6849_v20 }
 0x2cd   : > { %10585 = vmatprep.mubr.msk.f32.mxu1 %vm368_vm0, %v6850_v12 }
 0x2d0   : > { %10586 = vmatmul.mubr.msk.f32.gmra.mrb[22].mxu1 %vm368_vm0, %v6851_v21 }
 0x2d1   : > { %10588 = vmatprep.mubr.msk.f32.mxu1 %vm368_vm0, %v6852_v22 }
 0x2d4   : > { %10589 = vmatmul.mubr.msk.f32.gmra.mrb[24].mxu1 %vm368_vm0, %v6853_v23 }
 0x2d5   : > { %10591 = vmatprep.mubr.msk.f32.mxu1 %vm368_vm0, %v6854_v24 }
 0x2d8   : > { %10592 = vmatmul.mubr.msk.f32.gmra.mrb[26].mxu1 %vm368_vm0, %v6855_v46 }
 0x2d9   : > { %10730 = vmatprep.mubr.msk.f32.mxu1 %vm11283_vm2, %v11281_v25 }
 0x39b   : > { %v10581_v33 = vpop.f32.mrb[18].mxu1 }
 0x39c   : > { %v7021_v27 = vadd.f32 %v10581_v33, %v9270_v32  ;;  %v6954_v34 = vpop.f32.mrb[19].mxu1 }
 0x39d   : > { %v7020_v35 = vadd.f32 %v9270_v32, %v6954_v34  ;;  %v9280_v34 = vld [vmem:[%s12662_s5 + $0x28] sm:$0xff] }
 0x39e   : > { %v7031_v37 = vmax.f32 %v7021_v27, 0.0  ;;  %v9279_v27 = vld [vmem:[%s12662_s5 + $0x20] sm:$0xff] }
 0x39f   : > { %v7030_v38 = vmax.f32 %v7020_v35, 0.0  ;;  %v10584_v39 = vpop.f32.mrb[20].mxu1 }
 0x3a0   : > { %7042 = vst.msk [vmem:[#allocation4 + $0x8] sm:$0xff] %vm7040_vm1, %v7031_v37  ;;  %v7023_v40 = vadd.f32 %v10584_v39, %v9270_v32  ;;  %v6964_v43 = vpop.f32.mrb[21].mxu1  ;;  %v10817_v37 = vpack.c.bf16 %v9280_v34, %v9279_v27 }
 0x3a1   : > { %7041 = vst.msk [vmem:[#allocation4] sm:$0xff] %vm7040_vm1, %v7030_v38  ;;  %v7022_v45 = vadd.f32 %v9270_v32, %v6964_v43  ;;  %v9285_v43 = vld [vmem:[%s12662_s5 + $0x38] sm:$0xff] }
 0x3a2   : > { %v7033_v47 = vmax.f32 %v7023_v40, 0.0  ;;  %v9284_v40 = vld [vmem:[%s12662_s5 + $0x30] sm:$0xff] }
 0x3a3   : > { %v7032_v28 = vmax.f32 %v7022_v45, 0.0  ;;  %v10587_v50 = vpop.f32.mrb[22].mxu1 }
 0x3a4   : > { %7044 = vst.msk [vmem:[#allocation4 + $0x18] sm:$0xff] %vm7040_vm1, %v7033_v47  ;;  %v7025_v51 = vadd.f32 %v10587_v50, %v9270_v32  ;;  %v6974_v52 = vpop.f32.mrb[23].mxu1  ;;  %v10820_v47 = vpack.c.bf16 %v9285_v43, %v9284_v40 }
 0x3a5   : > { %7043 = vst.msk [vmem:[#allocation4 + $0x10] sm:$0xff] %vm7040_vm1, %v7032_v28  ;;  %v7024_v54 = vadd.f32 %v9270_v32, %v6974_v52  ;;  %v9290_v52 = vld [vmem:[%s12662_s5 + $0x48] sm:$0xff] }
 0x3a6   : > { %v7035_v55 = vmax.f32 %v7025_v51, 0.0  ;;  %v9289_v51 = vld [vmem:[%s12662_s5 + $0x40] sm:$0xff] }
 0x3a7   : > { %v7034_v57 = vmax.f32 %v7024_v54, 0.0  ;;  %v10590_v58 = vpop.f32.mrb[24].mxu1 }
 0x3a8   : > { %v7058_v59 = vld [vmem:[#allocation4] ss:$2 sm:$0xf]  ;;  %v7060_v60 = vld [vmem:[#allocation4 + $0x1] ss:$2 sm:$0xf]  ;;  %v7027_v61 = vadd.f32 %v10590_v58, %v9270_v32 }
 0x3a9   : > { %7046 = vst.msk [vmem:[#allocation4 + $0x28] sm:$0xff] %vm7040_vm1, %v7035_v55  ;;  %7045 = vst.msk [vmem:[#allocation4 + $0x20] sm:$0xff] %vm7040_vm1, %v7034_v57  ;;  %v6984_v62 = vpop.f32.mrb[25].mxu1  ;;  %v7061_v1 = vmax.f32 %v7058_v59, %v7060_v60  ;;  %v10823_v55 = vpack.c.bf16 %v9290_v52, %v9289_v51  ;;  %v9294_v59 = vld [vmem:[%s12662_s5 + $0x50] sm:$0xff]  ;;  %v9295_v60 = vld [vmem:[%s12662_s5 + $0x58] sm:$0xff] }
 0x3aa   : > { %v7037_v63 = vmax.f32 %v7027_v61, 0.0  ;;  %v7026_v0 = vadd.f32 %v9270_v32, %v6984_v62  ;;  %v10826_v62 = vpack.c.bf16 %v9295_v60, %v9294_v59 }
 0x3ab   : > { %v10593_v2 = vpop.f32.mrb[26].mxu1 }
 0x3ac   : > { %v7063_v3 = vld [vmem:[#allocation4 + $0xa] ss:$2 sm:$0xf]  ;;  %7048 = vst.msk [vmem:[#allocation4 + $0x38] sm:$0xff] %vm7040_vm1, %v7037_v63  ;;  %v7029_v4 = vadd.f32 %v10593_v2, %v9270_v32  ;;  %v7036_v10 = vmax.f32 %v7026_v0, 0.0  ;;  %v6994_v13 = vpop.f32.mrb[27].mxu1 }
 0x3ad   : > { %v7064_v5 = vmax.f32 %v7061_v1, %v7063_v3  ;;  %v7071_v7 = vld [vmem:[#allocation4 + $0x14] ss:$2 sm:$0xf]  ;;  %v7073_v8 = vld [vmem:[#allocation4 + $0x15] ss:$2 sm:$0xf]  ;;  %v7028_v48 = vadd.f32 %v9270_v32, %v6994_v13 }
 0x3ae   : > { %v7066_v9 = vld [vmem:[#allocation4 + $0xb] ss:$2 sm:$0xf]  ;;  %v7039_v11 = vmax.f32 %v7029_v4, 0.0  ;;  %v7074_v15 = vmax.f32 %v7071_v7, %v7073_v8  ;;  %7047 = vst.msk [vmem:[#allocation4 + $0x30] sm:$0xff] %vm7040_vm1, %v7036_v10  ;;  %v9300_v2 = vld [vmem:[%s12662_s5 + $0x68] sm:$0xff] }
 0x3af   : > { %v7067_v14 = vmax.f32 %v7064_v5, %v7066_v9  ;;  %v7038_v16 = vmax.f32 %v7028_v48, 0.0  ;;  %v9299_v1 = vld [vmem:[%s12662_s5 + $0x60] sm:$0xff]  ;;  %v9304_v5 = vld [vmem:[%s12662_s5 + $0x70] sm:$0xff]  ;;  %v9305_v7 = vld [vmem:[%s12662_s5 + $0x78] sm:$0xff] }
 0x3b0   : > { %v7076_v41 = vld [vmem:[#allocation4 + $0x1e] ss:$2 sm:$0xf]  ;;  %7050 = vst.msk [vmem:[#allocation4 + $0x48] sm:$0xff] %vm7040_vm1, %v7039_v11  ;;  %v10829_v4 = vpack.c.bf16 %v9300_v2, %v9299_v1  ;;  %v10832_v9 = vpack.c.bf16 %v9305_v7, %v9304_v5  ;;  %v9309_v13 = vld [vmem:[%s12662_s5 + $0x80] sm:$0xff] }
 0x3b1   : > { %v7077_v44 = vmax.f32 %v7074_v15, %v7076_v41  ;;  %7069 = vst.msk [vmem:[#allocation5 + $0x7] sm:$0xf] %vm7068_vm3, %v7067_v14  ;;  %v7079_v49 = vld [vmem:[#allocation4 + $0x1f] ss:$2 sm:$0xf] }
 0x3b2   : > { %v7083_v18 = vld [vmem:[#allocation4 + $0x28] ss:$2 sm:$0xf]  ;;  %v7085_v36 = vld [vmem:[#allocation4 + $0x29] ss:$2 sm:$0xf] }
 0x3b3   : > { %v7080_v53 = vmax.f32 %v7077_v44, %v7079_v49  ;;  %7049 = vst.msk [vmem:[#allocation4 + $0x40] sm:$0xff] %vm7040_vm1, %v7038_v16  ;;  %v7086_v42 = vmax.f32 %v7083_v18, %v7085_v36  ;;  %v9310_v14 = vld [vmem:[%s12662_s5 + $0x88] sm:$0xff]  ;;  %v7787_v16 = vld [vmem:[#allocation5 + $0x1d] sm:$0xff]  ;;  %v10844_v36 = vpack.c.bf16 %v8028_v17, %v8027_v6 }
 0x3b4   : > { %v10835_v48 = vpack.c.bf16 %v9310_v14, %v9309_v13  ;;  %v7885_v49 = vld [vmem:[#allocation5 + $0x1e] sm:$0xff] }
 0x3b5   : > { %7081 = vst.msk [vmem:[#allocation5 + $0xd] sm:$0xf] %vm7068_vm3, %v7080_v53  ;;  %v7088_v19 = vld [vmem:[#allocation4 + $0x32] ss:$2 sm:$0xf]  ;;  %10845 = vmatpush3.bf16.msra.mxu1 %v10844_v36 }
 0x3b6   : > { %v7089_v20 = vmax.f32 %v7086_v42, %v7088_v19  ;;  %v7091_v21 = vld [vmem:[#allocation4 + $0x33] ss:$2 sm:$0xf]  ;;  %v9317_v42 = vld [vmem:[%s12664_s7 + $0x30] sm:$0xff]  ;;  %10846 = vmatprep.subr.bf16.mxu1 %v11282_v30 }
 0x3b7   : > { %v9315_v18 = vld [vmem:[%s12664_s7 + $0x20] sm:$0xff]  ;;  %v9316_v53 = vld [vmem:[%s12664_s7 + $0x28] sm:$0xff] }
 0x3b8   : > { %v7111_v12 = vld [vmem:[#allocation5 + $0x1] sm:$0xff]  ;;  %v7092_v22 = vmax.f32 %v7089_v20, %v7091_v21  ;;  %v10838_v19 = vpack.c.bf16 %v9316_v53, %v9315_v18  ;;  %v8029_v20 = vld [vmem:[%s12664_s7 + $0x10] sm:$0xff] }
 0x3b9   : > { %10599 = vmatmul.mubr.msk.f32.vlgmr.msra.gmra.mrb[20].mxu0 %vm7040_vm1, %v7111_v12  ;;  %v7106_v38 = vld [vmem:[#allocation5] sm:$0xff]  ;;  %v8030_v12 = vld [vmem:[%s12664_s7 + $0x18] sm:$0xff] }
 0x3ba   : > { %v7095_v23 = vld [vmem:[#allocation4 + $0x3c] ss:$2 sm:$0xf]  ;;  %v7097_v24 = vld [vmem:[#allocation4 + $0x3d] ss:$2 sm:$0xf]  ;;  %10815 = vmatpush3.bf16.msra.mxu0 %v10814_v56  ;;  %10601 = vmatprep.mubr.msk.f32.mxu0 %vm11283_vm2, %v11281_v25  ;;  %v10847_v21 = vpack.c.bf16 %v8030_v12, %v8029_v20 }
 0x3bb   : > { %v7098_v46 = vmax.f32 %v7095_v23, %v7097_v24  ;;  %10816 = vmatprep.subr.bf16.mxu0 %v11282_v30  ;;  %v7100_v26 = vld [vmem:[#allocation4 + $0x46] ss:$2 sm:$0xf]  ;;  %7093 = vst.msk [vmem:[#allocation5 + $0x13] sm:$0xf] %vm7068_vm3, %v7092_v22  ;;  %v7295_v28 = vld [vmem:[#allocation5 + $0x2] sm:$0xff] }
 0x3bc   : > { %v7112_v29 = vld [vmem:[#allocation5 + $0x9] sm:$0xff]  ;;  %v7103_v32 = vld [vmem:[#allocation4 + $0x47] ss:$2 sm:$0xf]  ;;  %10848 = vmatpush3.bf16.msra.mxu1 %v10847_v21 }
 0x3bd   : > { %v7101_v31 = vmax.f32 %v7098_v46, %v7100_v26  ;;  %10602 = vmatmul.mubr.msk.f32.gmra.mrb[22].mxu0 %vm7040_vm1, %v7112_v29  ;;  %v7107_v39 = vld [vmem:[#allocation5 + $0x8] sm:$0xff]  ;;  %v9318_v56 = vld [vmem:[%s12664_s7 + $0x38] sm:$0xff]  ;;  %10855 = vmatprep.subr.bf16.mxu1 %v11282_v30 }
 0x3be   : > { %10604 = vmatprep.mubr.msk.f32.mxu0 %vm11283_vm2, %v11281_v25  ;;  %v7296_v50 = vld [vmem:[#allocation5 + $0xa] sm:$0xff]  ;;  %v10841_v23 = vpack.c.bf16 %v9318_v56, %v9317_v42 }
 0x3bf   : > { %v7104_v33 = vmax.f32 %v7101_v31, %v7103_v32  ;;  %v7393_v57 = vld [vmem:[#allocation5 + $0x6] sm:$0xff] }
 0x3c0   : > { %v7491_v63 = vld [vmem:[#allocation5 + $0x7] sm:$0xff] }
 0x3c1   : > { %7105 = vst.msk [vmem:[#allocation5 + $0x19] sm:$0xf] %vm7068_vm3, %v7104_v33 }
 0x3c2   : > { %v7113_v35 = vld [vmem:[#allocation5 + $0x11] sm:$0xff] }
 0x3c3   : > { %10605 = vmatmul.mubr.msk.f32.gmra.mrb[24].mxu0 %vm7040_vm1, %v7113_v35  ;;  %v7108_v45 = vld [vmem:[#allocation5 + $0x10] sm:$0xff] }
 0x3c4   : > { %10611 = vmatprep.mubr.msk.f32.mxu0 %vm11283_vm2, %v11281_v25  ;;  %v7394_v58 = vld [vmem:[#allocation5 + $0xe] sm:$0xff] }
 0x3c5   : > { %v7492_v0 = vld [vmem:[#allocation5 + $0xf] sm:$0xff] }
 0x3c6   : > { %v7687_v10 = vld [vmem:[#allocation5 + $0xc] sm:$0xff] }
 0x3c7   : > { %10612 = vmatmul.mubr.msk.f32.vlgmr.msra.gmra.mrb[26].mxu0 %vm7040_vm1, %v7106_v38  ;;  %v7785_v41 = vld [vmem:[#allocation5 + $0xd] sm:$0xff] }
 0x3c8   : > { %10818 = vmatpush3.bf16.msra.mxu0 %v10817_v37  ;;  %10614 = vmatprep.mubr.msk.f32.mxu0 %vm11283_vm2, %v11281_v25  ;;  %v7297_v54 = vld [vmem:[#allocation5 + $0x12] sm:$0xff]  ;;  %v7689_v15 = vld [vmem:[#allocation5 + $0x1c] sm:$0xff] }
 0x3c9   : > { %10819 = vmatprep.subr.bf16.mxu0 %v11282_v30  ;;  %v7395_v61 = vld [vmem:[#allocation5 + $0x16] sm:$0xff] }
 0x3ca   : > { %v7493_v3 = vld [vmem:[#allocation5 + $0x17] sm:$0xff] }
 0x3cb   : > { %10615 = vmatmul.mubr.msk.f32.gmra.mrb[28].mxu0 %vm7040_vm1, %v7107_v39  ;;  %v7591_v8 = vld [vmem:[#allocation5 + $0x18] sm:$0xff] }
 0x3cc   : > { %10617 = vmatprep.mubr.msk.f32.mxu0 %vm11283_vm2, %v11281_v25  ;;  %v7688_v11 = vld [vmem:[#allocation5 + $0x14] sm:$0xff] }
 0x3cd   : > { %v7786_v44 = vld [vmem:[#allocation5 + $0x15] sm:$0xff] }
 0x3cf   : > { %10618 = vmatmul.mubr.msk.f32.gmra.mrb[30].mxu0 %vm7040_vm1, %v7108_v45 }
 0x3d0   : > { %10624 = vmatprep.mubr.msk.f32.mxu0 %vm11283_vm2, %v11281_v25 }
 0x3d3   : > { %10625 = vmatmul.mubr.msk.f32.vlgmr.msra.gmra.mrb[32].mxu0 %vm7040_vm1, %v7295_v28 }
 0x3d4   : > { %10821 = vmatpush3.bf16.msra.mxu0 %v10820_v47  ;;  %10627 = vmatprep.mubr.msk.f32.mxu0 %vm11283_vm2, %v11281_v25 }
 0x3d5   : > { %10822 = vmatprep.subr.bf16.mxu0 %v11282_v30 }
 0x3d7   : > { %10628 = vmatmul.mubr.msk.f32.gmra.mrb[34].mxu0 %vm7040_vm1, %v7296_v50 }
 0x3d8   : > { %10630 = vmatprep.mubr.msk.f32.mxu0 %vm11283_vm2, %v11281_v25 }
 0x3db   : > { %10631 = vmatmul.mubr.msk.f32.gmra.mrb[36].mxu0 %vm7040_vm1, %v7297_v54 }
 0x3dc   : > { %10637 = vmatprep.mubr.msk.f32.mxu0 %vm11283_vm2, %v11281_v25 }
 0x3df   : > { %10638 = vmatmul.mubr.msk.f32.vlgmr.msra.gmra.mrb[38].mxu0 %vm7040_vm1, %v7393_v57 }
 0x3e0   : > { %10824 = vmatpush3.bf16.msra.mxu0 %v10823_v55  ;;  %10640 = vmatprep.mubr.msk.f32.mxu0 %vm11283_vm2, %v11281_v25 }
 0x3e1   : > { %10825 = vmatprep.subr.bf16.mxu0 %v11282_v30 }
 0x3e3   : > { %10641 = vmatmul.mubr.msk.f32.gmra.mrb[40].mxu0 %vm7040_vm1, %v7394_v58 }
 0x3e4   : > { %10643 = vmatprep.mubr.msk.f32.mxu0 %vm11283_vm2, %v11281_v25 }
 0x3e7   : > { %10644 = vmatmul.mubr.msk.f32.gmra.mrb[42].mxu0 %vm7040_vm1, %v7395_v61 }
 0x3e8   : > { %10650 = vmatprep.mubr.msk.f32.mxu0 %vm11283_vm2, %v11281_v25 }
 0x3eb   : > { %10651 = vmatmul.mubr.msk.f32.vlgmr.msra.gmra.mrb[44].mxu0 %vm7040_vm1, %v7491_v63 }
 0x3ec   : > { %10827 = vmatpush3.bf16.msra.mxu0 %v10826_v62  ;;  %10653 = vmatprep.mubr.msk.f32.mxu0 %vm11283_vm2, %v11281_v25 }
 0x3ed   : > { %10828 = vmatprep.subr.bf16.mxu0 %v11282_v30 }
 0x3ef   : > { %10654 = vmatmul.mubr.msk.f32.gmra.mrb[46].mxu0 %vm7040_vm1, %v7492_v0 }
 0x3f0   : > { %10656 = vmatprep.mubr.msk.f32.mxu0 %vm11283_vm2, %v11281_v25 }
 0x3f3   : > { %10657 = vmatmul.mubr.msk.f32.gmra.mrb[48].mxu0 %vm7040_vm1, %v7493_v3 }
 0x3f4   : > { %10663 = vmatprep.mubr.msk.f32.mxu0 %vm11283_vm2, %v11281_v25 }
 0x3f7   : > { %10664 = vmatmul.mubr.msk.f32.vlgmr.msra.gmra.mrb[50].mxu0 %vm7040_vm1, %v7107_v39 }
 0x3f8   : > { %10830 = vmatpush3.bf16.msra.mxu0 %v10829_v4  ;;  %10666 = vmatprep.mubr.msk.f32.mxu0 %vm11283_vm2, %v11281_v25 }
 0x3f9   : > { %10831 = vmatprep.subr.bf16.mxu0 %v11282_v30 }
 0x3fb   : > { %10667 = vmatmul.mubr.msk.f32.gmra.mrb[52].mxu0 %vm7040_vm1, %v7108_v45 }
 0x3fc   : > { %10669 = vmatprep.mubr.msk.f32.mxu0 %vm11283_vm2, %v11281_v25 }
 0x3ff   : > { %10670 = vmatmul.mubr.msk.f32.gmra.mrb[54].mxu0 %vm7040_vm1, %v7591_v8 }
 0x400   : > { %10676 = vmatprep.mubr.msk.f32.mxu0 %vm11283_vm2, %v11281_v25 }
 0x403   : > { %10677 = vmatmul.mubr.msk.f32.vlgmr.msra.gmra.mrb[56].mxu0 %vm7040_vm1, %v7687_v10 }
 0x404   : > { %10833 = vmatpush3.bf16.msra.mxu0 %v10832_v9  ;;  %10679 = vmatprep.mubr.msk.f32.mxu0 %vm11283_vm2, %v11281_v25 }
 0x405   : > { %10834 = vmatprep.subr.bf16.mxu0 %v11282_v30 }
 0x407   : > { %10680 = vmatmul.mubr.msk.f32.gmra.mrb[58].mxu0 %vm7040_vm1, %v7688_v11 }
 0x408   : > { %10682 = vmatprep.mubr.msk.f32.mxu0 %vm11283_vm2, %v11281_v25 }
 0x40b   : > { %10683 = vmatmul.mubr.msk.f32.gmra.mrb[60].mxu0 %vm7040_vm1, %v7689_v15 }
 0x40c   : > { %10689 = vmatprep.mubr.msk.f32.mxu0 %vm11283_vm2, %v11281_v25 }
 0x40f   : > { %10690 = vmatmul.mubr.msk.f32.vlgmr.msra.gmra.mrb[62].mxu0 %vm7040_vm1, %v7785_v41 }
 0x410   : > { %10836 = vmatpush3.bf16.msra.mxu0 %v10835_v48  ;;  %10692 = vmatprep.mubr.msk.f32.mxu0 %vm11283_vm2, %v11281_v25 }
 0x411   : > { %10837 = vmatprep.subr.bf16.mxu0 %v11282_v30 }
 0x413   : > { %10693 = vmatmul.mubr.msk.f32.gmra.mrb[64].mxu0 %vm7040_vm1, %v7786_v44 }
 0x414   : > { %10695 = vmatprep.mubr.msk.f32.mxu0 %vm11283_vm2, %v11281_v25 }
 0x417   : > { %10696 = vmatmul.mubr.msk.f32.gmra.mrb[66].mxu0 %vm7040_vm1, %v7787_v16 }
 0x418   : > { %10702 = vmatprep.mubr.msk.f32.mxu0 %vm11283_vm2, %v11281_v25 }
 0x41b   : > { %10703 = vmatmul.mubr.msk.f32.vlgmr.msra.gmra.mrb[68].mxu0 %vm7040_vm1, %v7394_v58 }
 0x41c   : > { %10705 = vmatprep.mubr.msk.f32.mxu0 %vm11283_vm2, %v11281_v25  ;;  %10839 = vmatpush3.bf16.msra.mxu0 %v10838_v19 }
 0x41d   : > { %10840 = vmatprep.subr.bf16.mxu0 %v11282_v30 }
 0x41f   : > { %10706 = vmatmul.mubr.msk.f32.gmra.mrb[70].mxu0 %vm7040_vm1, %v7395_v61 }
 0x420   : > { %10708 = vmatprep.mubr.msk.f32.mxu0 %vm11283_vm2, %v11281_v25  ;;  %10842 = vmatpush3.bf16.msra.mxu0 %v10841_v23 }
 0x421   : > { %10849 = vmatprep.subr.bf16.mxu0 %v11282_v30 }
 0x423   : > { %10709 = vmatmul.mubr.msk.f32.gmra.mrb[72].mxu0 %vm7040_vm1, %v7885_v49 }
 0x424   : > { %10719 = vmatprep.mubr.msk.f32.mxu0 %vm11283_vm2, %v11281_v25 }
 0x48c   : > { %v7192_v22 = vpop.f32.mrb[20].mxu0 }
 0x48d   : > { %v10600_v24 = vpop.f32.mrb[21].mxu0 }
 0x490   : > { %v7197_v46 = vpop.f32.mrb[22].mxu0 }
 0x491   : > { %v10603_v26 = vpop.f32.mrb[23].mxu0 }
 0x496   : > { %v7202_v29 = vpop.f32.mrb[24].mxu0 }
 0x497   : > { %v10606_v31 = vpop.f32.mrb[25].mxu0 }
 0x49a   : > { %v7281_v32 = vpop.f32.mrb[26].mxu0 }
 0x49b   : > { %v7282_v33 = vadd.f32 %v7281_v32, %v7192_v22  ;;  %v10613_v27 = vpop.f32.mrb[27].mxu0 }
 0x49c   : > { %v9314_v27 = vld [vmem:[%s12663_s6] ss:$0 sm:$0xff] }
 0x49e   : > { %v7286_v34 = vpop.f32.mrb[28].mxu0 }
 0x49f   : > { %v7287_v35 = vadd.f32 %v7286_v34, %v7197_v46  ;;  %v10616_v37 = vpop.f32.mrb[29].mxu0 }
 0x4a2   : > { %v7291_v38 = vpop.f32.mrb[30].mxu0 }
 0x4a3   : > { %v7292_v39 = vadd.f32 %v7291_v38, %v7202_v29  ;;  %v10619_v40 = vpop.f32.mrb[31].mxu0 }
 0x4a6   : > { %v7376_v43 = vpop.f32.mrb[32].mxu0 }
 0x4a7   : > { %v7390_v45 = vadd.f32 %v7376_v43, %v7282_v33  ;;  %v10626_v47 = vpop.f32.mrb[33].mxu0 }
 0x4aa   : > { %v7381_v28 = vpop.f32.mrb[34].mxu0 }
 0x4ab   : > { %v7391_v50 = vadd.f32 %v7381_v28, %v7287_v35  ;;  %v10629_v51 = vpop.f32.mrb[35].mxu0 }
 0x4ae   : > { %v7386_v52 = vpop.f32.mrb[36].mxu0 }
 0x4af   : > { %v7392_v54 = vadd.f32 %v7386_v52, %v7292_v39  ;;  %v10632_v55 = vpop.f32.mrb[37].mxu0 }
 0x4b2   : > { %v7474_v57 = vpop.f32.mrb[38].mxu0 }
 0x4b3   : > { %v7488_v58 = vadd.f32 %v7474_v57, %v7390_v45  ;;  %v10639_v59 = vpop.f32.mrb[39].mxu0 }
 0x4b6   : > { %v7479_v60 = vpop.f32.mrb[40].mxu0 }
 0x4b7   : > { %v7489_v61 = vadd.f32 %v7479_v60, %v7391_v50  ;;  %v10642_v62 = vpop.f32.mrb[41].mxu0 }
 0x4ba   : > { %v7484_v63 = vpop.f32.mrb[42].mxu0 }
 0x4bb   : > { %v7490_v0 = vadd.f32 %v7484_v63, %v7392_v54  ;;  %v10645_v1 = vpop.f32.mrb[43].mxu0 }
 0x4be   : > { %v7572_v2 = vpop.f32.mrb[44].mxu0 }
 0x4bf   : > { %v7586_v3 = vadd.f32 %v7572_v2, %v7488_v58  ;;  %v10652_v4 = vpop.f32.mrb[45].mxu0 }
 0x4c2   : > { %v7577_v5 = vpop.f32.mrb[46].mxu0 }
 0x4c3   : > { %v7587_v7 = vadd.f32 %v7577_v5, %v7489_v61  ;;  %v10655_v8 = vpop.f32.mrb[47].mxu0  ;;  %v9321_v5 = vld [vmem:[%s12664_s7 + $0x40] sm:$0xff] }
 0x4c4   : > { %v9322_v8 = vld [vmem:[%s12664_s7 + $0x48] sm:$0xff] }
 0x4c6   : > { %v7582_v9 = vpop.f32.mrb[48].mxu0 }
 0x4c7   : > { %v7588_v10 = vadd.f32 %v7582_v9, %v7490_v0  ;;  %v10658_v11 = vpop.f32.mrb[49].mxu0  ;;  %v9326_v9 = vld [vmem:[%s12664_s7 + $0x60] sm:$0xff] }
 0x4c8   : > { %v10850_v11 = vpack.c.bf16 %v9322_v8, %v9321_v5 }
 0x4ca   : > { %v7670_v13 = vpop.f32.mrb[50].mxu0 }
 0x4cb   : > { %v7684_v14 = vadd.f32 %v7670_v13, %v7586_v3  ;;  %v10665_v15 = vpop.f32.mrb[51].mxu0 }
 0x4cc   : > { %v9324_v15 = vld [vmem:[%s12664_s7 + $0x58] sm:$0xff] }
 0x4ce   : > { %v7675_v48 = vpop.f32.mrb[52].mxu0 }
 0x4cf   : > { %v7685_v41 = vadd.f32 %v7675_v48, %v7587_v7  ;;  %v10668_v44 = vpop.f32.mrb[53].mxu0  ;;  %v9328_v48 = vld [vmem:[%s12664_s7 + $0x70] sm:$0xff] }
 0x4d2   : > { %v7680_v16 = vpop.f32.mrb[54].mxu0 }
 0x4d3   : > { %v7686_v49 = vadd.f32 %v7680_v16, %v7588_v10  ;;  %v10671_v6 = vpop.f32.mrb[55].mxu0  ;;  %v9327_v10 = vld [vmem:[%s12664_s7 + $0x68] sm:$0xff] }
 0x4d4   : > { %v10856_v13 = vpack.c.bf16 %v9327_v10, %v9326_v9 }
 0x4d6   : > { %v7768_v17 = vpop.f32.mrb[56].mxu0 }
 0x4d7   : > { %v7782_v18 = vadd.f32 %v7768_v17, %v7684_v14  ;;  %v10678_v36 = vpop.f32.mrb[57].mxu0  ;;  %v9323_v14 = vld [vmem:[%s12664_s7 + $0x50] sm:$0xff]  ;;  %v9331_v17 = vld [vmem:[%s12664_s7 + $0x80] sm:$0xff] }
 0x4d8   : > { %v9336_v36 = vld [vmem:[%s12664_s7 + $0xa0] sm:$0xff] }
 0x4da   : > { %v7773_v53 = vpop.f32.mrb[58].mxu0 }
 0x4db   : > { %v7783_v42 = vadd.f32 %v7773_v53, %v7685_v41  ;;  %v10681_v56 = vpop.f32.mrb[59].mxu0  ;;  %v9329_v41 = vld [vmem:[%s12664_s7 + $0x78] sm:$0xff]  ;;  %v9337_v53 = vld [vmem:[%s12664_s7 + $0xa8] sm:$0xff] }
 0x4dc   : > { %v10859_v6 = vpack.c.bf16 %v9329_v41, %v9328_v48  ;;  %v10868_v56 = vpack.c.bf16 %v9337_v53, %v9336_v36 }
 0x4de   : > { %v7778_v19 = vpop.f32.mrb[60].mxu0 }
 0x4df   : > { %v7784_v20 = vadd.f32 %v7778_v19, %v7686_v49  ;;  %v10684_v12 = vpop.f32.mrb[61].mxu0  ;;  %v10853_v49 = vpack.c.bf16 %v9324_v15, %v9323_v14  ;;  %v9333_v19 = vld [vmem:[%s12664_s7 + $0x90] sm:$0xff] }
 0x4e0   : > { %v9338_v12 = vld [vmem:[%s12664_s7 + $0xb0] sm:$0xff] }
 0x4e2   : > { %v7866_v21 = vpop.f32.mrb[62].mxu0 }
 0x4e3   : > { %v7880_v22 = vadd.f32 %v7866_v21, %v7782_v18  ;;  %v10691_v23 = vpop.f32.mrb[63].mxu0  ;;  %v9332_v18 = vld [vmem:[%s12664_s7 + $0x88] sm:$0xff]  ;;  %v9339_v21 = vld [vmem:[%s12664_s7 + $0xb8] sm:$0xff] }
 0x4e6   : > { %v7871_v24 = vpop.f32.mrb[64].mxu0 }
 0x4e7   : > { %v7881_v46 = vadd.f32 %v7871_v24, %v7783_v42  ;;  %v10694_v26 = vpop.f32.mrb[65].mxu0  ;;  %v10862_v42 = vpack.c.bf16 %v9332_v18, %v9331_v17 }
 0x4e8   : > { %v9341_v26 = vld [vmem:[%s12664_s7 + $0xc0] sm:$0xff] }
 0x4ea   : > { %v7876_v29 = vpop.f32.mrb[66].mxu0 }
 0x4eb   : > { %v7882_v31 = vadd.f32 %v7876_v29, %v7784_v20  ;;  %v10697_v32 = vpop.f32.mrb[67].mxu0  ;;  %v9334_v20 = vld [vmem:[%s12664_s7 + $0x98] sm:$0xff]  ;;  %v9342_v29 = vld [vmem:[%s12664_s7 + $0xc8] sm:$0xff] }
 0x4ec   : > { %v10865_v24 = vpack.c.bf16 %v9334_v20, %v9333_v19  ;;  %v9347_v32 = vld [vmem:[%s12664_s7 + $0xe8] sm:$0xff] }
 0x4ee   : > { %v7964_v33 = vpop.f32.mrb[68].mxu0 }
 0x4ef   : > { %v7978_v34 = vadd.f32 %v7964_v33, %v7880_v22  ;;  %v10704_v35 = vpop.f32.mrb[69].mxu0  ;;  %v10874_v33 = vpack.c.bf16 %v9342_v29, %v9341_v26 }
 0x4f0   : > { %v9344_v35 = vld [vmem:[%s12664_s7 + $0xd8] sm:$0xff] }
 0x4f1   : > { %v7988_v37 = vadd.f32 %v9314_v27, %v7978_v34  ;;  %v9343_v34 = vld [vmem:[%s12664_s7 + $0xd0] sm:$0xff] }
 0x4f2   : > { %v7969_v38 = vpop.f32.mrb[70].mxu0 }
 0x4f3   : > { %v7991_v39 = vmax.f32 %v7988_v37, 0.0  ;;  %v7979_v40 = vadd.f32 %v7969_v38, %v7881_v46  ;;  %v10707_v43 = vpop.f32.mrb[71].mxu0  ;;  %v10871_v46 = vpack.c.bf16 %v9339_v21, %v9338_v12  ;;  %v9348_v37 = vld [vmem:[%s12664_s7 + $0xf0] sm:$0xff]  ;;  %v9349_v38 = vld [vmem:[%s12664_s7 + $0xf8] sm:$0xff] }
 0x4f4   : > { %v10877_v43 = vpack.c.bf16 %v9344_v35, %v9343_v34 }
 0x4f5   : > { %7995 = vst.msk [vmem:[#allocation6] sm:$0xff] %vm7994_vm4, %v7991_v39  ;;  %v7989_v45 = vadd.f32 %v9314_v27, %v7979_v40 }
 0x4f6   : > { %v7974_v47 = vpop.f32.mrb[72].mxu0 }
 0x4f7   : > { %v7992_v28 = vmax.f32 %v7989_v45, 0.0  ;;  %v7980_v50 = vadd.f32 %v7974_v47, %v7882_v31  ;;  %v10710_v51 = vpop.f32.mrb[73].mxu0  ;;  %v9346_v31 = vld [vmem:[%s12664_s7 + $0xe0] sm:$0xff]  ;;  %v10883_v45 = vpack.c.bf16 %v9349_v38, %v9348_v37 }
 0x4f8   : > { %v9351_v47 = vld [vmem:[%s12664_s7 + $0x100] sm:$0xff]  ;;  %v9353_v51 = vld [vmem:[%s12664_s7 + $0x110] sm:$0xff] }
 0x4f9   : > { %7996 = vst.msk [vmem:[#allocation6 + $0x8] sm:$0xff] %vm7994_vm4, %v7992_v28  ;;  %v7990_v52 = vadd.f32 %v9314_v27, %v7980_v50  ;;  %v10880_v27 = vpack.c.bf16 %v9347_v32, %v9346_v31  ;;  %v9352_v28 = vld [vmem:[%s12664_s7 + $0x108] sm:$0xff] }
 0x4fa   : > { %v10886_v50 = vpack.c.bf16 %v9352_v28, %v9351_v47 }
 0x4fb   : > { %v7993_v54 = vmax.f32 %v7990_v52, 0.0  ;;  %v9354_v52 = vld [vmem:[%s12664_s7 + $0x118] sm:$0xff] }
 0x4fc   : > { %v8002_v55 = vld [vmem:[#allocation6] ss:$2 sm:$0x3]  ;;  %v8004_v57 = vld [vmem:[#allocation6 + $0x1] ss:$2 sm:$0x3] }
 0x4fd   : > { %7997 = vst.msk [vmem:[#allocation6 + $0x10] sm:$0xff] %vm7994_vm4, %v7993_v54  ;;  %v8005_v58 = vmax.f32 %v8002_v55, %v8004_v57  ;;  %v10889_v57 = vpack.c.bf16 %v9354_v52, %v9353_v51 }
 0x500   : > { %v8007_v59 = vld [vmem:[#allocation6 + $0x6] ss:$2 sm:$0x3]  ;;  %v8015_v61 = vld [vmem:[#allocation6 + $0xc] ss:$2 sm:$0x3] }
 0x501   : > { %v8008_v60 = vmax.f32 %v8005_v58, %v8007_v59  ;;  %v8017_v62 = vld [vmem:[#allocation6 + $0xd] ss:$2 sm:$0x3]  ;;  %v8010_v63 = vld [vmem:[#allocation6 + $0x7] ss:$2 sm:$0x3] }
 0x502   : > { %v8018_v1 = vmax.f32 %v8015_v61, %v8017_v62 }
 0x503   : > { %v8011_v0 = vmax.f32 %v8008_v60, %v8010_v63 }
 0x504   : > { %v8020_v2 = vld [vmem:[#allocation6 + $0x12] ss:$2 sm:$0x3]  ;;  %v8023_v4 = vld [vmem:[#allocation6 + $0x13] ss:$2 sm:$0x3] }
 0x505   : > { %v8021_v3 = vmax.f32 %v8018_v1, %v8020_v2  ;;  %8013 = vst.msk [vmem:[#allocation7 + $0x5] sm:$0x3] %vm8012_vm6, %v8011_v0 }
 0x507   : > { %v8024_v7 = vmax.f32 %v8021_v3, %v8023_v4 }
 0x509   : > { %8025 = vst.msk [vmem:[#allocation7 + $0x9] sm:$0x3] %vm8012_vm6, %v8024_v7 }
 0x50c   : > { %v8031_v44 = vld [vmem:[#allocation7 + $0x1] sm:$0xff] }
 0x50d   : > { %v8026_v16 = vld [vmem:[#allocation7] sm:$0xff]  ;;  %10720 = vmatmul.mubr.msk.f32.vlgmr.msra.gmra.mrb[74].mxu0 %vm7994_vm4, %v8031_v44 }
 0x50e   : > { %10731 = vmatmul.mubr.msk.f32.vlgmr.msra.gmra.mrb[28].mxu1 %vm7994_vm4, %v8026_v16  ;;  %10851 = vmatpush3.bf16.msra.mxu0 %v10850_v11  ;;  %v9356_v16 = vld [vmem:[%s12665_s8] ss:$0 sm:$0xff] }
 0x50f   : > { %10857 = vmatpush3.bf16.msra.mxu1 %v10856_v13  ;;  %10852 = vmatprep.subr.bf16.mxu0 %v11282_v30 }
 0x510   : > { %10858 = vmatprep.subr.bf16.mxu1 %v11282_v30  ;;  %10741 = vmatprep.mubr.msk.f32.mxu0 %vm11283_vm2, %v11281_v25  ;;  %v8183_v22 = vld [vmem:[#allocation7 + $0x2] sm:$0xff]  ;;  %v8663_v58 = vld [vmem:[#allocation7 + $0xa] sm:$0xff] }
 0x511   : > { %10752 = vmatprep.mubr.msk.f32.mxu1 %vm11283_vm2, %v11281_v25  ;;  %v8263_v23 = vld [vmem:[#allocation7 + $0x4] sm:$0xff] }
 0x512   : > { %10854 = vmatpush3.bf16.msra.mxu0 %v10853_v49  ;;  %v8343_v39 = vld [vmem:[#allocation7 + $0x5] sm:$0xff] }
 0x513   : > { %10860 = vmatpush3.bf16.msra.mxu1 %v10859_v6  ;;  %10861 = vmatprep.subr.bf16.mxu0 %v11282_v30  ;;  %v8423_v40 = vld [vmem:[#allocation7 + $0x6] sm:$0xff] }
 0x514   : > { %10867 = vmatprep.subr.bf16.mxu1 %v11282_v30  ;;  %v8503_v54 = vld [vmem:[#allocation7 + $0x8] sm:$0xff] }
 0x515   : > { %10742 = vmatmul.mubr.msk.f32.vlgmr.msra.gmra.mrb[76].mxu0 %vm7994_vm4, %v8183_v22  ;;  %v8583_v55 = vld [vmem:[#allocation7 + $0x9] sm:$0xff] }
 0x516   : > { %10753 = vmatmul.mubr.msk.f32.vlgmr.msra.gmra.mrb[30].mxu1 %vm7994_vm4, %v8263_v23  ;;  %10863 = vmatpush3.bf16.msra.mxu0 %v10862_v42 }
 0x517   : > { %10869 = vmatpush3.bf16.msra.mxu1 %v10868_v56  ;;  %10864 = vmatprep.subr.bf16.mxu0 %v11282_v30 }
 0x518   : > { %10870 = vmatprep.subr.bf16.mxu1 %v11282_v30  ;;  %10763 = vmatprep.mubr.msk.f32.mxu0 %vm11283_vm2, %v11281_v25 }
 0x519   : > { %10774 = vmatprep.mubr.msk.f32.mxu1 %vm11283_vm2, %v11281_v25 }
 0x51a   : > { %10866 = vmatpush3.bf16.msra.mxu0 %v10865_v24 }
 0x51b   : > { %10872 = vmatpush3.bf16.msra.mxu1 %v10871_v46  ;;  %10873 = vmatprep.subr.bf16.mxu0 %v11282_v30 }
 0x51c   : > { %10879 = vmatprep.subr.bf16.mxu1 %v11282_v30 }
 0x51d   : > { %10764 = vmatmul.mubr.msk.f32.vlgmr.msra.gmra.mrb[78].mxu0 %vm7994_vm4, %v8343_v39 }
 0x51e   : > { %10775 = vmatmul.mubr.msk.f32.vlgmr.msra.gmra.mrb[32].mxu1 %vm7994_vm4, %v8423_v40  ;;  %10875 = vmatpush3.bf16.msra.mxu0 %v10874_v33 }
 0x51f   : > { %10881 = vmatpush3.bf16.msra.mxu1 %v10880_v27  ;;  %10876 = vmatprep.subr.bf16.mxu0 %v11282_v30 }
 0x520   : > { %10882 = vmatprep.subr.bf16.mxu1 %v11282_v30  ;;  %10785 = vmatprep.mubr.msk.f32.mxu0 %vm11283_vm2, %v11281_v25 }
 0x521   : > { %10796 = vmatprep.mubr.msk.f32.mxu1 %vm11283_vm2, %v11281_v25 }
 0x522   : > { %10878 = vmatpush3.bf16.msra.mxu0 %v10877_v43 }
 0x523   : > { %10884 = vmatpush3.bf16.msra.mxu1 %v10883_v45  ;;  %10885 = vmatprep.subr.bf16.mxu0 %v11282_v30 }
 0x525   : > { %10786 = vmatmul.mubr.msk.f32.vlgmr.msra.gmra.mrb[80].mxu0 %vm7994_vm4, %v8503_v54 }
 0x526   : > { %10797 = vmatmul.mubr.msk.f32.vlgmr.msra.gmra.mrb[34].mxu1 %vm7994_vm4, %v8583_v55  ;;  %10887 = vmatpush3.bf16.msra.mxu0 %v10886_v50 }
 0x527   : > { %10807 = vmatprep.mubr.msk.f32.mxu0 %vm11283_vm2, %v11281_v25  ;;  %10888 = vmatprep.subr.bf16.mxu0 %v11282_v30 }
 0x52a   : > { %10890 = vmatpush3.bf16.msra.mxu0 %v10889_v57 }
 0x52d   : > { %10808 = vmatmul.mubr.msk.f32.vlgmr.msra.gmra.mrb[82].mxu0 %vm7994_vm4, %v8663_v58 }
 0x5e0   : > { %v8106_v59 = vpop.f32.mrb[74].mxu0 }
 0x5e1   : > { %v8179_v60 = vpop.f32.mrb[28].mxu1  ;;  %v10721_v62 = vpop.f32.mrb[75].mxu0 }
 0x5e2   : > { %v8180_v61 = vadd.f32 %v8179_v60, %v8106_v59  ;;  %v10732_v63 = vpop.f32.mrb[29].mxu1 }
 0x5e8   : > { %v8258_v0 = vpop.f32.mrb[76].mxu0 }
 0x5e9   : > { %v8338_v1 = vpop.f32.mrb[30].mxu1  ;;  %v8262_v2 = vadd.f32 %v8258_v0, %v8180_v61  ;;  %v10743_v3 = vpop.f32.mrb[77].mxu0 }
 0x5ea   : > { %v10754_v4 = vpop.f32.mrb[31].mxu1 }
 0x5eb   : > { %v8342_v5 = vadd.f32 %v8338_v1, %v8262_v2 }
 0x5f0   : > { %v8418_v7 = vpop.f32.mrb[78].mxu0 }
 0x5f1   : > { %v8498_v8 = vpop.f32.mrb[32].mxu1  ;;  %v8422_v25 = vadd.f32 %v8418_v7, %v8342_v5  ;;  %v10765_v30 = vpop.f32.mrb[79].mxu0 }
 0x5f2   : > { %v10776_v9 = vpop.f32.mrb[33].mxu1 }
 0x5f3   : > { %v8502_v10 = vadd.f32 %v8498_v8, %v8422_v25 }
 0x5f8   : > { %v8578_v11 = vpop.f32.mrb[80].mxu0 }
 0x5f9   : > { %v8658_v13 = vpop.f32.mrb[34].mxu1  ;;  %v8582_v14 = vadd.f32 %v8578_v11, %v8502_v10  ;;  %v10787_v15 = vpop.f32.mrb[81].mxu0 }
 0x5fa   : > { %v10798_v48 = vpop.f32.mrb[35].mxu1 }
 0x5fb   : > { %v8662_v41 = vadd.f32 %v8658_v13, %v8582_v14 }
 0x600   : > { %v8738_v44 = vpop.f32.mrb[82].mxu0 }
 0x601   : > { %v8742_v49 = vadd.f32 %v8738_v44, %v8662_v41  ;;  %v10809_v6 = vpop.f32.mrb[83].mxu0 }
 0x603   : > { %v8750_v17 = vadd.f32 %v9356_v16, %v8742_v49 }
 0x605   : > { %8751 = vst.msk [vmem:[#allocation8] sm:$0xff] %vm368_vm0, %v8750_v17 }
 0x60c   : > { %v8752_v18 = vld [vmem:[#allocation8] sm:$0x3]  ;;  %v8755_v36 = vld [vmem:[#allocation8 + $0x4] sm:$0x3] }
 0x60d   : > { %8754 = vst.msk [vmem:[%s332_s26] sm:$0x3] %vm8753_vm7, %v8752_v18  ;;  %9357 = vst.msk [vmem:[%s332_s26 + $0x2] sm:$0x3] %vm8753_vm7, %v8755_v36 }
 0x60e PF: > { %s19_s30 = sadd.s32 1, %s11279_s30  }
 0x60f   : > { %p16_p4 = scmp.ge.s32.totalorder %s19_s30, 4  }
 0x611   :  { %18 = sbr.rel (!%p16_p4) target bundleno = 1 (0x1), region = 172 }

</bundles_post_ra>
